<compile_context>
chip_gen: v7x
topology: tpu7x:2x2x1
jax: 0.10.0
libtpu: 0.0.40
codegen_flags: <defaults>
</compile_context>

<pallas_src>
import functools

import jax
import jax.numpy as jnp
from jax.experimental import pallas as pl
from jax.experimental.pallas import tpu as pltpu


# ----------------------------------------------------------------------------
# Shared in-kernel helper: 2x2 max pool into a zero-padded halo scratch.
# ----------------------------------------------------------------------------
def _pool_into_pad(x_ref, pad_ref, *, Hp, Wp):
    """x_ref: (NB, Cin, Hp, 2, Wp, 2)  ->  pad_ref: (NB, Cin, Hp+2, Wp+2)."""
    x6 = x_ref[...]
    # 2x2 max pool: the window dims were exposed by a free wrapper reshape.
    pooled = jnp.max(jnp.max(x6, axis=5), axis=3)            # (NB, Cin, Hp, Wp)
    nb, cin = pooled.shape[0], pooled.shape[1]

    # Zero only the 1-pixel border strips of the halo scratch.  Re-done every
    # grid step: the scratch is per-core and with "parallel" semantics another
    # core's first step has program_id != 0 (megacore safety).
    zrow = jnp.zeros((nb, cin, 1, Wp + 2), pad_ref.dtype)
    zcol = jnp.zeros((nb, cin, Hp + 2, 1), pad_ref.dtype)
    pad_ref[:, :, 0:1, :] = zrow
    pad_ref[:, :, Hp + 1:Hp + 2, :] = zrow
    pad_ref[:, :, :, 0:1] = zcol
    pad_ref[:, :, :, Wp + 1:Wp + 2] = zcol
    pad_ref[:, :, 1:Hp + 1, 1:Wp + 1] = pooled.astype(pad_ref.dtype)


def _silu(y):
    # SiLU: y * sigmoid(y); sigmoid via tanh (EUP slot, overflow-safe).
    return y * (0.5 * (jnp.tanh(0.5 * y) + 1.0))


# ----------------------------------------------------------------------------
# Small-channel path: direct conv on the VPU (no im2col, no MXU).
# ----------------------------------------------------------------------------
def _down_block_kernel_vpu(x_ref, w_ref, b_ref, o_ref, pad_ref,
                           *, Cin, Cout, Hp, Wp):
    """x_ref : (NB, Cin, Hp, 2, Wp, 2)  VMEM
       w_ref : (Cout*Cin*9,)            SMEM, PyTorch OIHW order, flattened
       b_ref : (Cout,)                  SMEM
       o_ref : (NB, Cout, Hp, Wp)       VMEM (NCHW output block)
       pad_ref:(NB, Cin, Hp+2, Wp+2)    VMEM halo scratch
    """
    nb = o_ref.shape[0]
    _pool_into_pad(x_ref, pad_ref, Hp=Hp, Wp=Wp)

    # Hoist the 9*Cin shifted taps once; reused by every output channel.
    taps = []
    for ci in range(Cin):
        for dh in range(3):
            for dw in range(3):
                taps.append(pad_ref[:, ci, dh:dh + Hp, dw:dw + Wp])  # (NB, Hp, Wp)

    for co in range(Cout):
        acc = jnp.full((nb, Hp, Wp), b_ref[co], dtype=jnp.float32)
        base = co * Cin * 9
        for k in range(Cin * 9):
            acc = acc + w_ref[base + k] * taps[k]
        o_ref[:, co, :, :] = _silu(acc).astype(o_ref.dtype)


# ----------------------------------------------------------------------------
# Large-channel path: single im2col MXU matmul, result directly in (Cout, M).
# ----------------------------------------------------------------------------
def _down_block_kernel_mxu(x_ref, w_ref, b_ref, o_ref, pad_ref, p_ref,
                           *, Cin, Cout, Hp, Wp):
    """x_ref : (NB, Cin, Hp, 2, Wp, 2)   VMEM
       w_ref : (Cout, 9*Cin)             VMEM; column k = (dh*3+dw)*Cin + ci
       b_ref : (Cout, 1)                 VMEM
       o_ref : (NB, Cout, Hp*Wp)         VMEM
       pad_ref:(NB, Cin, Hp+2, Wp+2)     VMEM halo scratch
       p_ref : (9*Cin, NB*Hp*Wp)         VMEM im2col patch scratch
    """
    nb = o_ref.shape[0]
    hw = Hp * Wp
    _pool_into_pad(x_ref, pad_ref, Hp=Hp, Wp=Wp)

    # Assemble the patch matrix with unit-stride sliced stores (no lane concat,
    # no large reshapes).  Rows [t*Cin, (t+1)*Cin) hold tap t = dh*3 + dw.
    for t in range(9):
        dh, dw = divmod(t, 3)
        for n in range(nb):
            for i in range(Hp):
                m0 = (n * Hp + i) * Wp
                p_ref[t * Cin:(t + 1) * Cin, m0:m0 + Wp] = (
                    pad_ref[n, :, dh + i, dw:dw + Wp])

    # One MXU matmul, f32 accumulate, already in (Cout, M) orientation.
    acc = jax.lax.dot_general(
        w_ref[...], p_ref[...],
        dimension_numbers=(((1,), (0,)), ((), ())),
        preferred_element_type=jnp.float32)                  # (Cout, NB*Hp*Wp)
    acc = acc + b_ref[...]                                   # (Cout, 1) lane broadcast
    y = _silu(acc).astype(o_ref.dtype)
    for n in range(nb):
        o_ref[n] = y[:, n * hw:(n + 1) * hw]


# ----------------------------------------------------------------------------
# VMEM budgeting and batch-tile selection.
# ----------------------------------------------------------------------------
def _round_up(v, m):
    return -(-v // m) * m


def _padded_bytes(shape, itemsize=4):
    """Approximate VMEM footprint once the minor two dims are (8,128)-tiled."""
    if len(shape) == 1:
        return _round_up(shape[0] * itemsize, 512)
    lead = 1
    for d in shape[:-2]:
        lead *= d
    return lead * _round_up(shape[-2], 8) * _round_up(shape[-1], 128) * itemsize


def _step_vmem_bytes(nb, Cin, Cout, Hp, Wp, use_mxu):
    in_blk = _padded_bytes((nb, Cin, Hp, 2, Wp, 2))
    pad = _padded_bytes((nb, Cin, Hp + 2, Wp + 2))
    if use_mxu:
        out_blk = _padded_bytes((nb, Cout, Hp * Wp))
        patch = _padded_bytes((9 * Cin, nb * Hp * Wp))
    else:
        out_blk = _padded_bytes((nb, Cout, Hp, Wp))
        patch = 0
    # 2x for double-buffered pipeline blocks + slack for live in-kernel values.
    return 2 * in_blk + 2 * out_blk + pad + patch + 2 * (pad + out_blk)


def _pick_batch_tile(N, Cin, Cout, Hp, Wp, use_mxu, budget_bytes=12 << 20):
    """Largest divisor of N that (a) keeps >= 2 'parallel' grid steps whenever
    N >= 2 (so both v7x TensorCores get work) and (b) fits the VMEM budget."""
    best = 1
    for nb in range(1, N + 1):
        if N % nb:
            continue
        if (N // nb) < min(N, 2):
            continue
        if _step_vmem_bytes(nb, Cin, Cout, Hp, Wp, use_mxu) > budget_bytes:
            continue
        best = nb
    return best


# ----------------------------------------------------------------------------
# Wrapper (PyTorch NCHW in / NCHW out, no wrapper-side transposes).
# ----------------------------------------------------------------------------
@jax.jit
def down_block(x_nchw, w_oihw, bias):
    """DownBlock forward: MaxPool2d(2) -> Conv2d(3x3, pad=1) -> SiLU."""
    N, Cin, H, W = x_nchw.shape
    Cout = w_oihw.shape[0]
    Hp, Wp = H // 2, W // 2
    # MaxPool2d(2) floors odd spatial dims, like PyTorch.
    x_even = x_nchw[:, :, :2 * Hp, :2 * Wp]
    # Free reshape: expose the 2x2 pooling windows as their own size-2 dims.
    x6 = x_even.reshape(N, Cin, Hp, 2, Wp, 2)

    # Strategy switch: the MXU adds nothing when K = 9*Cin is far below the
    # systolic array; use the direct VPU conv there instead.
    use_mxu = (9 * Cin >= 128) or (Cout * Cin * 9 > 4096)

    nb = _pick_batch_tile(N, Cin, Cout, Hp, Wp, use_mxu)
    grid = (N // nb,)

    step_bytes = _step_vmem_bytes(nb, Cin, Cout, Hp, Wp, use_mxu)
    if step_bytes > (48 << 20):
        # TODO(synk): H-tiling grid axis with a 2-row halo for large images.
        raise NotImplementedError("DownBlock tile exceeds the VMEM budget; "
                                  "H-tiling not implemented yet")
    vmem_limit = int(min(64 << 20, max(32 << 20, 2 * step_bytes)))
    cparams = pltpu.CompilerParams(
        dimension_semantics=("parallel",),
        vmem_limit_bytes=vmem_limit)

    x_spec = pl.BlockSpec((nb, Cin, Hp, 2, Wp, 2),
                          lambda n: (n, 0, 0, 0, 0, 0))
    pad_scratch = pltpu.VMEM((nb, Cin, Hp + 2, Wp + 2), jnp.float32)

    if use_mxu:
        # im2col weight matrix (Cout, 9*Cin); column k = (dh*3+dw)*Cin + ci.
        # Transposing the tiny, grid-invariant weight here is what lets the
        # kernel emit the accumulator directly in (Cout, M) with no big transpose.
        w_mat = jnp.transpose(w_oihw, (0, 2, 3, 1)).reshape(Cout, 9 * Cin)
        b_col = bias.reshape(Cout, 1)
        kern = functools.partial(_down_block_kernel_mxu,
                                 Cin=Cin, Cout=Cout, Hp=Hp, Wp=Wp)
        out = pl.pallas_call(
            kern,
            out_shape=jax.ShapeDtypeStruct((N, Cout, Hp * Wp), x_nchw.dtype),
            grid=grid,
            in_specs=[
                x_spec,
                pl.BlockSpec((Cout, 9 * Cin), lambda n: (0, 0)),
                pl.BlockSpec((Cout, 1), lambda n: (0, 0)),
            ],
            out_specs=pl.BlockSpec((nb, Cout, Hp * Wp), lambda n: (n, 0, 0)),
            scratch_shapes=[
                pad_scratch,
                pltpu.VMEM((9 * Cin, nb * Hp * Wp), jnp.float32),
            ],
            compiler_params=cparams,
        )(x6, w_mat, b_col)
        # Free reshape: (N, Cout, Hp*Wp) is already NCHW element order.
        return out.reshape(N, Cout, Hp, Wp)

    # Small-channel VPU path: scalar weights/bias in SMEM, NCHW output block.
    w_flat = w_oihw.reshape(Cout * Cin * 9)
    kern = functools.partial(_down_block_kernel_vpu,
                             Cin=Cin, Cout=Cout, Hp=Hp, Wp=Wp)
    smem = pltpu.MemorySpace.SMEM
    out = pl.pallas_call(
        kern,
        out_shape=jax.ShapeDtypeStruct((N, Cout, Hp, Wp), x_nchw.dtype),
        grid=grid,
        in_specs=[
            x_spec,
            pl.BlockSpec((Cout * Cin * 9,), lambda n: (0,), memory_space=smem),
            pl.BlockSpec((Cout,), lambda n: (0,), memory_space=smem),
        ],
        out_specs=pl.BlockSpec((nb, Cout, Hp, Wp), lambda n: (n, 0, 0, 0)),
        scratch_shapes=[pad_scratch],
        compiler_params=cparams,
    )(x6, w_flat, bias)
    return out


# ----------------------------------------------------------------------------
# Pure-JAX reference (matches PyTorch semantics) and self-test.
# ----------------------------------------------------------------------------
def down_block_reference(x_nchw, w_oihw, bias):
    pooled = jax.lax.reduce_window(
        x_nchw, -jnp.inf, jax.lax.max,
        window_dimensions=(1, 1, 2, 2), window_strides=(1, 1, 2, 2),
        padding="VALID")
    y = jax.lax.conv_general_dilated(
        pooled, w_oihw, window_strides=(1, 1), padding=((1, 1), (1, 1)),
        dimension_numbers=("NCHW", "OIHW", "NCHW"))
    y = y + bias.reshape(1, -1, 1, 1)
    return y * jax.nn.sigmoid(y)


def _make_inputs(key, n, cin, cout, h, w):
    kx, kw, kb = jax.random.split(key, 3)
    x = jax.random.normal(kx, (n, cin, h, w), dtype=jnp.float32)
    fan_in = cin * 9
    bound = 1.0 / (fan_in ** 0.5)
    wgt = jax.random.uniform(kw, (cout, cin, 3, 3), dtype=jnp.float32,
                             minval=-bound, maxval=bound)
    b = jax.random.uniform(kb, (cout,), dtype=jnp.float32,
                           minval=-bound, maxval=bound)
    return x, wgt, b


if __name__ == "__main__":
    key = jax.random.PRNGKey(0)
    k1, k2 = jax.random.split(key)

    # Config 1 (module's small shapes): DownBlock(4, 8) on (2, 4, 16, 16).
    # Exercises the small-channel direct-VPU path.
    x, w, b = _make_inputs(k1, 2, 4, 8, 16, 16)
    out = jax.block_until_ready(down_block(x, w, b))
    ref = down_block_reference(x, w, b)
    assert out.shape == (2, 8, 8, 8), out.shape
    err = float(jnp.max(jnp.abs(out - ref)))
    assert jnp.allclose(out, ref, atol=2e-5, rtol=2e-5), (
        f"VPU path mismatch vs reference, max_abs_err={err}")

    # Config 2: DownBlock(16, 32) on (2, 16, 16, 16).
    # Exercises the large-channel im2col MXU-matmul path.
    x2, w2, b2 = _make_inputs(k2, 2, 16, 32, 16, 16)
    out2 = jax.block_until_ready(down_block(x2, w2, b2))
    ref2 = down_block_reference(x2, w2, b2)
    assert out2.shape == (2, 32, 8, 8), out2.shape
    err2 = float(jnp.max(jnp.abs(out2 - ref2)))
    assert jnp.allclose(out2, ref2, atol=2e-4, rtol=2e-4), (
        f"MXU path mismatch vs reference, max_abs_err={err2}")

    print("KERNEL_OK")
</pallas_src>

<mosaic_0001>
module attributes {stable_mosaic.version = 11 : i64} {
  func.func @_down_block_kernel_vpu(%arg0: i32, %arg1: memref<1x4x8x2x8x2xf32, #tpu.memory_space<vmem>>, %arg2: memref<288xf32, #tpu.memory_space<smem>>, %arg3: memref<8xf32, #tpu.memory_space<smem>>, %arg4: memref<1x8x8x8xf32, #tpu.memory_space<vmem>>, %arg5: memref<1x4x10x10xf32, #tpu.memory_space<vmem>>) attributes {dimension_semantics = [#tpu.dimension_semantics<parallel>], iteration_bounds = array<i64: 2>, scalar_prefetch = 0 : i64, scratch_operands = 1 : i64, tpu.core_type = #tpu.core_type<tc>, window_params = [{transform_indices = @transform_0, window_bounds = array<i64: 1, 4, 8, 2, 8, 2>}, {transform_indices = @transform_1, window_bounds = array<i64: 288>}, {transform_indices = @transform_2, window_bounds = array<i64: 8>}, {transform_indices = @transform_3, window_bounds = array<i64: 1, 8, 8, 8>}]} {
    %c0 = arith.constant 0 : index
    %c0_0 = arith.constant 0 : index
    %c0_1 = arith.constant 0 : index
    %c0_2 = arith.constant 0 : index
    %c0_3 = arith.constant 0 : index
    %c0_4 = arith.constant 0 : index
    %0 = vector.load %arg1[%c0, %c0_0, %c0_1, %c0_2, %c0_3, %c0_4] : memref<1x4x8x2x8x2xf32, #tpu.memory_space<vmem>>, vector<1x4x8x2x8x2xf32>
    %cst = arith.constant dense<0xFF800000> : vector<1x4x8x2x8xf32>
    %1 = vector.multi_reduction <maximumf>, %0, %cst [5] : vector<1x4x8x2x8x2xf32> to vector<1x4x8x2x8xf32>
    %cst_5 = arith.constant dense<0xFF800000> : vector<1x4x8x8xf32>
    %2 = vector.multi_reduction <maximumf>, %1, %cst_5 [3] : vector<1x4x8x2x8xf32> to vector<1x4x8x8xf32>
    %cst_6 = arith.constant 0.000000e+00 : f32
    %3 = vector.broadcast %cst_6 : f32 to vector<1x4x1x10xf32>
    %cst_7 = arith.constant 0.000000e+00 : f32
    %4 = vector.broadcast %cst_7 : f32 to vector<1x4x10x1xf32>
    %c0_8 = arith.constant 0 : index
    %c0_9 = arith.constant 0 : index
    %c0_10 = arith.constant 0 : index
    %c0_11 = arith.constant 0 : index
    %5 = vector.load %arg5[%c0_8, %c0_9, %c0_10, %c0_11] : memref<1x4x10x10xf32, #tpu.memory_space<vmem>>, vector<1x4x1x10xf32>
    tpu.vector_store %arg5[%c0_8, %c0_9, %c0_10, %c0_11], %3 {strides = array<i32>} : memref<1x4x10x10xf32, #tpu.memory_space<vmem>>, vector<1x4x1x10xf32>,
    %c0_12 = arith.constant 0 : index
    %c0_13 = arith.constant 0 : index
    %c9 = arith.constant 9 : index
    %c0_14 = arith.constant 0 : index
    %6 = vector.load %arg5[%c0_12, %c0_13, %c9, %c0_14] : memref<1x4x10x10xf32, #tpu.memory_space<vmem>>, vector<1x4x1x10xf32>
    tpu.vector_store %arg5[%c0_12, %c0_13, %c9, %c0_14], %3 {strides = array<i32>} : memref<1x4x10x10xf32, #tpu.memory_space<vmem>>, vector<1x4x1x10xf32>,
    %c0_15 = arith.constant 0 : index
    %c0_16 = arith.constant 0 : index
    %c0_17 = arith.constant 0 : index
    %c0_18 = arith.constant 0 : index
    %7 = vector.load %arg5[%c0_15, %c0_16, %c0_17, %c0_18] : memref<1x4x10x10xf32, #tpu.memory_space<vmem>>, vector<1x4x10x1xf32>
    tpu.vector_store %arg5[%c0_15, %c0_16, %c0_17, %c0_18], %4 {strides = array<i32>} : memref<1x4x10x10xf32, #tpu.memory_space<vmem>>, vector<1x4x10x1xf32>,
    %c0_19 = arith.constant 0 : index
    %c0_20 = arith.constant 0 : index
    %c0_21 = arith.constant 0 : index
    %c9_22 = arith.constant 9 : index
    %8 = vector.load %arg5[%c0_19, %c0_20, %c0_21, %c9_22] : memref<1x4x10x10xf32, #tpu.memory_space<vmem>>, vector<1x4x10x1xf32>
    tpu.vector_store %arg5[%c0_19, %c0_20, %c0_21, %c9_22], %4 {strides = array<i32>} : memref<1x4x10x10xf32, #tpu.memory_space<vmem>>, vector<1x4x10x1xf32>,
    %c0_23 = arith.constant 0 : index
    %c0_24 = arith.constant 0 : index
    %c1 = arith.constant 1 : index
    %c1_25 = arith.constant 1 : index
    %9 = vector.load %arg5[%c0_23, %c0_24, %c1, %c1_25] : memref<1x4x10x10xf32, #tpu.memory_space<vmem>>, vector<1x4x8x8xf32>
    tpu.vector_store %arg5[%c0_23, %c0_24, %c1, %c1_25], %2 {strides = array<i32>} : memref<1x4x10x10xf32, #tpu.memory_space<vmem>>, vector<1x4x8x8xf32>,
    %c0_26 = arith.constant 0 : index
    %c0_27 = arith.constant 0 : index
    %c0_28 = arith.constant 0 : index
    %c0_29 = arith.constant 0 : index
    %10 = vector.load %arg5[%c0_26, %c0_27, %c0_28, %c0_29] : memref<1x4x10x10xf32, #tpu.memory_space<vmem>>, vector<1x1x8x8xf32>
    %11 = vector.shape_cast %10 : vector<1x1x8x8xf32> to vector<1x8x8xf32>
    %c0_30 = arith.constant 0 : index
    %c0_31 = arith.constant 0 : index
    %c0_32 = arith.constant 0 : index
    %c1_33 = arith.constant 1 : index
    %12 = vector.load %arg5[%c0_30, %c0_31, %c0_32, %c1_33] : memref<1x4x10x10xf32, #tpu.memory_space<vmem>>, vector<1x1x8x8xf32>
    %13 = vector.shape_cast %12 : vector<1x1x8x8xf32> to vector<1x8x8xf32>
    %c0_34 = arith.constant 0 : index
    %c0_35 = arith.constant 0 : index
    %c0_36 = arith.constant 0 : index
    %c2 = arith.constant 2 : index
    %14 = vector.load %arg5[%c0_34, %c0_35, %c0_36, %c2] : memref<1x4x10x10xf32, #tpu.memory_space<vmem>>, vector<1x1x8x8xf32>
    %15 = vector.shape_cast %14 : vector<1x1x8x8xf32> to vector<1x8x8xf32>
    %c0_37 = arith.constant 0 : index
    %c0_38 = arith.constant 0 : index
    %c1_39 = arith.constant 1 : index
    %c0_40 = arith.constant 0 : index
    %16 = vector.load %arg5[%c0_37, %c0_38, %c1_39, %c0_40] : memref<1x4x10x10xf32, #tpu.memory_space<vmem>>, vector<1x1x8x8xf32>
    %17 = vector.shape_cast %16 : vector<1x1x8x8xf32> to vector<1x8x8xf32>
    %c0_41 = arith.constant 0 : index
    %c0_42 = arith.constant 0 : index
    %c1_43 = arith.constant 1 : index
    %c1_44 = arith.constant 1 : index
    %18 = vector.load %arg5[%c0_41, %c0_42, %c1_43, %c1_44] : memref<1x4x10x10xf32, #tpu.memory_space<vmem>>, vector<1x1x8x8xf32>
    %19 = vector.shape_cast %18 : vector<1x1x8x8xf32> to vector<1x8x8xf32>
    %c0_45 = arith.constant 0 : index
    %c0_46 = arith.constant 0 : index
    %c1_47 = arith.constant 1 : index
    %c2_48 = arith.constant 2 : index
    %20 = vector.load %arg5[%c0_45, %c0_46, %c1_47, %c2_48] : memref<1x4x10x10xf32, #tpu.memory_space<vmem>>, vector<1x1x8x8xf32>
    %21 = vector.shape_cast %20 : vector<1x1x8x8xf32> to vector<1x8x8xf32>
    %c0_49 = arith.constant 0 : index
    %c0_50 = arith.constant 0 : index
    %c2_51 = arith.constant 2 : index
    %c0_52 = arith.constant 0 : index
    %22 = vector.load %arg5[%c0_49, %c0_50, %c2_51, %c0_52] : memref<1x4x10x10xf32, #tpu.memory_space<vmem>>, vector<1x1x8x8xf32>
    %23 = vector.shape_cast %22 : vector<1x1x8x8xf32> to vector<1x8x8xf32>
    %c0_53 = arith.constant 0 : index
    %c0_54 = arith.constant 0 : index
    %c2_55 = arith.constant 2 : index
    %c1_56 = arith.constant 1 : index
    %24 = vector.load %arg5[%c0_53, %c0_54, %c2_55, %c1_56] : memref<1x4x10x10xf32, #tpu.memory_space<vmem>>, vector<1x1x8x8xf32>
    %25 = vector.shape_cast %24 : vector<1x1x8x8xf32> to vector<1x8x8xf32>
    %c0_57 = arith.constant 0 : index
    %c0_58 = arith.constant 0 : index
    %c2_59 = arith.constant 2 : index
    %c2_60 = arith.constant 2 : index
    %26 = vector.load %arg5[%c0_57, %c0_58, %c2_59, %c2_60] : memref<1x4x10x10xf32, #tpu.memory_space<vmem>>, vector<1x1x8x8xf32>
    %27 = vector.shape_cast %26 : vector<1x1x8x8xf32> to vector<1x8x8xf32>
    %c0_61 = arith.constant 0 : index
    %c1_62 = arith.constant 1 : index
    %c0_63 = arith.constant 0 : index
    %c0_64 = arith.constant 0 : index
    %28 = vector.load %arg5[%c0_61, %c1_62, %c0_63, %c0_64] : memref<1x4x10x10xf32, #tpu.memory_space<vmem>>, vector<1x1x8x8xf32>
    %29 = vector.shape_cast %28 : vector<1x1x8x8xf32> to vector<1x8x8xf32>
    %c0_65 = arith.constant 0 : index
    %c1_66 = arith.constant 1 : index
    %c0_67 = arith.constant 0 : index
    %c1_68 = arith.constant 1 : index
    %30 = vector.load %arg5[%c0_65, %c1_66, %c0_67, %c1_68] : memref<1x4x10x10xf32, #tpu.memory_space<vmem>>, vector<1x1x8x8xf32>
    %31 = vector.shape_cast %30 : vector<1x1x8x8xf32> to vector<1x8x8xf32>
    %c0_69 = arith.constant 0 : index
    %c1_70 = arith.constant 1 : index
    %c0_71 = arith.constant 0 : index
    %c2_72 = arith.constant 2 : index
    %32 = vector.load %arg5[%c0_69, %c1_70, %c0_71, %c2_72] : memref<1x4x10x10xf32, #tpu.memory_space<vmem>>, vector<1x1x8x8xf32>
    %33 = vector.shape_cast %32 : vector<1x1x8x8xf32> to vector<1x8x8xf32>
    %c0_73 = arith.constant 0 : index
    %c1_74 = arith.constant 1 : index
    %c1_75 = arith.constant 1 : index
    %c0_76 = arith.constant 0 : index
    %34 = vector.load %arg5[%c0_73, %c1_74, %c1_75, %c0_76] : memref<1x4x10x10xf32, #tpu.memory_space<vmem>>, vector<1x1x8x8xf32>
    %35 = vector.shape_cast %34 : vector<1x1x8x8xf32> to vector<1x8x8xf32>
    %c0_77 = arith.constant 0 : index
    %c1_78 = arith.constant 1 : index
    %c1_79 = arith.constant 1 : index
    %c1_80 = arith.constant 1 : index
    %36 = vector.load %arg5[%c0_77, %c1_78, %c1_79, %c1_80] : memref<1x4x10x10xf32, #tpu.memory_space<vmem>>, vector<1x1x8x8xf32>
    %37 = vector.shape_cast %36 : vector<1x1x8x8xf32> to vector<1x8x8xf32>
    %c0_81 = arith.constant 0 : index
    %c1_82 = arith.constant 1 : index
    %c1_83 = arith.constant 1 : index
    %c2_84 = arith.constant 2 : index
    %38 = vector.load %arg5[%c0_81, %c1_82, %c1_83, %c2_84] : memref<1x4x10x10xf32, #tpu.memory_space<vmem>>, vector<1x1x8x8xf32>
    %39 = vector.shape_cast %38 : vector<1x1x8x8xf32> to vector<1x8x8xf32>
    %c0_85 = arith.constant 0 : index
    %c1_86 = arith.constant 1 : index
    %c2_87 = arith.constant 2 : index
    %c0_88 = arith.constant 0 : index
    %40 = vector.load %arg5[%c0_85, %c1_86, %c2_87, %c0_88] : memref<1x4x10x10xf32, #tpu.memory_space<vmem>>, vector<1x1x8x8xf32>
    %41 = vector.shape_cast %40 : vector<1x1x8x8xf32> to vector<1x8x8xf32>
    %c0_89 = arith.constant 0 : index
    %c1_90 = arith.constant 1 : index
    %c2_91 = arith.constant 2 : index
    %c1_92 = arith.constant 1 : index
    %42 = vector.load %arg5[%c0_89, %c1_90, %c2_91, %c1_92] : memref<1x4x10x10xf32, #tpu.memory_space<vmem>>, vector<1x1x8x8xf32>
    %43 = vector.shape_cast %42 : vector<1x1x8x8xf32> to vector<1x8x8xf32>
    %c0_93 = arith.constant 0 : index
    %c1_94 = arith.constant 1 : index
    %c2_95 = arith.constant 2 : index
    %c2_96 = arith.constant 2 : index
    %44 = vector.load %arg5[%c0_93, %c1_94, %c2_95, %c2_96] : memref<1x4x10x10xf32, #tpu.memory_space<vmem>>, vector<1x1x8x8xf32>
    %45 = vector.shape_cast %44 : vector<1x1x8x8xf32> to vector<1x8x8xf32>
    %c0_97 = arith.constant 0 : index
    %c2_98 = arith.constant 2 : index
    %c0_99 = arith.constant 0 : index
    %c0_100 = arith.constant 0 : index
    %46 = vector.load %arg5[%c0_97, %c2_98, %c0_99, %c0_100] : memref<1x4x10x10xf32, #tpu.memory_space<vmem>>, vector<1x1x8x8xf32>
    %47 = vector.shape_cast %46 : vector<1x1x8x8xf32> to vector<1x8x8xf32>
    %c0_101 = arith.constant 0 : index
    %c2_102 = arith.constant 2 : index
    %c0_103 = arith.constant 0 : index
    %c1_104 = arith.constant 1 : index
    %48 = vector.load %arg5[%c0_101, %c2_102, %c0_103, %c1_104] : memref<1x4x10x10xf32, #tpu.memory_space<vmem>>, vector<1x1x8x8xf32>
    %49 = vector.shape_cast %48 : vector<1x1x8x8xf32> to vector<1x8x8xf32>
    %c0_105 = arith.constant 0 : index
    %c2_106 = arith.constant 2 : index
    %c0_107 = arith.constant 0 : index
    %c2_108 = arith.constant 2 : index
    %50 = vector.load %arg5[%c0_105, %c2_106, %c0_107, %c2_108] : memref<1x4x10x10xf32, #tpu.memory_space<vmem>>, vector<1x1x8x8xf32>
    %51 = vector.shape_cast %50 : vector<1x1x8x8xf32> to vector<1x8x8xf32>
    %c0_109 = arith.constant 0 : index
    %c2_110 = arith.constant 2 : index
    %c1_111 = arith.constant 1 : index
    %c0_112 = arith.constant 0 : index
    %52 = vector.load %arg5[%c0_109, %c2_110, %c1_111, %c0_112] : memref<1x4x10x10xf32, #tpu.memory_space<vmem>>, vector<1x1x8x8xf32>
    %53 = vector.shape_cast %52 : vector<1x1x8x8xf32> to vector<1x8x8xf32>
    %c0_113 = arith.constant 0 : index
    %c2_114 = arith.constant 2 : index
    %c1_115 = arith.constant 1 : index
    %c1_116 = arith.constant 1 : index
    %54 = vector.load %arg5[%c0_113, %c2_114, %c1_115, %c1_116] : memref<1x4x10x10xf32, #tpu.memory_space<vmem>>, vector<1x1x8x8xf32>
    %55 = vector.shape_cast %54 : vector<1x1x8x8xf32> to vector<1x8x8xf32>
    %c0_117 = arith.constant 0 : index
    %c2_118 = arith.constant 2 : index
    %c1_119 = arith.constant 1 : index
    %c2_120 = arith.constant 2 : index
    %56 = vector.load %arg5[%c0_117, %c2_118, %c1_119, %c2_120] : memref<1x4x10x10xf32, #tpu.memory_space<vmem>>, vector<1x1x8x8xf32>
    %57 = vector.shape_cast %56 : vector<1x1x8x8xf32> to vector<1x8x8xf32>
    %c0_121 = arith.constant 0 : index
    %c2_122 = arith.constant 2 : index
    %c2_123 = arith.constant 2 : index
    %c0_124 = arith.constant 0 : index
    %58 = vector.load %arg5[%c0_121, %c2_122, %c2_123, %c0_124] : memref<1x4x10x10xf32, #tpu.memory_space<vmem>>, vector<1x1x8x8xf32>
    %59 = vector.shape_cast %58 : vector<1x1x8x8xf32> to vector<1x8x8xf32>
    %c0_125 = arith.constant 0 : index
    %c2_126 = arith.constant 2 : index
    %c2_127 = arith.constant 2 : index
    %c1_128 = arith.constant 1 : index
    %60 = vector.load %arg5[%c0_125, %c2_126, %c2_127, %c1_128] : memref<1x4x10x10xf32, #tpu.memory_space<vmem>>, vector<1x1x8x8xf32>
    %61 = vector.shape_cast %60 : vector<1x1x8x8xf32> to vector<1x8x8xf32>
    %c0_129 = arith.constant 0 : index
    %c2_130 = arith.constant 2 : index
    %c2_131 = arith.constant 2 : index
    %c2_132 = arith.constant 2 : index
    %62 = vector.load %arg5[%c0_129, %c2_130, %c2_131, %c2_132] : memref<1x4x10x10xf32, #tpu.memory_space<vmem>>, vector<1x1x8x8xf32>
    %63 = vector.shape_cast %62 : vector<1x1x8x8xf32> to vector<1x8x8xf32>
    %c0_133 = arith.constant 0 : index
    %c3 = arith.constant 3 : index
    %c0_134 = arith.constant 0 : index
    %c0_135 = arith.constant 0 : index
    %64 = vector.load %arg5[%c0_133, %c3, %c0_134, %c0_135] : memref<1x4x10x10xf32, #tpu.memory_space<vmem>>, vector<1x1x8x8xf32>
    %65 = vector.shape_cast %64 : vector<1x1x8x8xf32> to vector<1x8x8xf32>
    %c0_136 = arith.constant 0 : index
    %c3_137 = arith.constant 3 : index
    %c0_138 = arith.constant 0 : index
    %c1_139 = arith.constant 1 : index
    %66 = vector.load %arg5[%c0_136, %c3_137, %c0_138, %c1_139] : memref<1x4x10x10xf32, #tpu.memory_space<vmem>>, vector<1x1x8x8xf32>
    %67 = vector.shape_cast %66 : vector<1x1x8x8xf32> to vector<1x8x8xf32>
    %c0_140 = arith.constant 0 : index
    %c3_141 = arith.constant 3 : index
    %c0_142 = arith.constant 0 : index
    %c2_143 = arith.constant 2 : index
    %68 = vector.load %arg5[%c0_140, %c3_141, %c0_142, %c2_143] : memref<1x4x10x10xf32, #tpu.memory_space<vmem>>, vector<1x1x8x8xf32>
    %69 = vector.shape_cast %68 : vector<1x1x8x8xf32> to vector<1x8x8xf32>
    %c0_144 = arith.constant 0 : index
    %c3_145 = arith.constant 3 : index
    %c1_146 = arith.constant 1 : index
    %c0_147 = arith.constant 0 : index
    %70 = vector.load %arg5[%c0_144, %c3_145, %c1_146, %c0_147] : memref<1x4x10x10xf32, #tpu.memory_space<vmem>>, vector<1x1x8x8xf32>
    %71 = vector.shape_cast %70 : vector<1x1x8x8xf32> to vector<1x8x8xf32>
    %c0_148 = arith.constant 0 : index
    %c3_149 = arith.constant 3 : index
    %c1_150 = arith.constant 1 : index
    %c1_151 = arith.constant 1 : index
    %72 = vector.load %arg5[%c0_148, %c3_149, %c1_150, %c1_151] : memref<1x4x10x10xf32, #tpu.memory_space<vmem>>, vector<1x1x8x8xf32>
    %73 = vector.shape_cast %72 : vector<1x1x8x8xf32> to vector<1x8x8xf32>
    %c0_152 = arith.constant 0 : index
    %c3_153 = arith.constant 3 : index
    %c1_154 = arith.constant 1 : index
    %c2_155 = arith.constant 2 : index
    %74 = vector.load %arg5[%c0_152, %c3_153, %c1_154, %c2_155] : memref<1x4x10x10xf32, #tpu.memory_space<vmem>>, vector<1x1x8x8xf32>
    %75 = vector.shape_cast %74 : vector<1x1x8x8xf32> to vector<1x8x8xf32>
    %c0_156 = arith.constant 0 : index
    %c3_157 = arith.constant 3 : index
    %c2_158 = arith.constant 2 : index
    %c0_159 = arith.constant 0 : index
    %76 = vector.load %arg5[%c0_156, %c3_157, %c2_158, %c0_159] : memref<1x4x10x10xf32, #tpu.memory_space<vmem>>, vector<1x1x8x8xf32>
    %77 = vector.shape_cast %76 : vector<1x1x8x8xf32> to vector<1x8x8xf32>
    %c0_160 = arith.constant 0 : index
    %c3_161 = arith.constant 3 : index
    %c2_162 = arith.constant 2 : index
    %c1_163 = arith.constant 1 : index
    %78 = vector.load %arg5[%c0_160, %c3_161, %c2_162, %c1_163] : memref<1x4x10x10xf32, #tpu.memory_space<vmem>>, vector<1x1x8x8xf32>
    %79 = vector.shape_cast %78 : vector<1x1x8x8xf32> to vector<1x8x8xf32>
    %c0_164 = arith.constant 0 : index
    %c3_165 = arith.constant 3 : index
    %c2_166 = arith.constant 2 : index
    %c2_167 = arith.constant 2 : index
    %80 = vector.load %arg5[%c0_164, %c3_165, %c2_166, %c2_167] : memref<1x4x10x10xf32, #tpu.memory_space<vmem>>, vector<1x1x8x8xf32>
    %81 = vector.shape_cast %80 : vector<1x1x8x8xf32> to vector<1x8x8xf32>
    %c0_168 = arith.constant 0 : index
    %82 = memref.load %arg3[%c0_168] : memref<8xf32, #tpu.memory_space<smem>>
    %83 = vector.broadcast %82 : f32 to vector<1x8x8xf32>
    %c0_169 = arith.constant 0 : index
    %84 = memref.load %arg2[%c0_169] : memref<288xf32, #tpu.memory_space<smem>>
    %85 = vector.broadcast %84 : f32 to vector<1x8x8xf32>
    %86 = arith.mulf %85, %11 : vector<1x8x8xf32>
    %87 = arith.addf %83, %86 : vector<1x8x8xf32>
    %c1_170 = arith.constant 1 : index
    %88 = memref.load %arg2[%c1_170] : memref<288xf32, #tpu.memory_space<smem>>
    %89 = vector.broadcast %88 : f32 to vector<1x8x8xf32>
    %90 = arith.mulf %89, %13 : vector<1x8x8xf32>
    %91 = arith.addf %87, %90 : vector<1x8x8xf32>
    %c2_171 = arith.constant 2 : index
    %92 = memref.load %arg2[%c2_171] : memref<288xf32, #tpu.memory_space<smem>>
    %93 = vector.broadcast %92 : f32 to vector<1x8x8xf32>
    %94 = arith.mulf %93, %15 : vector<1x8x8xf32>
    %95 = arith.addf %91, %94 : vector<1x8x8xf32>
    %c3_172 = arith.constant 3 : index
    %96 = memref.load %arg2[%c3_172] : memref<288xf32, #tpu.memory_space<smem>>
    %97 = vector.broadcast %96 : f32 to vector<1x8x8xf32>
    %98 = arith.mulf %97, %17 : vector<1x8x8xf32>
    %99 = arith.addf %95, %98 : vector<1x8x8xf32>
    %c4 = arith.constant 4 : index
    %100 = memref.load %arg2[%c4] : memref<288xf32, #tpu.memory_space<smem>>
    %101 = vector.broadcast %100 : f32 to vector<1x8x8xf32>
    %102 = arith.mulf %101, %19 : vector<1x8x8xf32>
    %103 = arith.addf %99, %102 : vector<1x8x8xf32>
    %c5 = arith.constant 5 : index
    %104 = memref.load %arg2[%c5] : memref<288xf32, #tpu.memory_space<smem>>
    %105 = vector.broadcast %104 : f32 to vector<1x8x8xf32>
    %106 = arith.mulf %105, %21 : vector<1x8x8xf32>
    %107 = arith.addf %103, %106 : vector<1x8x8xf32>
    %c6 = arith.constant 6 : index
    %108 = memref.load %arg2[%c6] : memref<288xf32, #tpu.memory_space<smem>>
    %109 = vector.broadcast %108 : f32 to vector<1x8x8xf32>
    %110 = arith.mulf %109, %23 : vector<1x8x8xf32>
    %111 = arith.addf %107, %110 : vector<1x8x8xf32>
    %c7 = arith.constant 7 : index
    %112 = memref.load %arg2[%c7] : memref<288xf32, #tpu.memory_space<smem>>
    %113 = vector.broadcast %112 : f32 to vector<1x8x8xf32>
    %114 = arith.mulf %113, %25 : vector<1x8x8xf32>
    %115 = arith.addf %111, %114 : vector<1x8x8xf32>
    %c8 = arith.constant 8 : index
    %116 = memref.load %arg2[%c8] : memref<288xf32, #tpu.memory_space<smem>>
    %117 = vector.broadcast %116 : f32 to vector<1x8x8xf32>
    %118 = arith.mulf %117, %27 : vector<1x8x8xf32>
    %119 = arith.addf %115, %118 : vector<1x8x8xf32>
    %c9_173 = arith.constant 9 : index
    %120 = memref.load %arg2[%c9_173] : memref<288xf32, #tpu.memory_space<smem>>
    %121 = vector.broadcast %120 : f32 to vector<1x8x8xf32>
    %122 = arith.mulf %121, %29 : vector<1x8x8xf32>
    %123 = arith.addf %119, %122 : vector<1x8x8xf32>
    %c10 = arith.constant 10 : index
    %124 = memref.load %arg2[%c10] : memref<288xf32, #tpu.memory_space<smem>>
    %125 = vector.broadcast %124 : f32 to vector<1x8x8xf32>
    %126 = arith.mulf %125, %31 : vector<1x8x8xf32>
    %127 = arith.addf %123, %126 : vector<1x8x8xf32>
    %c11 = arith.constant 11 : index
    %128 = memref.load %arg2[%c11] : memref<288xf32, #tpu.memory_space<smem>>
    %129 = vector.broadcast %128 : f32 to vector<1x8x8xf32>
    %130 = arith.mulf %129, %33 : vector<1x8x8xf32>
    %131 = arith.addf %127, %130 : vector<1x8x8xf32>
    %c12 = arith.constant 12 : index
    %132 = memref.load %arg2[%c12] : memref<288xf32, #tpu.memory_space<smem>>
    %133 = vector.broadcast %132 : f32 to vector<1x8x8xf32>
    %134 = arith.mulf %133, %35 : vector<1x8x8xf32>
    %135 = arith.addf %131, %134 : vector<1x8x8xf32>
    %c13 = arith.constant 13 : index
    %136 = memref.load %arg2[%c13] : memref<288xf32, #tpu.memory_space<smem>>
    %137 = vector.broadcast %136 : f32 to vector<1x8x8xf32>
    %138 = arith.mulf %137, %37 : vector<1x8x8xf32>
    %139 = arith.addf %135, %138 : vector<1x8x8xf32>
    %c14 = arith.constant 14 : index
    %140 = memref.load %arg2[%c14] : memref<288xf32, #tpu.memory_space<smem>>
    %141 = vector.broadcast %140 : f32 to vector<1x8x8xf32>
    %142 = arith.mulf %141, %39 : vector<1x8x8xf32>
    %143 = arith.addf %139, %142 : vector<1x8x8xf32>
    %c15 = arith.constant 15 : index
    %144 = memref.load %arg2[%c15] : memref<288xf32, #tpu.memory_space<smem>>
    %145 = vector.broadcast %144 : f32 to vector<1x8x8xf32>
    %146 = arith.mulf %145, %41 : vector<1x8x8xf32>
    %147 = arith.addf %143, %146 : vector<1x8x8xf32>
    %c16 = arith.constant 16 : index
    %148 = memref.load %arg2[%c16] : memref<288xf32, #tpu.memory_space<smem>>
    %149 = vector.broadcast %148 : f32 to vector<1x8x8xf32>
    %150 = arith.mulf %149, %43 : vector<1x8x8xf32>
    %151 = arith.addf %147, %150 : vector<1x8x8xf32>
    %c17 = arith.constant 17 : index
    %152 = memref.load %arg2[%c17] : memref<288xf32, #tpu.memory_space<smem>>
    %153 = vector.broadcast %152 : f32 to vector<1x8x8xf32>
    %154 = arith.mulf %153, %45 : vector<1x8x8xf32>
    %155 = arith.addf %151, %154 : vector<1x8x8xf32>
    %c18 = arith.constant 18 : index
    %156 = memref.load %arg2[%c18] : memref<288xf32, #tpu.memory_space<smem>>
    %157 = vector.broadcast %156 : f32 to vector<1x8x8xf32>
    %158 = arith.mulf %157, %47 : vector<1x8x8xf32>
    %159 = arith.addf %155, %158 : vector<1x8x8xf32>
    %c19 = arith.constant 19 : index
    %160 = memref.load %arg2[%c19] : memref<288xf32, #tpu.memory_space<smem>>
    %161 = vector.broadcast %160 : f32 to vector<1x8x8xf32>
    %162 = arith.mulf %161, %49 : vector<1x8x8xf32>
    %163 = arith.addf %159, %162 : vector<1x8x8xf32>
    %c20 = arith.constant 20 : index
    %164 = memref.load %arg2[%c20] : memref<288xf32, #tpu.memory_space<smem>>
    %165 = vector.broadcast %164 : f32 to vector<1x8x8xf32>
    %166 = arith.mulf %165, %51 : vector<1x8x8xf32>
    %167 = arith.addf %163, %166 : vector<1x8x8xf32>
    %c21 = arith.constant 21 : index
    %168 = memref.load %arg2[%c21] : memref<288xf32, #tpu.memory_space<smem>>
    %169 = vector.broadcast %168 : f32 to vector<1x8x8xf32>
    %170 = arith.mulf %169, %53 : vector<1x8x8xf32>
    %171 = arith.addf %167, %170 : vector<1x8x8xf32>
    %c22 = arith.constant 22 : index
    %172 = memref.load %arg2[%c22] : memref<288xf32, #tpu.memory_space<smem>>
    %173 = vector.broadcast %172 : f32 to vector<1x8x8xf32>
    %174 = arith.mulf %173, %55 : vector<1x8x8xf32>
    %175 = arith.addf %171, %174 : vector<1x8x8xf32>
    %c23 = arith.constant 23 : index
    %176 = memref.load %arg2[%c23] : memref<288xf32, #tpu.memory_space<smem>>
    %177 = vector.broadcast %176 : f32 to vector<1x8x8xf32>
    %178 = arith.mulf %177, %57 : vector<1x8x8xf32>
    %179 = arith.addf %175, %178 : vector<1x8x8xf32>
    %c24 = arith.constant 24 : index
    %180 = memref.load %arg2[%c24] : memref<288xf32, #tpu.memory_space<smem>>
    %181 = vector.broadcast %180 : f32 to vector<1x8x8xf32>
    %182 = arith.mulf %181, %59 : vector<1x8x8xf32>
    %183 = arith.addf %179, %182 : vector<1x8x8xf32>
    %c25 = arith.constant 25 : index
    %184 = memref.load %arg2[%c25] : memref<288xf32, #tpu.memory_space<smem>>
    %185 = vector.broadcast %184 : f32 to vector<1x8x8xf32>
    %186 = arith.mulf %185, %61 : vector<1x8x8xf32>
    %187 = arith.addf %183, %186 : vector<1x8x8xf32>
    %c26 = arith.constant 26 : index
    %188 = memref.load %arg2[%c26] : memref<288xf32, #tpu.memory_space<smem>>
    %189 = vector.broadcast %188 : f32 to vector<1x8x8xf32>
    %190 = arith.mulf %189, %63 : vector<1x8x8xf32>
    %191 = arith.addf %187, %190 : vector<1x8x8xf32>
    %c27 = arith.constant 27 : index
    %192 = memref.load %arg2[%c27] : memref<288xf32, #tpu.memory_space<smem>>
    %193 = vector.broadcast %192 : f32 to vector<1x8x8xf32>
    %194 = arith.mulf %193, %65 : vector<1x8x8xf32>
    %195 = arith.addf %191, %194 : vector<1x8x8xf32>
    %c28 = arith.constant 28 : index
    %196 = memref.load %arg2[%c28] : memref<288xf32, #tpu.memory_space<smem>>
    %197 = vector.broadcast %196 : f32 to vector<1x8x8xf32>
    %198 = arith.mulf %197, %67 : vector<1x8x8xf32>
    %199 = arith.addf %195, %198 : vector<1x8x8xf32>
    %c29 = arith.constant 29 : index
    %200 = memref.load %arg2[%c29] : memref<288xf32, #tpu.memory_space<smem>>
    %201 = vector.broadcast %200 : f32 to vector<1x8x8xf32>
    %202 = arith.mulf %201, %69 : vector<1x8x8xf32>
    %203 = arith.addf %199, %202 : vector<1x8x8xf32>
    %c30 = arith.constant 30 : index
    %204 = memref.load %arg2[%c30] : memref<288xf32, #tpu.memory_space<smem>>
    %205 = vector.broadcast %204 : f32 to vector<1x8x8xf32>
    %206 = arith.mulf %205, %71 : vector<1x8x8xf32>
    %207 = arith.addf %203, %206 : vector<1x8x8xf32>
    %c31 = arith.constant 31 : index
    %208 = memref.load %arg2[%c31] : memref<288xf32, #tpu.memory_space<smem>>
    %209 = vector.broadcast %208 : f32 to vector<1x8x8xf32>
    %210 = arith.mulf %209, %73 : vector<1x8x8xf32>
    %211 = arith.addf %207, %210 : vector<1x8x8xf32>
    %c32 = arith.constant 32 : index
    %212 = memref.load %arg2[%c32] : memref<288xf32, #tpu.memory_space<smem>>
    %213 = vector.broadcast %212 : f32 to vector<1x8x8xf32>
    %214 = arith.mulf %213, %75 : vector<1x8x8xf32>
    %215 = arith.addf %211, %214 : vector<1x8x8xf32>
    %c33 = arith.constant 33 : index
    %216 = memref.load %arg2[%c33] : memref<288xf32, #tpu.memory_space<smem>>
    %217 = vector.broadcast %216 : f32 to vector<1x8x8xf32>
    %218 = arith.mulf %217, %77 : vector<1x8x8xf32>
    %219 = arith.addf %215, %218 : vector<1x8x8xf32>
    %c34 = arith.constant 34 : index
    %220 = memref.load %arg2[%c34] : memref<288xf32, #tpu.memory_space<smem>>
    %221 = vector.broadcast %220 : f32 to vector<1x8x8xf32>
    %222 = arith.mulf %221, %79 : vector<1x8x8xf32>
    %223 = arith.addf %219, %222 : vector<1x8x8xf32>
    %c35 = arith.constant 35 : index
    %224 = memref.load %arg2[%c35] : memref<288xf32, #tpu.memory_space<smem>>
    %225 = vector.broadcast %224 : f32 to vector<1x8x8xf32>
    %226 = arith.mulf %225, %81 : vector<1x8x8xf32>
    %227 = arith.addf %223, %226 : vector<1x8x8xf32>
    %cst_174 = arith.constant 5.000000e-01 : f32
    %228 = vector.broadcast %cst_174 : f32 to vector<1x8x8xf32>
    %229 = arith.mulf %228, %227 : vector<1x8x8xf32>
    %230 = math.tanh %229 : vector<1x8x8xf32>
    %cst_175 = arith.constant 1.000000e+00 : f32
    %231 = vector.broadcast %cst_175 : f32 to vector<1x8x8xf32>
    %232 = arith.addf %230, %231 : vector<1x8x8xf32>
    %cst_176 = arith.constant 5.000000e-01 : f32
    %233 = vector.broadcast %cst_176 : f32 to vector<1x8x8xf32>
    %234 = arith.mulf %233, %232 : vector<1x8x8xf32>
    %235 = arith.mulf %227, %234 : vector<1x8x8xf32>
    %c0_177 = arith.constant 0 : index
    %c0_178 = arith.constant 0 : index
    %c0_179 = arith.constant 0 : index
    %c0_180 = arith.constant 0 : index
    %236 = vector.load %arg4[%c0_177, %c0_178, %c0_179, %c0_180] : memref<1x8x8x8xf32, #tpu.memory_space<vmem>>, vector<1x1x8x8xf32>
    %237 = vector.shape_cast %236 : vector<1x1x8x8xf32> to vector<1x8x8xf32>
    %238 = vector.shape_cast %235 : vector<1x8x8xf32> to vector<1x1x8x8xf32>
    tpu.vector_store %arg4[%c0_177, %c0_178, %c0_179, %c0_180], %238 {strides = array<i32>} : memref<1x8x8x8xf32, #tpu.memory_space<vmem>>, vector<1x1x8x8xf32>,
    %c1_181 = arith.constant 1 : index
    %239 = memref.load %arg3[%c1_181] : memref<8xf32, #tpu.memory_space<smem>>
    %240 = vector.broadcast %239 : f32 to vector<1x8x8xf32>
    %c36 = arith.constant 36 : index
    %241 = memref.load %arg2[%c36] : memref<288xf32, #tpu.memory_space<smem>>
    %242 = vector.broadcast %241 : f32 to vector<1x8x8xf32>
    %243 = arith.mulf %242, %11 : vector<1x8x8xf32>
    %244 = arith.addf %240, %243 : vector<1x8x8xf32>
    %c37 = arith.constant 37 : index
    %245 = memref.load %arg2[%c37] : memref<288xf32, #tpu.memory_space<smem>>
    %246 = vector.broadcast %245 : f32 to vector<1x8x8xf32>
    %247 = arith.mulf %246, %13 : vector<1x8x8xf32>
    %248 = arith.addf %244, %247 : vector<1x8x8xf32>
    %c38 = arith.constant 38 : index
    %249 = memref.load %arg2[%c38] : memref<288xf32, #tpu.memory_space<smem>>
    %250 = vector.broadcast %249 : f32 to vector<1x8x8xf32>
    %251 = arith.mulf %250, %15 : vector<1x8x8xf32>
    %252 = arith.addf %248, %251 : vector<1x8x8xf32>
    %c39 = arith.constant 39 : index
    %253 = memref.load %arg2[%c39] : memref<288xf32, #tpu.memory_space<smem>>
    %254 = vector.broadcast %253 : f32 to vector<1x8x8xf32>
    %255 = arith.mulf %254, %17 : vector<1x8x8xf32>
    %256 = arith.addf %252, %255 : vector<1x8x8xf32>
    %c40 = arith.constant 40 : index
    %257 = memref.load %arg2[%c40] : memref<288xf32, #tpu.memory_space<smem>>
    %258 = vector.broadcast %257 : f32 to vector<1x8x8xf32>
    %259 = arith.mulf %258, %19 : vector<1x8x8xf32>
    %260 = arith.addf %256, %259 : vector<1x8x8xf32>
    %c41 = arith.constant 41 : index
    %261 = memref.load %arg2[%c41] : memref<288xf32, #tpu.memory_space<smem>>
    %262 = vector.broadcast %261 : f32 to vector<1x8x8xf32>
    %263 = arith.mulf %262, %21 : vector<1x8x8xf32>
    %264 = arith.addf %260, %263 : vector<1x8x8xf32>
    %c42 = arith.constant 42 : index
    %265 = memref.load %arg2[%c42] : memref<288xf32, #tpu.memory_space<smem>>
    %266 = vector.broadcast %265 : f32 to vector<1x8x8xf32>
    %267 = arith.mulf %266, %23 : vector<1x8x8xf32>
    %268 = arith.addf %264, %267 : vector<1x8x8xf32>
    %c43 = arith.constant 43 : index
    %269 = memref.load %arg2[%c43] : memref<288xf32, #tpu.memory_space<smem>>
    %270 = vector.broadcast %269 : f32 to vector<1x8x8xf32>
    %271 = arith.mulf %270, %25 : vector<1x8x8xf32>
    %272 = arith.addf %268, %271 : vector<1x8x8xf32>
    %c44 = arith.constant 44 : index
    %273 = memref.load %arg2[%c44] : memref<288xf32, #tpu.memory_space<smem>>
    %274 = vector.broadcast %273 : f32 to vector<1x8x8xf32>
    %275 = arith.mulf %274, %27 : vector<1x8x8xf32>
    %276 = arith.addf %272, %275 : vector<1x8x8xf32>
    %c45 = arith.constant 45 : index
    %277 = memref.load %arg2[%c45] : memref<288xf32, #tpu.memory_space<smem>>
    %278 = vector.broadcast %277 : f32 to vector<1x8x8xf32>
    %279 = arith.mulf %278, %29 : vector<1x8x8xf32>
    %280 = arith.addf %276, %279 : vector<1x8x8xf32>
    %c46 = arith.constant 46 : index
    %281 = memref.load %arg2[%c46] : memref<288xf32, #tpu.memory_space<smem>>
    %282 = vector.broadcast %281 : f32 to vector<1x8x8xf32>
    %283 = arith.mulf %282, %31 : vector<1x8x8xf32>
    %284 = arith.addf %280, %283 : vector<1x8x8xf32>
    %c47 = arith.constant 47 : index
    %285 = memref.load %arg2[%c47] : memref<288xf32, #tpu.memory_space<smem>>
    %286 = vector.broadcast %285 : f32 to vector<1x8x8xf32>
    %287 = arith.mulf %286, %33 : vector<1x8x8xf32>
    %288 = arith.addf %284, %287 : vector<1x8x8xf32>
    %c48 = arith.constant 48 : index
    %289 = memref.load %arg2[%c48] : memref<288xf32, #tpu.memory_space<smem>>
    %290 = vector.broadcast %289 : f32 to vector<1x8x8xf32>
    %291 = arith.mulf %290, %35 : vector<1x8x8xf32>
    %292 = arith.addf %288, %291 : vector<1x8x8xf32>
    %c49 = arith.constant 49 : index
    %293 = memref.load %arg2[%c49] : memref<288xf32, #tpu.memory_space<smem>>
    %294 = vector.broadcast %293 : f32 to vector<1x8x8xf32>
    %295 = arith.mulf %294, %37 : vector<1x8x8xf32>
    %296 = arith.addf %292, %295 : vector<1x8x8xf32>
    %c50 = arith.constant 50 : index
    %297 = memref.load %arg2[%c50] : memref<288xf32, #tpu.memory_space<smem>>
    %298 = vector.broadcast %297 : f32 to vector<1x8x8xf32>
    %299 = arith.mulf %298, %39 : vector<1x8x8xf32>
    %300 = arith.addf %296, %299 : vector<1x8x8xf32>
    %c51 = arith.constant 51 : index
    %301 = memref.load %arg2[%c51] : memref<288xf32, #tpu.memory_space<smem>>
    %302 = vector.broadcast %301 : f32 to vector<1x8x8xf32>
    %303 = arith.mulf %302, %41 : vector<1x8x8xf32>
    %304 = arith.addf %300, %303 : vector<1x8x8xf32>
    %c52 = arith.constant 52 : index
    %305 = memref.load %arg2[%c52] : memref<288xf32, #tpu.memory_space<smem>>
    %306 = vector.broadcast %305 : f32 to vector<1x8x8xf32>
    %307 = arith.mulf %306, %43 : vector<1x8x8xf32>
    %308 = arith.addf %304, %307 : vector<1x8x8xf32>
    %c53 = arith.constant 53 : index
    %309 = memref.load %arg2[%c53] : memref<288xf32, #tpu.memory_space<smem>>
    %310 = vector.broadcast %309 : f32 to vector<1x8x8xf32>
    %311 = arith.mulf %310, %45 : vector<1x8x8xf32>
    %312 = arith.addf %308, %311 : vector<1x8x8xf32>
    %c54 = arith.constant 54 : index
    %313 = memref.load %arg2[%c54] : memref<288xf32, #tpu.memory_space<smem>>
    %314 = vector.broadcast %313 : f32 to vector<1x8x8xf32>
    %315 = arith.mulf %314, %47 : vector<1x8x8xf32>
    %316 = arith.addf %312, %315 : vector<1x8x8xf32>
    %c55 = arith.constant 55 : index
    %317 = memref.load %arg2[%c55] : memref<288xf32, #tpu.memory_space<smem>>
    %318 = vector.broadcast %317 : f32 to vector<1x8x8xf32>
    %319 = arith.mulf %318, %49 : vector<1x8x8xf32>
    %320 = arith.addf %316, %319 : vector<1x8x8xf32>
    %c56 = arith.constant 56 : index
    %321 = memref.load %arg2[%c56] : memref<288xf32, #tpu.memory_space<smem>>
    %322 = vector.broadcast %321 : f32 to vector<1x8x8xf32>
    %323 = arith.mulf %322, %51 : vector<1x8x8xf32>
    %324 = arith.addf %320, %323 : vector<1x8x8xf32>
    %c57 = arith.constant 57 : index
    %325 = memref.load %arg2[%c57] : memref<288xf32, #tpu.memory_space<smem>>
    %326 = vector.broadcast %325 : f32 to vector<1x8x8xf32>
    %327 = arith.mulf %326, %53 : vector<1x8x8xf32>
    %328 = arith.addf %324, %327 : vector<1x8x8xf32>
    %c58 = arith.constant 58 : index
    %329 = memref.load %arg2[%c58] : memref<288xf32, #tpu.memory_space<smem>>
    %330 = vector.broadcast %329 : f32 to vector<1x8x8xf32>
    %331 = arith.mulf %330, %55 : vector<1x8x8xf32>
    %332 = arith.addf %328, %331 : vector<1x8x8xf32>
    %c59 = arith.constant 59 : index
    %333 = memref.load %arg2[%c59] : memref<288xf32, #tpu.memory_space<smem>>
    %334 = vector.broadcast %333 : f32 to vector<1x8x8xf32>
    %335 = arith.mulf %334, %57 : vector<1x8x8xf32>
    %336 = arith.addf %332, %335 : vector<1x8x8xf32>
    %c60 = arith.constant 60 : index
    %337 = memref.load %arg2[%c60] : memref<288xf32, #tpu.memory_space<smem>>
    %338 = vector.broadcast %337 : f32 to vector<1x8x8xf32>
    %339 = arith.mulf %338, %59 : vector<1x8x8xf32>
    %340 = arith.addf %336, %339 : vector<1x8x8xf32>
    %c61 = arith.constant 61 : index
    %341 = memref.load %arg2[%c61] : memref<288xf32, #tpu.memory_space<smem>>
    %342 = vector.broadcast %341 : f32 to vector<1x8x8xf32>
    %343 = arith.mulf %342, %61 : vector<1x8x8xf32>
    %344 = arith.addf %340, %343 : vector<1x8x8xf32>
    %c62 = arith.constant 62 : index
    %345 = memref.load %arg2[%c62] : memref<288xf32, #tpu.memory_space<smem>>
    %346 = vector.broadcast %345 : f32 to vector<1x8x8xf32>
    %347 = arith.mulf %346, %63 : vector<1x8x8xf32>
    %348 = arith.addf %344, %347 : vector<1x8x8xf32>
    %c63 = arith.constant 63 : index
    %349 = memref.load %arg2[%c63] : memref<288xf32, #tpu.memory_space<smem>>
    %350 = vector.broadcast %349 : f32 to vector<1x8x8xf32>
    %351 = arith.mulf %350, %65 : vector<1x8x8xf32>
    %352 = arith.addf %348, %351 : vector<1x8x8xf32>
    %c64 = arith.constant 64 : index
    %353 = memref.load %arg2[%c64] : memref<288xf32, #tpu.memory_space<smem>>
    %354 = vector.broadcast %353 : f32 to vector<1x8x8xf32>
    %355 = arith.mulf %354, %67 : vector<1x8x8xf32>
    %356 = arith.addf %352, %355 : vector<1x8x8xf32>
    %c65 = arith.constant 65 : index
    %357 = memref.load %arg2[%c65] : memref<288xf32, #tpu.memory_space<smem>>
    %358 = vector.broadcast %357 : f32 to vector<1x8x8xf32>
    %359 = arith.mulf %358, %69 : vector<1x8x8xf32>
    %360 = arith.addf %356, %359 : vector<1x8x8xf32>
    %c66 = arith.constant 66 : index
    %361 = memref.load %arg2[%c66] : memref<288xf32, #tpu.memory_space<smem>>
    %362 = vector.broadcast %361 : f32 to vector<1x8x8xf32>
    %363 = arith.mulf %362, %71 : vector<1x8x8xf32>
    %364 = arith.addf %360, %363 : vector<1x8x8xf32>
    %c67 = arith.constant 67 : index
    %365 = memref.load %arg2[%c67] : memref<288xf32, #tpu.memory_space<smem>>
    %366 = vector.broadcast %365 : f32 to vector<1x8x8xf32>
    %367 = arith.mulf %366, %73 : vector<1x8x8xf32>
    %368 = arith.addf %364, %367 : vector<1x8x8xf32>
    %c68 = arith.constant 68 : index
    %369 = memref.load %arg2[%c68] : memref<288xf32, #tpu.memory_space<smem>>
    %370 = vector.broadcast %369 : f32 to vector<1x8x8xf32>
    %371 = arith.mulf %370, %75 : vector<1x8x8xf32>
    %372 = arith.addf %368, %371 : vector<1x8x8xf32>
    %c69 = arith.constant 69 : index
    %373 = memref.load %arg2[%c69] : memref<288xf32, #tpu.memory_space<smem>>
    %374 = vector.broadcast %373 : f32 to vector<1x8x8xf32>
    %375 = arith.mulf %374, %77 : vector<1x8x8xf32>
    %376 = arith.addf %372, %375 : vector<1x8x8xf32>
    %c70 = arith.constant 70 : index
    %377 = memref.load %arg2[%c70] : memref<288xf32, #tpu.memory_space<smem>>
    %378 = vector.broadcast %377 : f32 to vector<1x8x8xf32>
    %379 = arith.mulf %378, %79 : vector<1x8x8xf32>
    %380 = arith.addf %376, %379 : vector<1x8x8xf32>
    %c71 = arith.constant 71 : index
    %381 = memref.load %arg2[%c71] : memref<288xf32, #tpu.memory_space<smem>>
    %382 = vector.broadcast %381 : f32 to vector<1x8x8xf32>
    %383 = arith.mulf %382, %81 : vector<1x8x8xf32>
    %384 = arith.addf %380, %383 : vector<1x8x8xf32>
    %cst_182 = arith.constant 5.000000e-01 : f32
    %385 = vector.broadcast %cst_182 : f32 to vector<1x8x8xf32>
    %386 = arith.mulf %385, %384 : vector<1x8x8xf32>
    %387 = math.tanh %386 : vector<1x8x8xf32>
    %cst_183 = arith.constant 1.000000e+00 : f32
    %388 = vector.broadcast %cst_183 : f32 to vector<1x8x8xf32>
    %389 = arith.addf %387, %388 : vector<1x8x8xf32>
    %cst_184 = arith.constant 5.000000e-01 : f32
    %390 = vector.broadcast %cst_184 : f32 to vector<1x8x8xf32>
    %391 = arith.mulf %390, %389 : vector<1x8x8xf32>
    %392 = arith.mulf %384, %391 : vector<1x8x8xf32>
    %c0_185 = arith.constant 0 : index
    %c1_186 = arith.constant 1 : index
    %c0_187 = arith.constant 0 : index
    %c0_188 = arith.constant 0 : index
    %393 = vector.load %arg4[%c0_185, %c1_186, %c0_187, %c0_188] : memref<1x8x8x8xf32, #tpu.memory_space<vmem>>, vector<1x1x8x8xf32>
    %394 = vector.shape_cast %393 : vector<1x1x8x8xf32> to vector<1x8x8xf32>
    %395 = vector.shape_cast %392 : vector<1x8x8xf32> to vector<1x1x8x8xf32>
    tpu.vector_store %arg4[%c0_185, %c1_186, %c0_187, %c0_188], %395 {strides = array<i32>} : memref<1x8x8x8xf32, #tpu.memory_space<vmem>>, vector<1x1x8x8xf32>,
    %c2_189 = arith.constant 2 : index
    %396 = memref.load %arg3[%c2_189] : memref<8xf32, #tpu.memory_space<smem>>
    %397 = vector.broadcast %396 : f32 to vector<1x8x8xf32>
    %c72 = arith.constant 72 : index
    %398 = memref.load %arg2[%c72] : memref<288xf32, #tpu.memory_space<smem>>
    %399 = vector.broadcast %398 : f32 to vector<1x8x8xf32>
    %400 = arith.mulf %399, %11 : vector<1x8x8xf32>
    %401 = arith.addf %397, %400 : vector<1x8x8xf32>
    %c73 = arith.constant 73 : index
    %402 = memref.load %arg2[%c73] : memref<288xf32, #tpu.memory_space<smem>>
    %403 = vector.broadcast %402 : f32 to vector<1x8x8xf32>
    %404 = arith.mulf %403, %13 : vector<1x8x8xf32>
    %405 = arith.addf %401, %404 : vector<1x8x8xf32>
    %c74 = arith.constant 74 : index
    %406 = memref.load %arg2[%c74] : memref<288xf32, #tpu.memory_space<smem>>
    %407 = vector.broadcast %406 : f32 to vector<1x8x8xf32>
    %408 = arith.mulf %407, %15 : vector<1x8x8xf32>
    %409 = arith.addf %405, %408 : vector<1x8x8xf32>
    %c75 = arith.constant 75 : index
    %410 = memref.load %arg2[%c75] : memref<288xf32, #tpu.memory_space<smem>>
    %411 = vector.broadcast %410 : f32 to vector<1x8x8xf32>
    %412 = arith.mulf %411, %17 : vector<1x8x8xf32>
    %413 = arith.addf %409, %412 : vector<1x8x8xf32>
    %c76 = arith.constant 76 : index
    %414 = memref.load %arg2[%c76] : memref<288xf32, #tpu.memory_space<smem>>
    %415 = vector.broadcast %414 : f32 to vector<1x8x8xf32>
    %416 = arith.mulf %415, %19 : vector<1x8x8xf32>
    %417 = arith.addf %413, %416 : vector<1x8x8xf32>
    %c77 = arith.constant 77 : index
    %418 = memref.load %arg2[%c77] : memref<288xf32, #tpu.memory_space<smem>>
    %419 = vector.broadcast %418 : f32 to vector<1x8x8xf32>
    %420 = arith.mulf %419, %21 : vector<1x8x8xf32>
    %421 = arith.addf %417, %420 : vector<1x8x8xf32>
    %c78 = arith.constant 78 : index
    %422 = memref.load %arg2[%c78] : memref<288xf32, #tpu.memory_space<smem>>
    %423 = vector.broadcast %422 : f32 to vector<1x8x8xf32>
    %424 = arith.mulf %423, %23 : vector<1x8x8xf32>
    %425 = arith.addf %421, %424 : vector<1x8x8xf32>
    %c79 = arith.constant 79 : index
    %426 = memref.load %arg2[%c79] : memref<288xf32, #tpu.memory_space<smem>>
    %427 = vector.broadcast %426 : f32 to vector<1x8x8xf32>
    %428 = arith.mulf %427, %25 : vector<1x8x8xf32>
    %429 = arith.addf %425, %428 : vector<1x8x8xf32>
    %c80 = arith.constant 80 : index
    %430 = memref.load %arg2[%c80] : memref<288xf32, #tpu.memory_space<smem>>
    %431 = vector.broadcast %430 : f32 to vector<1x8x8xf32>
    %432 = arith.mulf %431, %27 : vector<1x8x8xf32>
    %433 = arith.addf %429, %432 : vector<1x8x8xf32>
    %c81 = arith.constant 81 : index
    %434 = memref.load %arg2[%c81] : memref<288xf32, #tpu.memory_space<smem>>
    %435 = vector.broadcast %434 : f32 to vector<1x8x8xf32>
    %436 = arith.mulf %435, %29 : vector<1x8x8xf32>
    %437 = arith.addf %433, %436 : vector<1x8x8xf32>
    %c82 = arith.constant 82 : index
    %438 = memref.load %arg2[%c82] : memref<288xf32, #tpu.memory_space<smem>>
    %439 = vector.broadcast %438 : f32 to vector<1x8x8xf32>
    %440 = arith.mulf %439, %31 : vector<1x8x8xf32>
    %441 = arith.addf %437, %440 : vector<1x8x8xf32>
    %c83 = arith.constant 83 : index
    %442 = memref.load %arg2[%c83] : memref<288xf32, #tpu.memory_space<smem>>
    %443 = vector.broadcast %442 : f32 to vector<1x8x8xf32>
    %444 = arith.mulf %443, %33 : vector<1x8x8xf32>
    %445 = arith.addf %441, %444 : vector<1x8x8xf32>
    %c84 = arith.constant 84 : index
    %446 = memref.load %arg2[%c84] : memref<288xf32, #tpu.memory_space<smem>>
    %447 = vector.broadcast %446 : f32 to vector<1x8x8xf32>
    %448 = arith.mulf %447, %35 : vector<1x8x8xf32>
    %449 = arith.addf %445, %448 : vector<1x8x8xf32>
    %c85 = arith.constant 85 : index
    %450 = memref.load %arg2[%c85] : memref<288xf32, #tpu.memory_space<smem>>
    %451 = vector.broadcast %450 : f32 to vector<1x8x8xf32>
    %452 = arith.mulf %451, %37 : vector<1x8x8xf32>
    %453 = arith.addf %449, %452 : vector<1x8x8xf32>
    %c86 = arith.constant 86 : index
    %454 = memref.load %arg2[%c86] : memref<288xf32, #tpu.memory_space<smem>>
    %455 = vector.broadcast %454 : f32 to vector<1x8x8xf32>
    %456 = arith.mulf %455, %39 : vector<1x8x8xf32>
    %457 = arith.addf %453, %456 : vector<1x8x8xf32>
    %c87 = arith.constant 87 : index
    %458 = memref.load %arg2[%c87] : memref<288xf32, #tpu.memory_space<smem>>
    %459 = vector.broadcast %458 : f32 to vector<1x8x8xf32>
    %460 = arith.mulf %459, %41 : vector<1x8x8xf32>
    %461 = arith.addf %457, %460 : vector<1x8x8xf32>
    %c88 = arith.constant 88 : index
    %462 = memref.load %arg2[%c88] : memref<288xf32, #tpu.memory_space<smem>>
    %463 = vector.broadcast %462 : f32 to vector<1x8x8xf32>
    %464 = arith.mulf %463, %43 : vector<1x8x8xf32>
    %465 = arith.addf %461, %464 : vector<1x8x8xf32>
    %c89 = arith.constant 89 : index
    %466 = memref.load %arg2[%c89] : memref<288xf32, #tpu.memory_space<smem>>
    %467 = vector.broadcast %466 : f32 to vector<1x8x8xf32>
    %468 = arith.mulf %467, %45 : vector<1x8x8xf32>
    %469 = arith.addf %465, %468 : vector<1x8x8xf32>
    %c90 = arith.constant 90 : index
    %470 = memref.load %arg2[%c90] : memref<288xf32, #tpu.memory_space<smem>>
    %471 = vector.broadcast %470 : f32 to vector<1x8x8xf32>
    %472 = arith.mulf %471, %47 : vector<1x8x8xf32>
    %473 = arith.addf %469, %472 : vector<1x8x8xf32>
    %c91 = arith.constant 91 : index
    %474 = memref.load %arg2[%c91] : memref<288xf32, #tpu.memory_space<smem>>
    %475 = vector.broadcast %474 : f32 to vector<1x8x8xf32>
    %476 = arith.mulf %475, %49 : vector<1x8x8xf32>
    %477 = arith.addf %473, %476 : vector<1x8x8xf32>
    %c92 = arith.constant 92 : index
    %478 = memref.load %arg2[%c92] : memref<288xf32, #tpu.memory_space<smem>>
    %479 = vector.broadcast %478 : f32 to vector<1x8x8xf32>
    %480 = arith.mulf %479, %51 : vector<1x8x8xf32>
    %481 = arith.addf %477, %480 : vector<1x8x8xf32>
    %c93 = arith.constant 93 : index
    %482 = memref.load %arg2[%c93] : memref<288xf32, #tpu.memory_space<smem>>
    %483 = vector.broadcast %482 : f32 to vector<1x8x8xf32>
    %484 = arith.mulf %483, %53 : vector<1x8x8xf32>
    %485 = arith.addf %481, %484 : vector<1x8x8xf32>
    %c94 = arith.constant 94 : index
    %486 = memref.load %arg2[%c94] : memref<288xf32, #tpu.memory_space<smem>>
    %487 = vector.broadcast %486 : f32 to vector<1x8x8xf32>
    %488 = arith.mulf %487, %55 : vector<1x8x8xf32>
    %489 = arith.addf %485, %488 : vector<1x8x8xf32>
    %c95 = arith.constant 95 : index
    %490 = memref.load %arg2[%c95] : memref<288xf32, #tpu.memory_space<smem>>
    %491 = vector.broadcast %490 : f32 to vector<1x8x8xf32>
    %492 = arith.mulf %491, %57 : vector<1x8x8xf32>
    %493 = arith.addf %489, %492 : vector<1x8x8xf32>
    %c96 = arith.constant 96 : index
    %494 = memref.load %arg2[%c96] : memref<288xf32, #tpu.memory_space<smem>>
    %495 = vector.broadcast %494 : f32 to vector<1x8x8xf32>
    %496 = arith.mulf %495, %59 : vector<1x8x8xf32>
    %497 = arith.addf %493, %496 : vector<1x8x8xf32>
    %c97 = arith.constant 97 : index
    %498 = memref.load %arg2[%c97] : memref<288xf32, #tpu.memory_space<smem>>
    %499 = vector.broadcast %498 : f32 to vector<1x8x8xf32>
    %500 = arith.mulf %499, %61 : vector<1x8x8xf32>
    %501 = arith.addf %497, %500 : vector<1x8x8xf32>
    %c98 = arith.constant 98 : index
    %502 = memref.load %arg2[%c98] : memref<288xf32, #tpu.memory_space<smem>>
    %503 = vector.broadcast %502 : f32 to vector<1x8x8xf32>
    %504 = arith.mulf %503, %63 : vector<1x8x8xf32>
    %505 = arith.addf %501, %504 : vector<1x8x8xf32>
    %c99 = arith.constant 99 : index
    %506 = memref.load %arg2[%c99] : memref<288xf32, #tpu.memory_space<smem>>
    %507 = vector.broadcast %506 : f32 to vector<1x8x8xf32>
    %508 = arith.mulf %507, %65 : vector<1x8x8xf32>
    %509 = arith.addf %505, %508 : vector<1x8x8xf32>
    %c100 = arith.constant 100 : index
    %510 = memref.load %arg2[%c100] : memref<288xf32, #tpu.memory_space<smem>>
    %511 = vector.broadcast %510 : f32 to vector<1x8x8xf32>
    %512 = arith.mulf %511, %67 : vector<1x8x8xf32>
    %513 = arith.addf %509, %512 : vector<1x8x8xf32>
    %c101 = arith.constant 101 : index
    %514 = memref.load %arg2[%c101] : memref<288xf32, #tpu.memory_space<smem>>
    %515 = vector.broadcast %514 : f32 to vector<1x8x8xf32>
    %516 = arith.mulf %515, %69 : vector<1x8x8xf32>
    %517 = arith.addf %513, %516 : vector<1x8x8xf32>
    %c102 = arith.constant 102 : index
    %518 = memref.load %arg2[%c102] : memref<288xf32, #tpu.memory_space<smem>>
    %519 = vector.broadcast %518 : f32 to vector<1x8x8xf32>
    %520 = arith.mulf %519, %71 : vector<1x8x8xf32>
    %521 = arith.addf %517, %520 : vector<1x8x8xf32>
    %c103 = arith.constant 103 : index
    %522 = memref.load %arg2[%c103] : memref<288xf32, #tpu.memory_space<smem>>
    %523 = vector.broadcast %522 : f32 to vector<1x8x8xf32>
    %524 = arith.mulf %523, %73 : vector<1x8x8xf32>
    %525 = arith.addf %521, %524 : vector<1x8x8xf32>
    %c104 = arith.constant 104 : index
    %526 = memref.load %arg2[%c104] : memref<288xf32, #tpu.memory_space<smem>>
    %527 = vector.broadcast %526 : f32 to vector<1x8x8xf32>
    %528 = arith.mulf %527, %75 : vector<1x8x8xf32>
    %529 = arith.addf %525, %528 : vector<1x8x8xf32>
    %c105 = arith.constant 105 : index
    %530 = memref.load %arg2[%c105] : memref<288xf32, #tpu.memory_space<smem>>
    %531 = vector.broadcast %530 : f32 to vector<1x8x8xf32>
    %532 = arith.mulf %531, %77 : vector<1x8x8xf32>
    %533 = arith.addf %529, %532 : vector<1x8x8xf32>
    %c106 = arith.constant 106 : index
    %534 = memref.load %arg2[%c106] : memref<288xf32, #tpu.memory_space<smem>>
    %535 = vector.broadcast %534 : f32 to vector<1x8x8xf32>
    %536 = arith.mulf %535, %79 : vector<1x8x8xf32>
    %537 = arith.addf %533, %536 : vector<1x8x8xf32>
    %c107 = arith.constant 107 : index
    %538 = memref.load %arg2[%c107] : memref<288xf32, #tpu.memory_space<smem>>
    %539 = vector.broadcast %538 : f32 to vector<1x8x8xf32>
    %540 = arith.mulf %539, %81 : vector<1x8x8xf32>
    %541 = arith.addf %537, %540 : vector<1x8x8xf32>
    %cst_190 = arith.constant 5.000000e-01 : f32
    %542 = vector.broadcast %cst_190 : f32 to vector<1x8x8xf32>
    %543 = arith.mulf %542, %541 : vector<1x8x8xf32>
    %544 = math.tanh %543 : vector<1x8x8xf32>
    %cst_191 = arith.constant 1.000000e+00 : f32
    %545 = vector.broadcast %cst_191 : f32 to vector<1x8x8xf32>
    %546 = arith.addf %544, %545 : vector<1x8x8xf32>
    %cst_192 = arith.constant 5.000000e-01 : f32
    %547 = vector.broadcast %cst_192 : f32 to vector<1x8x8xf32>
    %548 = arith.mulf %547, %546 : vector<1x8x8xf32>
    %549 = arith.mulf %541, %548 : vector<1x8x8xf32>
    %c0_193 = arith.constant 0 : index
    %c2_194 = arith.constant 2 : index
    %c0_195 = arith.constant 0 : index
    %c0_196 = arith.constant 0 : index
    %550 = vector.load %arg4[%c0_193, %c2_194, %c0_195, %c0_196] : memref<1x8x8x8xf32, #tpu.memory_space<vmem>>, vector<1x1x8x8xf32>
    %551 = vector.shape_cast %550 : vector<1x1x8x8xf32> to vector<1x8x8xf32>
    %552 = vector.shape_cast %549 : vector<1x8x8xf32> to vector<1x1x8x8xf32>
    tpu.vector_store %arg4[%c0_193, %c2_194, %c0_195, %c0_196], %552 {strides = array<i32>} : memref<1x8x8x8xf32, #tpu.memory_space<vmem>>, vector<1x1x8x8xf32>,
    %c3_197 = arith.constant 3 : index
    %553 = memref.load %arg3[%c3_197] : memref<8xf32, #tpu.memory_space<smem>>
    %554 = vector.broadcast %553 : f32 to vector<1x8x8xf32>
    %c108 = arith.constant 108 : index
    %555 = memref.load %arg2[%c108] : memref<288xf32, #tpu.memory_space<smem>>
    %556 = vector.broadcast %555 : f32 to vector<1x8x8xf32>
    %557 = arith.mulf %556, %11 : vector<1x8x8xf32>
    %558 = arith.addf %554, %557 : vector<1x8x8xf32>
    %c109 = arith.constant 109 : index
    %559 = memref.load %arg2[%c109] : memref<288xf32, #tpu.memory_space<smem>>
    %560 = vector.broadcast %559 : f32 to vector<1x8x8xf32>
    %561 = arith.mulf %560, %13 : vector<1x8x8xf32>
    %562 = arith.addf %558, %561 : vector<1x8x8xf32>
    %c110 = arith.constant 110 : index
    %563 = memref.load %arg2[%c110] : memref<288xf32, #tpu.memory_space<smem>>
    %564 = vector.broadcast %563 : f32 to vector<1x8x8xf32>
    %565 = arith.mulf %564, %15 : vector<1x8x8xf32>
    %566 = arith.addf %562, %565 : vector<1x8x8xf32>
    %c111 = arith.constant 111 : index
    %567 = memref.load %arg2[%c111] : memref<288xf32, #tpu.memory_space<smem>>
    %568 = vector.broadcast %567 : f32 to vector<1x8x8xf32>
    %569 = arith.mulf %568, %17 : vector<1x8x8xf32>
    %570 = arith.addf %566, %569 : vector<1x8x8xf32>
    %c112 = arith.constant 112 : index
    %571 = memref.load %arg2[%c112] : memref<288xf32, #tpu.memory_space<smem>>
    %572 = vector.broadcast %571 : f32 to vector<1x8x8xf32>
    %573 = arith.mulf %572, %19 : vector<1x8x8xf32>
    %574 = arith.addf %570, %573 : vector<1x8x8xf32>
    %c113 = arith.constant 113 : index
    %575 = memref.load %arg2[%c113] : memref<288xf32, #tpu.memory_space<smem>>
    %576 = vector.broadcast %575 : f32 to vector<1x8x8xf32>
    %577 = arith.mulf %576, %21 : vector<1x8x8xf32>
    %578 = arith.addf %574, %577 : vector<1x8x8xf32>
    %c114 = arith.constant 114 : index
    %579 = memref.load %arg2[%c114] : memref<288xf32, #tpu.memory_space<smem>>
    %580 = vector.broadcast %579 : f32 to vector<1x8x8xf32>
    %581 = arith.mulf %580, %23 : vector<1x8x8xf32>
    %582 = arith.addf %578, %581 : vector<1x8x8xf32>
    %c115 = arith.constant 115 : index
    %583 = memref.load %arg2[%c115] : memref<288xf32, #tpu.memory_space<smem>>
    %584 = vector.broadcast %583 : f32 to vector<1x8x8xf32>
    %585 = arith.mulf %584, %25 : vector<1x8x8xf32>
    %586 = arith.addf %582, %585 : vector<1x8x8xf32>
    %c116 = arith.constant 116 : index
    %587 = memref.load %arg2[%c116] : memref<288xf32, #tpu.memory_space<smem>>
    %588 = vector.broadcast %587 : f32 to vector<1x8x8xf32>
    %589 = arith.mulf %588, %27 : vector<1x8x8xf32>
    %590 = arith.addf %586, %589 : vector<1x8x8xf32>
    %c117 = arith.constant 117 : index
    %591 = memref.load %arg2[%c117] : memref<288xf32, #tpu.memory_space<smem>>
    %592 = vector.broadcast %591 : f32 to vector<1x8x8xf32>
    %593 = arith.mulf %592, %29 : vector<1x8x8xf32>
    %594 = arith.addf %590, %593 : vector<1x8x8xf32>
    %c118 = arith.constant 118 : index
    %595 = memref.load %arg2[%c118] : memref<288xf32, #tpu.memory_space<smem>>
    %596 = vector.broadcast %595 : f32 to vector<1x8x8xf32>
    %597 = arith.mulf %596, %31 : vector<1x8x8xf32>
    %598 = arith.addf %594, %597 : vector<1x8x8xf32>
    %c119 = arith.constant 119 : index
    %599 = memref.load %arg2[%c119] : memref<288xf32, #tpu.memory_space<smem>>
    %600 = vector.broadcast %599 : f32 to vector<1x8x8xf32>
    %601 = arith.mulf %600, %33 : vector<1x8x8xf32>
    %602 = arith.addf %598, %601 : vector<1x8x8xf32>
    %c120 = arith.constant 120 : index
    %603 = memref.load %arg2[%c120] : memref<288xf32, #tpu.memory_space<smem>>
    %604 = vector.broadcast %603 : f32 to vector<1x8x8xf32>
    %605 = arith.mulf %604, %35 : vector<1x8x8xf32>
    %606 = arith.addf %602, %605 : vector<1x8x8xf32>
    %c121 = arith.constant 121 : index
    %607 = memref.load %arg2[%c121] : memref<288xf32, #tpu.memory_space<smem>>
    %608 = vector.broadcast %607 : f32 to vector<1x8x8xf32>
    %609 = arith.mulf %608, %37 : vector<1x8x8xf32>
    %610 = arith.addf %606, %609 : vector<1x8x8xf32>
    %c122 = arith.constant 122 : index
    %611 = memref.load %arg2[%c122] : memref<288xf32, #tpu.memory_space<smem>>
    %612 = vector.broadcast %611 : f32 to vector<1x8x8xf32>
    %613 = arith.mulf %612, %39 : vector<1x8x8xf32>
    %614 = arith.addf %610, %613 : vector<1x8x8xf32>
    %c123 = arith.constant 123 : index
    %615 = memref.load %arg2[%c123] : memref<288xf32, #tpu.memory_space<smem>>
    %616 = vector.broadcast %615 : f32 to vector<1x8x8xf32>
    %617 = arith.mulf %616, %41 : vector<1x8x8xf32>
    %618 = arith.addf %614, %617 : vector<1x8x8xf32>
    %c124 = arith.constant 124 : index
    %619 = memref.load %arg2[%c124] : memref<288xf32, #tpu.memory_space<smem>>
    %620 = vector.broadcast %619 : f32 to vector<1x8x8xf32>
    %621 = arith.mulf %620, %43 : vector<1x8x8xf32>
    %622 = arith.addf %618, %621 : vector<1x8x8xf32>
    %c125 = arith.constant 125 : index
    %623 = memref.load %arg2[%c125] : memref<288xf32, #tpu.memory_space<smem>>
    %624 = vector.broadcast %623 : f32 to vector<1x8x8xf32>
    %625 = arith.mulf %624, %45 : vector<1x8x8xf32>
    %626 = arith.addf %622, %625 : vector<1x8x8xf32>
    %c126 = arith.constant 126 : index
    %627 = memref.load %arg2[%c126] : memref<288xf32, #tpu.memory_space<smem>>
    %628 = vector.broadcast %627 : f32 to vector<1x8x8xf32>
    %629 = arith.mulf %628, %47 : vector<1x8x8xf32>
    %630 = arith.addf %626, %629 : vector<1x8x8xf32>
    %c127 = arith.constant 127 : index
    %631 = memref.load %arg2[%c127] : memref<288xf32, #tpu.memory_space<smem>>
    %632 = vector.broadcast %631 : f32 to vector<1x8x8xf32>
    %633 = arith.mulf %632, %49 : vector<1x8x8xf32>
    %634 = arith.addf %630, %633 : vector<1x8x8xf32>
    %c128 = arith.constant 128 : index
    %635 = memref.load %arg2[%c128] : memref<288xf32, #tpu.memory_space<smem>>
    %636 = vector.broadcast %635 : f32 to vector<1x8x8xf32>
    %637 = arith.mulf %636, %51 : vector<1x8x8xf32>
    %638 = arith.addf %634, %637 : vector<1x8x8xf32>
    %c129 = arith.constant 129 : index
    %639 = memref.load %arg2[%c129] : memref<288xf32, #tpu.memory_space<smem>>
    %640 = vector.broadcast %639 : f32 to vector<1x8x8xf32>
    %641 = arith.mulf %640, %53 : vector<1x8x8xf32>
    %642 = arith.addf %638, %641 : vector<1x8x8xf32>
    %c130 = arith.constant 130 : index
    %643 = memref.load %arg2[%c130] : memref<288xf32, #tpu.memory_space<smem>>
    %644 = vector.broadcast %643 : f32 to vector<1x8x8xf32>
    %645 = arith.mulf %644, %55 : vector<1x8x8xf32>
    %646 = arith.addf %642, %645 : vector<1x8x8xf32>
    %c131 = arith.constant 131 : index
    %647 = memref.load %arg2[%c131] : memref<288xf32, #tpu.memory_space<smem>>
    %648 = vector.broadcast %647 : f32 to vector<1x8x8xf32>
    %649 = arith.mulf %648, %57 : vector<1x8x8xf32>
    %650 = arith.addf %646, %649 : vector<1x8x8xf32>
    %c132 = arith.constant 132 : index
    %651 = memref.load %arg2[%c132] : memref<288xf32, #tpu.memory_space<smem>>
    %652 = vector.broadcast %651 : f32 to vector<1x8x8xf32>
    %653 = arith.mulf %652, %59 : vector<1x8x8xf32>
    %654 = arith.addf %650, %653 : vector<1x8x8xf32>
    %c133 = arith.constant 133 : index
    %655 = memref.load %arg2[%c133] : memref<288xf32, #tpu.memory_space<smem>>
    %656 = vector.broadcast %655 : f32 to vector<1x8x8xf32>
    %657 = arith.mulf %656, %61 : vector<1x8x8xf32>
    %658 = arith.addf %654, %657 : vector<1x8x8xf32>
    %c134 = arith.constant 134 : index
    %659 = memref.load %arg2[%c134] : memref<288xf32, #tpu.memory_space<smem>>
    %660 = vector.broadcast %659 : f32 to vector<1x8x8xf32>
    %661 = arith.mulf %660, %63 : vector<1x8x8xf32>
    %662 = arith.addf %658, %661 : vector<1x8x8xf32>
    %c135 = arith.constant 135 : index
    %663 = memref.load %arg2[%c135] : memref<288xf32, #tpu.memory_space<smem>>
    %664 = vector.broadcast %663 : f32 to vector<1x8x8xf32>
    %665 = arith.mulf %664, %65 : vector<1x8x8xf32>
    %666 = arith.addf %662, %665 : vector<1x8x8xf32>
    %c136 = arith.constant 136 : index
    %667 = memref.load %arg2[%c136] : memref<288xf32, #tpu.memory_space<smem>>
    %668 = vector.broadcast %667 : f32 to vector<1x8x8xf32>
    %669 = arith.mulf %668, %67 : vector<1x8x8xf32>
    %670 = arith.addf %666, %669 : vector<1x8x8xf32>
    %c137 = arith.constant 137 : index
    %671 = memref.load %arg2[%c137] : memref<288xf32, #tpu.memory_space<smem>>
    %672 = vector.broadcast %671 : f32 to vector<1x8x8xf32>
    %673 = arith.mulf %672, %69 : vector<1x8x8xf32>
    %674 = arith.addf %670, %673 : vector<1x8x8xf32>
    %c138 = arith.constant 138 : index
    %675 = memref.load %arg2[%c138] : memref<288xf32, #tpu.memory_space<smem>>
    %676 = vector.broadcast %675 : f32 to vector<1x8x8xf32>
    %677 = arith.mulf %676, %71 : vector<1x8x8xf32>
    %678 = arith.addf %674, %677 : vector<1x8x8xf32>
    %c139 = arith.constant 139 : index
    %679 = memref.load %arg2[%c139] : memref<288xf32, #tpu.memory_space<smem>>
    %680 = vector.broadcast %679 : f32 to vector<1x8x8xf32>
    %681 = arith.mulf %680, %73 : vector<1x8x8xf32>
    %682 = arith.addf %678, %681 : vector<1x8x8xf32>
    %c140 = arith.constant 140 : index
    %683 = memref.load %arg2[%c140] : memref<288xf32, #tpu.memory_space<smem>>
    %684 = vector.broadcast %683 : f32 to vector<1x8x8xf32>
    %685 = arith.mulf %684, %75 : vector<1x8x8xf32>
    %686 = arith.addf %682, %685 : vector<1x8x8xf32>
    %c141 = arith.constant 141 : index
    %687 = memref.load %arg2[%c141] : memref<288xf32, #tpu.memory_space<smem>>
    %688 = vector.broadcast %687 : f32 to vector<1x8x8xf32>
    %689 = arith.mulf %688, %77 : vector<1x8x8xf32>
    %690 = arith.addf %686, %689 : vector<1x8x8xf32>
    %c142 = arith.constant 142 : index
    %691 = memref.load %arg2[%c142] : memref<288xf32, #tpu.memory_space<smem>>
    %692 = vector.broadcast %691 : f32 to vector<1x8x8xf32>
    %693 = arith.mulf %692, %79 : vector<1x8x8xf32>
    %694 = arith.addf %690, %693 : vector<1x8x8xf32>
    %c143 = arith.constant 143 : index
    %695 = memref.load %arg2[%c143] : memref<288xf32, #tpu.memory_space<smem>>
    %696 = vector.broadcast %695 : f32 to vector<1x8x8xf32>
    %697 = arith.mulf %696, %81 : vector<1x8x8xf32>
    %698 = arith.addf %694, %697 : vector<1x8x8xf32>
    %cst_198 = arith.constant 5.000000e-01 : f32
    %699 = vector.broadcast %cst_198 : f32 to vector<1x8x8xf32>
    %700 = arith.mulf %699, %698 : vector<1x8x8xf32>
    %701 = math.tanh %700 : vector<1x8x8xf32>
    %cst_199 = arith.constant 1.000000e+00 : f32
    %702 = vector.broadcast %cst_199 : f32 to vector<1x8x8xf32>
    %703 = arith.addf %701, %702 : vector<1x8x8xf32>
    %cst_200 = arith.constant 5.000000e-01 : f32
    %704 = vector.broadcast %cst_200 : f32 to vector<1x8x8xf32>
    %705 = arith.mulf %704, %703 : vector<1x8x8xf32>
    %706 = arith.mulf %698, %705 : vector<1x8x8xf32>
    %c0_201 = arith.constant 0 : index
    %c3_202 = arith.constant 3 : index
    %c0_203 = arith.constant 0 : index
    %c0_204 = arith.constant 0 : index
    %707 = vector.load %arg4[%c0_201, %c3_202, %c0_203, %c0_204] : memref<1x8x8x8xf32, #tpu.memory_space<vmem>>, vector<1x1x8x8xf32>
    %708 = vector.shape_cast %707 : vector<1x1x8x8xf32> to vector<1x8x8xf32>
    %709 = vector.shape_cast %706 : vector<1x8x8xf32> to vector<1x1x8x8xf32>
    tpu.vector_store %arg4[%c0_201, %c3_202, %c0_203, %c0_204], %709 {strides = array<i32>} : memref<1x8x8x8xf32, #tpu.memory_space<vmem>>, vector<1x1x8x8xf32>,
    %c4_205 = arith.constant 4 : index
    %710 = memref.load %arg3[%c4_205] : memref<8xf32, #tpu.memory_space<smem>>
    %711 = vector.broadcast %710 : f32 to vector<1x8x8xf32>
    %c144 = arith.constant 144 : index
    %712 = memref.load %arg2[%c144] : memref<288xf32, #tpu.memory_space<smem>>
    %713 = vector.broadcast %712 : f32 to vector<1x8x8xf32>
    %714 = arith.mulf %713, %11 : vector<1x8x8xf32>
    %715 = arith.addf %711, %714 : vector<1x8x8xf32>
    %c145 = arith.constant 145 : index
    %716 = memref.load %arg2[%c145] : memref<288xf32, #tpu.memory_space<smem>>
    %717 = vector.broadcast %716 : f32 to vector<1x8x8xf32>
    %718 = arith.mulf %717, %13 : vector<1x8x8xf32>
    %719 = arith.addf %715, %718 : vector<1x8x8xf32>
    %c146 = arith.constant 146 : index
    %720 = memref.load %arg2[%c146] : memref<288xf32, #tpu.memory_space<smem>>
    %721 = vector.broadcast %720 : f32 to vector<1x8x8xf32>
    %722 = arith.mulf %721, %15 : vector<1x8x8xf32>
    %723 = arith.addf %719, %722 : vector<1x8x8xf32>
    %c147 = arith.constant 147 : index
    %724 = memref.load %arg2[%c147] : memref<288xf32, #tpu.memory_space<smem>>
    %725 = vector.broadcast %724 : f32 to vector<1x8x8xf32>
    %726 = arith.mulf %725, %17 : vector<1x8x8xf32>
    %727 = arith.addf %723, %726 : vector<1x8x8xf32>
    %c148 = arith.constant 148 : index
    %728 = memref.load %arg2[%c148] : memref<288xf32, #tpu.memory_space<smem>>
    %729 = vector.broadcast %728 : f32 to vector<1x8x8xf32>
    %730 = arith.mulf %729, %19 : vector<1x8x8xf32>
    %731 = arith.addf %727, %730 : vector<1x8x8xf32>
    %c149 = arith.constant 149 : index
    %732 = memref.load %arg2[%c149] : memref<288xf32, #tpu.memory_space<smem>>
    %733 = vector.broadcast %732 : f32 to vector<1x8x8xf32>
    %734 = arith.mulf %733, %21 : vector<1x8x8xf32>
    %735 = arith.addf %731, %734 : vector<1x8x8xf32>
    %c150 = arith.constant 150 : index
    %736 = memref.load %arg2[%c150] : memref<288xf32, #tpu.memory_space<smem>>
    %737 = vector.broadcast %736 : f32 to vector<1x8x8xf32>
    %738 = arith.mulf %737, %23 : vector<1x8x8xf32>
    %739 = arith.addf %735, %738 : vector<1x8x8xf32>
    %c151 = arith.constant 151 : index
    %740 = memref.load %arg2[%c151] : memref<288xf32, #tpu.memory_space<smem>>
    %741 = vector.broadcast %740 : f32 to vector<1x8x8xf32>
    %742 = arith.mulf %741, %25 : vector<1x8x8xf32>
    %743 = arith.addf %739, %742 : vector<1x8x8xf32>
    %c152 = arith.constant 152 : index
    %744 = memref.load %arg2[%c152] : memref<288xf32, #tpu.memory_space<smem>>
    %745 = vector.broadcast %744 : f32 to vector<1x8x8xf32>
    %746 = arith.mulf %745, %27 : vector<1x8x8xf32>
    %747 = arith.addf %743, %746 : vector<1x8x8xf32>
    %c153 = arith.constant 153 : index
    %748 = memref.load %arg2[%c153] : memref<288xf32, #tpu.memory_space<smem>>
    %749 = vector.broadcast %748 : f32 to vector<1x8x8xf32>
    %750 = arith.mulf %749, %29 : vector<1x8x8xf32>
    %751 = arith.addf %747, %750 : vector<1x8x8xf32>
    %c154 = arith.constant 154 : index
    %752 = memref.load %arg2[%c154] : memref<288xf32, #tpu.memory_space<smem>>
    %753 = vector.broadcast %752 : f32 to vector<1x8x8xf32>
    %754 = arith.mulf %753, %31 : vector<1x8x8xf32>
    %755 = arith.addf %751, %754 : vector<1x8x8xf32>
    %c155 = arith.constant 155 : index
    %756 = memref.load %arg2[%c155] : memref<288xf32, #tpu.memory_space<smem>>
    %757 = vector.broadcast %756 : f32 to vector<1x8x8xf32>
    %758 = arith.mulf %757, %33 : vector<1x8x8xf32>
    %759 = arith.addf %755, %758 : vector<1x8x8xf32>
    %c156 = arith.constant 156 : index
    %760 = memref.load %arg2[%c156] : memref<288xf32, #tpu.memory_space<smem>>
    %761 = vector.broadcast %760 : f32 to vector<1x8x8xf32>
    %762 = arith.mulf %761, %35 : vector<1x8x8xf32>
    %763 = arith.addf %759, %762 : vector<1x8x8xf32>
    %c157 = arith.constant 157 : index
    %764 = memref.load %arg2[%c157] : memref<288xf32, #tpu.memory_space<smem>>
    %765 = vector.broadcast %764 : f32 to vector<1x8x8xf32>
    %766 = arith.mulf %765, %37 : vector<1x8x8xf32>
    %767 = arith.addf %763, %766 : vector<1x8x8xf32>
    %c158 = arith.constant 158 : index
    %768 = memref.load %arg2[%c158] : memref<288xf32, #tpu.memory_space<smem>>
    %769 = vector.broadcast %768 : f32 to vector<1x8x8xf32>
    %770 = arith.mulf %769, %39 : vector<1x8x8xf32>
    %771 = arith.addf %767, %770 : vector<1x8x8xf32>
    %c159 = arith.constant 159 : index
    %772 = memref.load %arg2[%c159] : memref<288xf32, #tpu.memory_space<smem>>
    %773 = vector.broadcast %772 : f32 to vector<1x8x8xf32>
    %774 = arith.mulf %773, %41 : vector<1x8x8xf32>
    %775 = arith.addf %771, %774 : vector<1x8x8xf32>
    %c160 = arith.constant 160 : index
    %776 = memref.load %arg2[%c160] : memref<288xf32, #tpu.memory_space<smem>>
    %777 = vector.broadcast %776 : f32 to vector<1x8x8xf32>
    %778 = arith.mulf %777, %43 : vector<1x8x8xf32>
    %779 = arith.addf %775, %778 : vector<1x8x8xf32>
    %c161 = arith.constant 161 : index
    %780 = memref.load %arg2[%c161] : memref<288xf32, #tpu.memory_space<smem>>
    %781 = vector.broadcast %780 : f32 to vector<1x8x8xf32>
    %782 = arith.mulf %781, %45 : vector<1x8x8xf32>
    %783 = arith.addf %779, %782 : vector<1x8x8xf32>
    %c162 = arith.constant 162 : index
    %784 = memref.load %arg2[%c162] : memref<288xf32, #tpu.memory_space<smem>>
    %785 = vector.broadcast %784 : f32 to vector<1x8x8xf32>
    %786 = arith.mulf %785, %47 : vector<1x8x8xf32>
    %787 = arith.addf %783, %786 : vector<1x8x8xf32>
    %c163 = arith.constant 163 : index
    %788 = memref.load %arg2[%c163] : memref<288xf32, #tpu.memory_space<smem>>
    %789 = vector.broadcast %788 : f32 to vector<1x8x8xf32>
    %790 = arith.mulf %789, %49 : vector<1x8x8xf32>
    %791 = arith.addf %787, %790 : vector<1x8x8xf32>
    %c164 = arith.constant 164 : index
    %792 = memref.load %arg2[%c164] : memref<288xf32, #tpu.memory_space<smem>>
    %793 = vector.broadcast %792 : f32 to vector<1x8x8xf32>
    %794 = arith.mulf %793, %51 : vector<1x8x8xf32>
    %795 = arith.addf %791, %794 : vector<1x8x8xf32>
    %c165 = arith.constant 165 : index
    %796 = memref.load %arg2[%c165] : memref<288xf32, #tpu.memory_space<smem>>
    %797 = vector.broadcast %796 : f32 to vector<1x8x8xf32>
    %798 = arith.mulf %797, %53 : vector<1x8x8xf32>
    %799 = arith.addf %795, %798 : vector<1x8x8xf32>
    %c166 = arith.constant 166 : index
    %800 = memref.load %arg2[%c166] : memref<288xf32, #tpu.memory_space<smem>>
    %801 = vector.broadcast %800 : f32 to vector<1x8x8xf32>
    %802 = arith.mulf %801, %55 : vector<1x8x8xf32>
    %803 = arith.addf %799, %802 : vector<1x8x8xf32>
    %c167 = arith.constant 167 : index
    %804 = memref.load %arg2[%c167] : memref<288xf32, #tpu.memory_space<smem>>
    %805 = vector.broadcast %804 : f32 to vector<1x8x8xf32>
    %806 = arith.mulf %805, %57 : vector<1x8x8xf32>
    %807 = arith.addf %803, %806 : vector<1x8x8xf32>
    %c168 = arith.constant 168 : index
    %808 = memref.load %arg2[%c168] : memref<288xf32, #tpu.memory_space<smem>>
    %809 = vector.broadcast %808 : f32 to vector<1x8x8xf32>
    %810 = arith.mulf %809, %59 : vector<1x8x8xf32>
    %811 = arith.addf %807, %810 : vector<1x8x8xf32>
    %c169 = arith.constant 169 : index
    %812 = memref.load %arg2[%c169] : memref<288xf32, #tpu.memory_space<smem>>
    %813 = vector.broadcast %812 : f32 to vector<1x8x8xf32>
    %814 = arith.mulf %813, %61 : vector<1x8x8xf32>
    %815 = arith.addf %811, %814 : vector<1x8x8xf32>
    %c170 = arith.constant 170 : index
    %816 = memref.load %arg2[%c170] : memref<288xf32, #tpu.memory_space<smem>>
    %817 = vector.broadcast %816 : f32 to vector<1x8x8xf32>
    %818 = arith.mulf %817, %63 : vector<1x8x8xf32>
    %819 = arith.addf %815, %818 : vector<1x8x8xf32>
    %c171 = arith.constant 171 : index
    %820 = memref.load %arg2[%c171] : memref<288xf32, #tpu.memory_space<smem>>
    %821 = vector.broadcast %820 : f32 to vector<1x8x8xf32>
    %822 = arith.mulf %821, %65 : vector<1x8x8xf32>
    %823 = arith.addf %819, %822 : vector<1x8x8xf32>
    %c172 = arith.constant 172 : index
    %824 = memref.load %arg2[%c172] : memref<288xf32, #tpu.memory_space<smem>>
    %825 = vector.broadcast %824 : f32 to vector<1x8x8xf32>
    %826 = arith.mulf %825, %67 : vector<1x8x8xf32>
    %827 = arith.addf %823, %826 : vector<1x8x8xf32>
    %c173 = arith.constant 173 : index
    %828 = memref.load %arg2[%c173] : memref<288xf32, #tpu.memory_space<smem>>
    %829 = vector.broadcast %828 : f32 to vector<1x8x8xf32>
    %830 = arith.mulf %829, %69 : vector<1x8x8xf32>
    %831 = arith.addf %827, %830 : vector<1x8x8xf32>
    %c174 = arith.constant 174 : index
    %832 = memref.load %arg2[%c174] : memref<288xf32, #tpu.memory_space<smem>>
    %833 = vector.broadcast %832 : f32 to vector<1x8x8xf32>
    %834 = arith.mulf %833, %71 : vector<1x8x8xf32>
    %835 = arith.addf %831, %834 : vector<1x8x8xf32>
    %c175 = arith.constant 175 : index
    %836 = memref.load %arg2[%c175] : memref<288xf32, #tpu.memory_space<smem>>
    %837 = vector.broadcast %836 : f32 to vector<1x8x8xf32>
    %838 = arith.mulf %837, %73 : vector<1x8x8xf32>
    %839 = arith.addf %835, %838 : vector<1x8x8xf32>
    %c176 = arith.constant 176 : index
    %840 = memref.load %arg2[%c176] : memref<288xf32, #tpu.memory_space<smem>>
    %841 = vector.broadcast %840 : f32 to vector<1x8x8xf32>
    %842 = arith.mulf %841, %75 : vector<1x8x8xf32>
    %843 = arith.addf %839, %842 : vector<1x8x8xf32>
    %c177 = arith.constant 177 : index
    %844 = memref.load %arg2[%c177] : memref<288xf32, #tpu.memory_space<smem>>
    %845 = vector.broadcast %844 : f32 to vector<1x8x8xf32>
    %846 = arith.mulf %845, %77 : vector<1x8x8xf32>
    %847 = arith.addf %843, %846 : vector<1x8x8xf32>
    %c178 = arith.constant 178 : index
    %848 = memref.load %arg2[%c178] : memref<288xf32, #tpu.memory_space<smem>>
    %849 = vector.broadcast %848 : f32 to vector<1x8x8xf32>
    %850 = arith.mulf %849, %79 : vector<1x8x8xf32>
    %851 = arith.addf %847, %850 : vector<1x8x8xf32>
    %c179 = arith.constant 179 : index
    %852 = memref.load %arg2[%c179] : memref<288xf32, #tpu.memory_space<smem>>
    %853 = vector.broadcast %852 : f32 to vector<1x8x8xf32>
    %854 = arith.mulf %853, %81 : vector<1x8x8xf32>
    %855 = arith.addf %851, %854 : vector<1x8x8xf32>
    %cst_206 = arith.constant 5.000000e-01 : f32
    %856 = vector.broadcast %cst_206 : f32 to vector<1x8x8xf32>
    %857 = arith.mulf %856, %855 : vector<1x8x8xf32>
    %858 = math.tanh %857 : vector<1x8x8xf32>
    %cst_207 = arith.constant 1.000000e+00 : f32
    %859 = vector.broadcast %cst_207 : f32 to vector<1x8x8xf32>
    %860 = arith.addf %858, %859 : vector<1x8x8xf32>
    %cst_208 = arith.constant 5.000000e-01 : f32
    %861 = vector.broadcast %cst_208 : f32 to vector<1x8x8xf32>
    %862 = arith.mulf %861, %860 : vector<1x8x8xf32>
    %863 = arith.mulf %855, %862 : vector<1x8x8xf32>
    %c0_209 = arith.constant 0 : index
    %c4_210 = arith.constant 4 : index
    %c0_211 = arith.constant 0 : index
    %c0_212 = arith.constant 0 : index
    %864 = vector.load %arg4[%c0_209, %c4_210, %c0_211, %c0_212] : memref<1x8x8x8xf32, #tpu.memory_space<vmem>>, vector<1x1x8x8xf32>
    %865 = vector.shape_cast %864 : vector<1x1x8x8xf32> to vector<1x8x8xf32>
    %866 = vector.shape_cast %863 : vector<1x8x8xf32> to vector<1x1x8x8xf32>
    tpu.vector_store %arg4[%c0_209, %c4_210, %c0_211, %c0_212], %866 {strides = array<i32>} : memref<1x8x8x8xf32, #tpu.memory_space<vmem>>, vector<1x1x8x8xf32>,
    %c5_213 = arith.constant 5 : index
    %867 = memref.load %arg3[%c5_213] : memref<8xf32, #tpu.memory_space<smem>>
    %868 = vector.broadcast %867 : f32 to vector<1x8x8xf32>
    %c180 = arith.constant 180 : index
    %869 = memref.load %arg2[%c180] : memref<288xf32, #tpu.memory_space<smem>>
    %870 = vector.broadcast %869 : f32 to vector<1x8x8xf32>
    %871 = arith.mulf %870, %11 : vector<1x8x8xf32>
    %872 = arith.addf %868, %871 : vector<1x8x8xf32>
    %c181 = arith.constant 181 : index
    %873 = memref.load %arg2[%c181] : memref<288xf32, #tpu.memory_space<smem>>
    %874 = vector.broadcast %873 : f32 to vector<1x8x8xf32>
    %875 = arith.mulf %874, %13 : vector<1x8x8xf32>
    %876 = arith.addf %872, %875 : vector<1x8x8xf32>
    %c182 = arith.constant 182 : index
    %877 = memref.load %arg2[%c182] : memref<288xf32, #tpu.memory_space<smem>>
    %878 = vector.broadcast %877 : f32 to vector<1x8x8xf32>
    %879 = arith.mulf %878, %15 : vector<1x8x8xf32>
    %880 = arith.addf %876, %879 : vector<1x8x8xf32>
    %c183 = arith.constant 183 : index
    %881 = memref.load %arg2[%c183] : memref<288xf32, #tpu.memory_space<smem>>
    %882 = vector.broadcast %881 : f32 to vector<1x8x8xf32>
    %883 = arith.mulf %882, %17 : vector<1x8x8xf32>
    %884 = arith.addf %880, %883 : vector<1x8x8xf32>
    %c184 = arith.constant 184 : index
    %885 = memref.load %arg2[%c184] : memref<288xf32, #tpu.memory_space<smem>>
    %886 = vector.broadcast %885 : f32 to vector<1x8x8xf32>
    %887 = arith.mulf %886, %19 : vector<1x8x8xf32>
    %888 = arith.addf %884, %887 : vector<1x8x8xf32>
    %c185 = arith.constant 185 : index
    %889 = memref.load %arg2[%c185] : memref<288xf32, #tpu.memory_space<smem>>
    %890 = vector.broadcast %889 : f32 to vector<1x8x8xf32>
    %891 = arith.mulf %890, %21 : vector<1x8x8xf32>
    %892 = arith.addf %888, %891 : vector<1x8x8xf32>
    %c186 = arith.constant 186 : index
    %893 = memref.load %arg2[%c186] : memref<288xf32, #tpu.memory_space<smem>>
    %894 = vector.broadcast %893 : f32 to vector<1x8x8xf32>
    %895 = arith.mulf %894, %23 : vector<1x8x8xf32>
    %896 = arith.addf %892, %895 : vector<1x8x8xf32>
    %c187 = arith.constant 187 : index
    %897 = memref.load %arg2[%c187] : memref<288xf32, #tpu.memory_space<smem>>
    %898 = vector.broadcast %897 : f32 to vector<1x8x8xf32>
    %899 = arith.mulf %898, %25 : vector<1x8x8xf32>
    %900 = arith.addf %896, %899 : vector<1x8x8xf32>
    %c188 = arith.constant 188 : index
    %901 = memref.load %arg2[%c188] : memref<288xf32, #tpu.memory_space<smem>>
    %902 = vector.broadcast %901 : f32 to vector<1x8x8xf32>
    %903 = arith.mulf %902, %27 : vector<1x8x8xf32>
    %904 = arith.addf %900, %903 : vector<1x8x8xf32>
    %c189 = arith.constant 189 : index
    %905 = memref.load %arg2[%c189] : memref<288xf32, #tpu.memory_space<smem>>
    %906 = vector.broadcast %905 : f32 to vector<1x8x8xf32>
    %907 = arith.mulf %906, %29 : vector<1x8x8xf32>
    %908 = arith.addf %904, %907 : vector<1x8x8xf32>
    %c190 = arith.constant 190 : index
    %909 = memref.load %arg2[%c190] : memref<288xf32, #tpu.memory_space<smem>>
    %910 = vector.broadcast %909 : f32 to vector<1x8x8xf32>
    %911 = arith.mulf %910, %31 : vector<1x8x8xf32>
    %912 = arith.addf %908, %911 : vector<1x8x8xf32>
    %c191 = arith.constant 191 : index
    %913 = memref.load %arg2[%c191] : memref<288xf32, #tpu.memory_space<smem>>
    %914 = vector.broadcast %913 : f32 to vector<1x8x8xf32>
    %915 = arith.mulf %914, %33 : vector<1x8x8xf32>
    %916 = arith.addf %912, %915 : vector<1x8x8xf32>
    %c192 = arith.constant 192 : index
    %917 = memref.load %arg2[%c192] : memref<288xf32, #tpu.memory_space<smem>>
    %918 = vector.broadcast %917 : f32 to vector<1x8x8xf32>
    %919 = arith.mulf %918, %35 : vector<1x8x8xf32>
    %920 = arith.addf %916, %919 : vector<1x8x8xf32>
    %c193 = arith.constant 193 : index
    %921 = memref.load %arg2[%c193] : memref<288xf32, #tpu.memory_space<smem>>
    %922 = vector.broadcast %921 : f32 to vector<1x8x8xf32>
    %923 = arith.mulf %922, %37 : vector<1x8x8xf32>
    %924 = arith.addf %920, %923 : vector<1x8x8xf32>
    %c194 = arith.constant 194 : index
    %925 = memref.load %arg2[%c194] : memref<288xf32, #tpu.memory_space<smem>>
    %926 = vector.broadcast %925 : f32 to vector<1x8x8xf32>
    %927 = arith.mulf %926, %39 : vector<1x8x8xf32>
    %928 = arith.addf %924, %927 : vector<1x8x8xf32>
    %c195 = arith.constant 195 : index
    %929 = memref.load %arg2[%c195] : memref<288xf32, #tpu.memory_space<smem>>
    %930 = vector.broadcast %929 : f32 to vector<1x8x8xf32>
    %931 = arith.mulf %930, %41 : vector<1x8x8xf32>
    %932 = arith.addf %928, %931 : vector<1x8x8xf32>
    %c196 = arith.constant 196 : index
    %933 = memref.load %arg2[%c196] : memref<288xf32, #tpu.memory_space<smem>>
    %934 = vector.broadcast %933 : f32 to vector<1x8x8xf32>
    %935 = arith.mulf %934, %43 : vector<1x8x8xf32>
    %936 = arith.addf %932, %935 : vector<1x8x8xf32>
    %c197 = arith.constant 197 : index
    %937 = memref.load %arg2[%c197] : memref<288xf32, #tpu.memory_space<smem>>
    %938 = vector.broadcast %937 : f32 to vector<1x8x8xf32>
    %939 = arith.mulf %938, %45 : vector<1x8x8xf32>
    %940 = arith.addf %936, %939 : vector<1x8x8xf32>
    %c198 = arith.constant 198 : index
    %941 = memref.load %arg2[%c198] : memref<288xf32, #tpu.memory_space<smem>>
    %942 = vector.broadcast %941 : f32 to vector<1x8x8xf32>
    %943 = arith.mulf %942, %47 : vector<1x8x8xf32>
    %944 = arith.addf %940, %943 : vector<1x8x8xf32>
    %c199 = arith.constant 199 : index
    %945 = memref.load %arg2[%c199] : memref<288xf32, #tpu.memory_space<smem>>
    %946 = vector.broadcast %945 : f32 to vector<1x8x8xf32>
    %947 = arith.mulf %946, %49 : vector<1x8x8xf32>
    %948 = arith.addf %944, %947 : vector<1x8x8xf32>
    %c200 = arith.constant 200 : index
    %949 = memref.load %arg2[%c200] : memref<288xf32, #tpu.memory_space<smem>>
    %950 = vector.broadcast %949 : f32 to vector<1x8x8xf32>
    %951 = arith.mulf %950, %51 : vector<1x8x8xf32>
    %952 = arith.addf %948, %951 : vector<1x8x8xf32>
    %c201 = arith.constant 201 : index
    %953 = memref.load %arg2[%c201] : memref<288xf32, #tpu.memory_space<smem>>
    %954 = vector.broadcast %953 : f32 to vector<1x8x8xf32>
    %955 = arith.mulf %954, %53 : vector<1x8x8xf32>
    %956 = arith.addf %952, %955 : vector<1x8x8xf32>
    %c202 = arith.constant 202 : index
    %957 = memref.load %arg2[%c202] : memref<288xf32, #tpu.memory_space<smem>>
    %958 = vector.broadcast %957 : f32 to vector<1x8x8xf32>
    %959 = arith.mulf %958, %55 : vector<1x8x8xf32>
    %960 = arith.addf %956, %959 : vector<1x8x8xf32>
    %c203 = arith.constant 203 : index
    %961 = memref.load %arg2[%c203] : memref<288xf32, #tpu.memory_space<smem>>
    %962 = vector.broadcast %961 : f32 to vector<1x8x8xf32>
    %963 = arith.mulf %962, %57 : vector<1x8x8xf32>
    %964 = arith.addf %960, %963 : vector<1x8x8xf32>
    %c204 = arith.constant 204 : index
    %965 = memref.load %arg2[%c204] : memref<288xf32, #tpu.memory_space<smem>>
    %966 = vector.broadcast %965 : f32 to vector<1x8x8xf32>
    %967 = arith.mulf %966, %59 : vector<1x8x8xf32>
    %968 = arith.addf %964, %967 : vector<1x8x8xf32>
    %c205 = arith.constant 205 : index
    %969 = memref.load %arg2[%c205] : memref<288xf32, #tpu.memory_space<smem>>
    %970 = vector.broadcast %969 : f32 to vector<1x8x8xf32>
    %971 = arith.mulf %970, %61 : vector<1x8x8xf32>
    %972 = arith.addf %968, %971 : vector<1x8x8xf32>
    %c206 = arith.constant 206 : index
    %973 = memref.load %arg2[%c206] : memref<288xf32, #tpu.memory_space<smem>>
    %974 = vector.broadcast %973 : f32 to vector<1x8x8xf32>
    %975 = arith.mulf %974, %63 : vector<1x8x8xf32>
    %976 = arith.addf %972, %975 : vector<1x8x8xf32>
    %c207 = arith.constant 207 : index
    %977 = memref.load %arg2[%c207] : memref<288xf32, #tpu.memory_space<smem>>
    %978 = vector.broadcast %977 : f32 to vector<1x8x8xf32>
    %979 = arith.mulf %978, %65 : vector<1x8x8xf32>
    %980 = arith.addf %976, %979 : vector<1x8x8xf32>
    %c208 = arith.constant 208 : index
    %981 = memref.load %arg2[%c208] : memref<288xf32, #tpu.memory_space<smem>>
    %982 = vector.broadcast %981 : f32 to vector<1x8x8xf32>
    %983 = arith.mulf %982, %67 : vector<1x8x8xf32>
    %984 = arith.addf %980, %983 : vector<1x8x8xf32>
    %c209 = arith.constant 209 : index
    %985 = memref.load %arg2[%c209] : memref<288xf32, #tpu.memory_space<smem>>
    %986 = vector.broadcast %985 : f32 to vector<1x8x8xf32>
    %987 = arith.mulf %986, %69 : vector<1x8x8xf32>
    %988 = arith.addf %984, %987 : vector<1x8x8xf32>
    %c210 = arith.constant 210 : index
    %989 = memref.load %arg2[%c210] : memref<288xf32, #tpu.memory_space<smem>>
    %990 = vector.broadcast %989 : f32 to vector<1x8x8xf32>
    %991 = arith.mulf %990, %71 : vector<1x8x8xf32>
    %992 = arith.addf %988, %991 : vector<1x8x8xf32>
    %c211 = arith.constant 211 : index
    %993 = memref.load %arg2[%c211] : memref<288xf32, #tpu.memory_space<smem>>
    %994 = vector.broadcast %993 : f32 to vector<1x8x8xf32>
    %995 = arith.mulf %994, %73 : vector<1x8x8xf32>
    %996 = arith.addf %992, %995 : vector<1x8x8xf32>
    %c212 = arith.constant 212 : index
    %997 = memref.load %arg2[%c212] : memref<288xf32, #tpu.memory_space<smem>>
    %998 = vector.broadcast %997 : f32 to vector<1x8x8xf32>
    %999 = arith.mulf %998, %75 : vector<1x8x8xf32>
    %1000 = arith.addf %996, %999 : vector<1x8x8xf32>
    %c213 = arith.constant 213 : index
    %1001 = memref.load %arg2[%c213] : memref<288xf32, #tpu.memory_space<smem>>
    %1002 = vector.broadcast %1001 : f32 to vector<1x8x8xf32>
    %1003 = arith.mulf %1002, %77 : vector<1x8x8xf32>
    %1004 = arith.addf %1000, %1003 : vector<1x8x8xf32>
    %c214 = arith.constant 214 : index
    %1005 = memref.load %arg2[%c214] : memref<288xf32, #tpu.memory_space<smem>>
    %1006 = vector.broadcast %1005 : f32 to vector<1x8x8xf32>
    %1007 = arith.mulf %1006, %79 : vector<1x8x8xf32>
    %1008 = arith.addf %1004, %1007 : vector<1x8x8xf32>
    %c215 = arith.constant 215 : index
    %1009 = memref.load %arg2[%c215] : memref<288xf32, #tpu.memory_space<smem>>
    %1010 = vector.broadcast %1009 : f32 to vector<1x8x8xf32>
    %1011 = arith.mulf %1010, %81 : vector<1x8x8xf32>
    %1012 = arith.addf %1008, %1011 : vector<1x8x8xf32>
    %cst_214 = arith.constant 5.000000e-01 : f32
    %1013 = vector.broadcast %cst_214 : f32 to vector<1x8x8xf32>
    %1014 = arith.mulf %1013, %1012 : vector<1x8x8xf32>
    %1015 = math.tanh %1014 : vector<1x8x8xf32>
    %cst_215 = arith.constant 1.000000e+00 : f32
    %1016 = vector.broadcast %cst_215 : f32 to vector<1x8x8xf32>
    %1017 = arith.addf %1015, %1016 : vector<1x8x8xf32>
    %cst_216 = arith.constant 5.000000e-01 : f32
    %1018 = vector.broadcast %cst_216 : f32 to vector<1x8x8xf32>
    %1019 = arith.mulf %1018, %1017 : vector<1x8x8xf32>
    %1020 = arith.mulf %1012, %1019 : vector<1x8x8xf32>
    %c0_217 = arith.constant 0 : index
    %c5_218 = arith.constant 5 : index
    %c0_219 = arith.constant 0 : index
    %c0_220 = arith.constant 0 : index
    %1021 = vector.load %arg4[%c0_217, %c5_218, %c0_219, %c0_220] : memref<1x8x8x8xf32, #tpu.memory_space<vmem>>, vector<1x1x8x8xf32>
    %1022 = vector.shape_cast %1021 : vector<1x1x8x8xf32> to vector<1x8x8xf32>
    %1023 = vector.shape_cast %1020 : vector<1x8x8xf32> to vector<1x1x8x8xf32>
    tpu.vector_store %arg4[%c0_217, %c5_218, %c0_219, %c0_220], %1023 {strides = array<i32>} : memref<1x8x8x8xf32, #tpu.memory_space<vmem>>, vector<1x1x8x8xf32>,
    %c6_221 = arith.constant 6 : index
    %1024 = memref.load %arg3[%c6_221] : memref<8xf32, #tpu.memory_space<smem>>
    %1025 = vector.broadcast %1024 : f32 to vector<1x8x8xf32>
    %c216 = arith.constant 216 : index
    %1026 = memref.load %arg2[%c216] : memref<288xf32, #tpu.memory_space<smem>>
    %1027 = vector.broadcast %1026 : f32 to vector<1x8x8xf32>
    %1028 = arith.mulf %1027, %11 : vector<1x8x8xf32>
    %1029 = arith.addf %1025, %1028 : vector<1x8x8xf32>
    %c217 = arith.constant 217 : index
    %1030 = memref.load %arg2[%c217] : memref<288xf32, #tpu.memory_space<smem>>
    %1031 = vector.broadcast %1030 : f32 to vector<1x8x8xf32>
    %1032 = arith.mulf %1031, %13 : vector<1x8x8xf32>
    %1033 = arith.addf %1029, %1032 : vector<1x8x8xf32>
    %c218 = arith.constant 218 : index
    %1034 = memref.load %arg2[%c218] : memref<288xf32, #tpu.memory_space<smem>>
    %1035 = vector.broadcast %1034 : f32 to vector<1x8x8xf32>
    %1036 = arith.mulf %1035, %15 : vector<1x8x8xf32>
    %1037 = arith.addf %1033, %1036 : vector<1x8x8xf32>
    %c219 = arith.constant 219 : index
    %1038 = memref.load %arg2[%c219] : memref<288xf32, #tpu.memory_space<smem>>
    %1039 = vector.broadcast %1038 : f32 to vector<1x8x8xf32>
    %1040 = arith.mulf %1039, %17 : vector<1x8x8xf32>
    %1041 = arith.addf %1037, %1040 : vector<1x8x8xf32>
    %c220 = arith.constant 220 : index
    %1042 = memref.load %arg2[%c220] : memref<288xf32, #tpu.memory_space<smem>>
    %1043 = vector.broadcast %1042 : f32 to vector<1x8x8xf32>
    %1044 = arith.mulf %1043, %19 : vector<1x8x8xf32>
    %1045 = arith.addf %1041, %1044 : vector<1x8x8xf32>
    %c221 = arith.constant 221 : index
    %1046 = memref.load %arg2[%c221] : memref<288xf32, #tpu.memory_space<smem>>
    %1047 = vector.broadcast %1046 : f32 to vector<1x8x8xf32>
    %1048 = arith.mulf %1047, %21 : vector<1x8x8xf32>
    %1049 = arith.addf %1045, %1048 : vector<1x8x8xf32>
    %c222 = arith.constant 222 : index
    %1050 = memref.load %arg2[%c222] : memref<288xf32, #tpu.memory_space<smem>>
    %1051 = vector.broadcast %1050 : f32 to vector<1x8x8xf32>
    %1052 = arith.mulf %1051, %23 : vector<1x8x8xf32>
    %1053 = arith.addf %1049, %1052 : vector<1x8x8xf32>
    %c223 = arith.constant 223 : index
    %1054 = memref.load %arg2[%c223] : memref<288xf32, #tpu.memory_space<smem>>
    %1055 = vector.broadcast %1054 : f32 to vector<1x8x8xf32>
    %1056 = arith.mulf %1055, %25 : vector<1x8x8xf32>
    %1057 = arith.addf %1053, %1056 : vector<1x8x8xf32>
    %c224 = arith.constant 224 : index
    %1058 = memref.load %arg2[%c224] : memref<288xf32, #tpu.memory_space<smem>>
    %1059 = vector.broadcast %1058 : f32 to vector<1x8x8xf32>
    %1060 = arith.mulf %1059, %27 : vector<1x8x8xf32>
    %1061 = arith.addf %1057, %1060 : vector<1x8x8xf32>
    %c225 = arith.constant 225 : index
    %1062 = memref.load %arg2[%c225] : memref<288xf32, #tpu.memory_space<smem>>
    %1063 = vector.broadcast %1062 : f32 to vector<1x8x8xf32>
    %1064 = arith.mulf %1063, %29 : vector<1x8x8xf32>
    %1065 = arith.addf %1061, %1064 : vector<1x8x8xf32>
    %c226 = arith.constant 226 : index
    %1066 = memref.load %arg2[%c226] : memref<288xf32, #tpu.memory_space<smem>>
    %1067 = vector.broadcast %1066 : f32 to vector<1x8x8xf32>
    %1068 = arith.mulf %1067, %31 : vector<1x8x8xf32>
    %1069 = arith.addf %1065, %1068 : vector<1x8x8xf32>
    %c227 = arith.constant 227 : index
    %1070 = memref.load %arg2[%c227] : memref<288xf32, #tpu.memory_space<smem>>
    %1071 = vector.broadcast %1070 : f32 to vector<1x8x8xf32>
    %1072 = arith.mulf %1071, %33 : vector<1x8x8xf32>
    %1073 = arith.addf %1069, %1072 : vector<1x8x8xf32>
    %c228 = arith.constant 228 : index
    %1074 = memref.load %arg2[%c228] : memref<288xf32, #tpu.memory_space<smem>>
    %1075 = vector.broadcast %1074 : f32 to vector<1x8x8xf32>
    %1076 = arith.mulf %1075, %35 : vector<1x8x8xf32>
    %1077 = arith.addf %1073, %1076 : vector<1x8x8xf32>
    %c229 = arith.constant 229 : index
    %1078 = memref.load %arg2[%c229] : memref<288xf32, #tpu.memory_space<smem>>
    %1079 = vector.broadcast %1078 : f32 to vector<1x8x8xf32>
    %1080 = arith.mulf %1079, %37 : vector<1x8x8xf32>
    %1081 = arith.addf %1077, %1080 : vector<1x8x8xf32>
    %c230 = arith.constant 230 : index
    %1082 = memref.load %arg2[%c230] : memref<288xf32, #tpu.memory_space<smem>>
    %1083 = vector.broadcast %1082 : f32 to vector<1x8x8xf32>
    %1084 = arith.mulf %1083, %39 : vector<1x8x8xf32>
    %1085 = arith.addf %1081, %1084 : vector<1x8x8xf32>
    %c231 = arith.constant 231 : index
    %1086 = memref.load %arg2[%c231] : memref<288xf32, #tpu.memory_space<smem>>
    %1087 = vector.broadcast %1086 : f32 to vector<1x8x8xf32>
    %1088 = arith.mulf %1087, %41 : vector<1x8x8xf32>
    %1089 = arith.addf %1085, %1088 : vector<1x8x8xf32>
    %c232 = arith.constant 232 : index
    %1090 = memref.load %arg2[%c232] : memref<288xf32, #tpu.memory_space<smem>>
    %1091 = vector.broadcast %1090 : f32 to vector<1x8x8xf32>
    %1092 = arith.mulf %1091, %43 : vector<1x8x8xf32>
    %1093 = arith.addf %1089, %1092 : vector<1x8x8xf32>
    %c233 = arith.constant 233 : index
    %1094 = memref.load %arg2[%c233] : memref<288xf32, #tpu.memory_space<smem>>
    %1095 = vector.broadcast %1094 : f32 to vector<1x8x8xf32>
    %1096 = arith.mulf %1095, %45 : vector<1x8x8xf32>
    %1097 = arith.addf %1093, %1096 : vector<1x8x8xf32>
    %c234 = arith.constant 234 : index
    %1098 = memref.load %arg2[%c234] : memref<288xf32, #tpu.memory_space<smem>>
    %1099 = vector.broadcast %1098 : f32 to vector<1x8x8xf32>
    %1100 = arith.mulf %1099, %47 : vector<1x8x8xf32>
    %1101 = arith.addf %1097, %1100 : vector<1x8x8xf32>
    %c235 = arith.constant 235 : index
    %1102 = memref.load %arg2[%c235] : memref<288xf32, #tpu.memory_space<smem>>
    %1103 = vector.broadcast %1102 : f32 to vector<1x8x8xf32>
    %1104 = arith.mulf %1103, %49 : vector<1x8x8xf32>
    %1105 = arith.addf %1101, %1104 : vector<1x8x8xf32>
    %c236 = arith.constant 236 : index
    %1106 = memref.load %arg2[%c236] : memref<288xf32, #tpu.memory_space<smem>>
    %1107 = vector.broadcast %1106 : f32 to vector<1x8x8xf32>
    %1108 = arith.mulf %1107, %51 : vector<1x8x8xf32>
    %1109 = arith.addf %1105, %1108 : vector<1x8x8xf32>
    %c237 = arith.constant 237 : index
    %1110 = memref.load %arg2[%c237] : memref<288xf32, #tpu.memory_space<smem>>
    %1111 = vector.broadcast %1110 : f32 to vector<1x8x8xf32>
    %1112 = arith.mulf %1111, %53 : vector<1x8x8xf32>
    %1113 = arith.addf %1109, %1112 : vector<1x8x8xf32>
    %c238 = arith.constant 238 : index
    %1114 = memref.load %arg2[%c238] : memref<288xf32, #tpu.memory_space<smem>>
    %1115 = vector.broadcast %1114 : f32 to vector<1x8x8xf32>
    %1116 = arith.mulf %1115, %55 : vector<1x8x8xf32>
    %1117 = arith.addf %1113, %1116 : vector<1x8x8xf32>
    %c239 = arith.constant 239 : index
    %1118 = memref.load %arg2[%c239] : memref<288xf32, #tpu.memory_space<smem>>
    %1119 = vector.broadcast %1118 : f32 to vector<1x8x8xf32>
    %1120 = arith.mulf %1119, %57 : vector<1x8x8xf32>
    %1121 = arith.addf %1117, %1120 : vector<1x8x8xf32>
    %c240 = arith.constant 240 : index
    %1122 = memref.load %arg2[%c240] : memref<288xf32, #tpu.memory_space<smem>>
    %1123 = vector.broadcast %1122 : f32 to vector<1x8x8xf32>
    %1124 = arith.mulf %1123, %59 : vector<1x8x8xf32>
    %1125 = arith.addf %1121, %1124 : vector<1x8x8xf32>
    %c241 = arith.constant 241 : index
    %1126 = memref.load %arg2[%c241] : memref<288xf32, #tpu.memory_space<smem>>
    %1127 = vector.broadcast %1126 : f32 to vector<1x8x8xf32>
    %1128 = arith.mulf %1127, %61 : vector<1x8x8xf32>
    %1129 = arith.addf %1125, %1128 : vector<1x8x8xf32>
    %c242 = arith.constant 242 : index
    %1130 = memref.load %arg2[%c242] : memref<288xf32, #tpu.memory_space<smem>>
    %1131 = vector.broadcast %1130 : f32 to vector<1x8x8xf32>
    %1132 = arith.mulf %1131, %63 : vector<1x8x8xf32>
    %1133 = arith.addf %1129, %1132 : vector<1x8x8xf32>
    %c243 = arith.constant 243 : index
    %1134 = memref.load %arg2[%c243] : memref<288xf32, #tpu.memory_space<smem>>
    %1135 = vector.broadcast %1134 : f32 to vector<1x8x8xf32>
    %1136 = arith.mulf %1135, %65 : vector<1x8x8xf32>
    %1137 = arith.addf %1133, %1136 : vector<1x8x8xf32>
    %c244 = arith.constant 244 : index
    %1138 = memref.load %arg2[%c244] : memref<288xf32, #tpu.memory_space<smem>>
    %1139 = vector.broadcast %1138 : f32 to vector<1x8x8xf32>
    %1140 = arith.mulf %1139, %67 : vector<1x8x8xf32>
    %1141 = arith.addf %1137, %1140 : vector<1x8x8xf32>
    %c245 = arith.constant 245 : index
    %1142 = memref.load %arg2[%c245] : memref<288xf32, #tpu.memory_space<smem>>
    %1143 = vector.broadcast %1142 : f32 to vector<1x8x8xf32>
    %1144 = arith.mulf %1143, %69 : vector<1x8x8xf32>
    %1145 = arith.addf %1141, %1144 : vector<1x8x8xf32>
    %c246 = arith.constant 246 : index
    %1146 = memref.load %arg2[%c246] : memref<288xf32, #tpu.memory_space<smem>>
    %1147 = vector.broadcast %1146 : f32 to vector<1x8x8xf32>
    %1148 = arith.mulf %1147, %71 : vector<1x8x8xf32>
    %1149 = arith.addf %1145, %1148 : vector<1x8x8xf32>
    %c247 = arith.constant 247 : index
    %1150 = memref.load %arg2[%c247] : memref<288xf32, #tpu.memory_space<smem>>
    %1151 = vector.broadcast %1150 : f32 to vector<1x8x8xf32>
    %1152 = arith.mulf %1151, %73 : vector<1x8x8xf32>
    %1153 = arith.addf %1149, %1152 : vector<1x8x8xf32>
    %c248 = arith.constant 248 : index
    %1154 = memref.load %arg2[%c248] : memref<288xf32, #tpu.memory_space<smem>>
    %1155 = vector.broadcast %1154 : f32 to vector<1x8x8xf32>
    %1156 = arith.mulf %1155, %75 : vector<1x8x8xf32>
    %1157 = arith.addf %1153, %1156 : vector<1x8x8xf32>
    %c249 = arith.constant 249 : index
    %1158 = memref.load %arg2[%c249] : memref<288xf32, #tpu.memory_space<smem>>
    %1159 = vector.broadcast %1158 : f32 to vector<1x8x8xf32>
    %1160 = arith.mulf %1159, %77 : vector<1x8x8xf32>
    %1161 = arith.addf %1157, %1160 : vector<1x8x8xf32>
    %c250 = arith.constant 250 : index
    %1162 = memref.load %arg2[%c250] : memref<288xf32, #tpu.memory_space<smem>>
    %1163 = vector.broadcast %1162 : f32 to vector<1x8x8xf32>
    %1164 = arith.mulf %1163, %79 : vector<1x8x8xf32>
    %1165 = arith.addf %1161, %1164 : vector<1x8x8xf32>
    %c251 = arith.constant 251 : index
    %1166 = memref.load %arg2[%c251] : memref<288xf32, #tpu.memory_space<smem>>
    %1167 = vector.broadcast %1166 : f32 to vector<1x8x8xf32>
    %1168 = arith.mulf %1167, %81 : vector<1x8x8xf32>
    %1169 = arith.addf %1165, %1168 : vector<1x8x8xf32>
    %cst_222 = arith.constant 5.000000e-01 : f32
    %1170 = vector.broadcast %cst_222 : f32 to vector<1x8x8xf32>
    %1171 = arith.mulf %1170, %1169 : vector<1x8x8xf32>
    %1172 = math.tanh %1171 : vector<1x8x8xf32>
    %cst_223 = arith.constant 1.000000e+00 : f32
    %1173 = vector.broadcast %cst_223 : f32 to vector<1x8x8xf32>
    %1174 = arith.addf %1172, %1173 : vector<1x8x8xf32>
    %cst_224 = arith.constant 5.000000e-01 : f32
    %1175 = vector.broadcast %cst_224 : f32 to vector<1x8x8xf32>
    %1176 = arith.mulf %1175, %1174 : vector<1x8x8xf32>
    %1177 = arith.mulf %1169, %1176 : vector<1x8x8xf32>
    %c0_225 = arith.constant 0 : index
    %c6_226 = arith.constant 6 : index
    %c0_227 = arith.constant 0 : index
    %c0_228 = arith.constant 0 : index
    %1178 = vector.load %arg4[%c0_225, %c6_226, %c0_227, %c0_228] : memref<1x8x8x8xf32, #tpu.memory_space<vmem>>, vector<1x1x8x8xf32>
    %1179 = vector.shape_cast %1178 : vector<1x1x8x8xf32> to vector<1x8x8xf32>
    %1180 = vector.shape_cast %1177 : vector<1x8x8xf32> to vector<1x1x8x8xf32>
    tpu.vector_store %arg4[%c0_225, %c6_226, %c0_227, %c0_228], %1180 {strides = array<i32>} : memref<1x8x8x8xf32, #tpu.memory_space<vmem>>, vector<1x1x8x8xf32>,
    %c7_229 = arith.constant 7 : index
    %1181 = memref.load %arg3[%c7_229] : memref<8xf32, #tpu.memory_space<smem>>
    %1182 = vector.broadcast %1181 : f32 to vector<1x8x8xf32>
    %c252 = arith.constant 252 : index
    %1183 = memref.load %arg2[%c252] : memref<288xf32, #tpu.memory_space<smem>>
    %1184 = vector.broadcast %1183 : f32 to vector<1x8x8xf32>
    %1185 = arith.mulf %1184, %11 : vector<1x8x8xf32>
    %1186 = arith.addf %1182, %1185 : vector<1x8x8xf32>
    %c253 = arith.constant 253 : index
    %1187 = memref.load %arg2[%c253] : memref<288xf32, #tpu.memory_space<smem>>
    %1188 = vector.broadcast %1187 : f32 to vector<1x8x8xf32>
    %1189 = arith.mulf %1188, %13 : vector<1x8x8xf32>
    %1190 = arith.addf %1186, %1189 : vector<1x8x8xf32>
    %c254 = arith.constant 254 : index
    %1191 = memref.load %arg2[%c254] : memref<288xf32, #tpu.memory_space<smem>>
    %1192 = vector.broadcast %1191 : f32 to vector<1x8x8xf32>
    %1193 = arith.mulf %1192, %15 : vector<1x8x8xf32>
    %1194 = arith.addf %1190, %1193 : vector<1x8x8xf32>
    %c255 = arith.constant 255 : index
    %1195 = memref.load %arg2[%c255] : memref<288xf32, #tpu.memory_space<smem>>
    %1196 = vector.broadcast %1195 : f32 to vector<1x8x8xf32>
    %1197 = arith.mulf %1196, %17 : vector<1x8x8xf32>
    %1198 = arith.addf %1194, %1197 : vector<1x8x8xf32>
    %c256 = arith.constant 256 : index
    %1199 = memref.load %arg2[%c256] : memref<288xf32, #tpu.memory_space<smem>>
    %1200 = vector.broadcast %1199 : f32 to vector<1x8x8xf32>
    %1201 = arith.mulf %1200, %19 : vector<1x8x8xf32>
    %1202 = arith.addf %1198, %1201 : vector<1x8x8xf32>
    %c257 = arith.constant 257 : index
    %1203 = memref.load %arg2[%c257] : memref<288xf32, #tpu.memory_space<smem>>
    %1204 = vector.broadcast %1203 : f32 to vector<1x8x8xf32>
    %1205 = arith.mulf %1204, %21 : vector<1x8x8xf32>
    %1206 = arith.addf %1202, %1205 : vector<1x8x8xf32>
    %c258 = arith.constant 258 : index
    %1207 = memref.load %arg2[%c258] : memref<288xf32, #tpu.memory_space<smem>>
    %1208 = vector.broadcast %1207 : f32 to vector<1x8x8xf32>
    %1209 = arith.mulf %1208, %23 : vector<1x8x8xf32>
    %1210 = arith.addf %1206, %1209 : vector<1x8x8xf32>
    %c259 = arith.constant 259 : index
    %1211 = memref.load %arg2[%c259] : memref<288xf32, #tpu.memory_space<smem>>
    %1212 = vector.broadcast %1211 : f32 to vector<1x8x8xf32>
    %1213 = arith.mulf %1212, %25 : vector<1x8x8xf32>
    %1214 = arith.addf %1210, %1213 : vector<1x8x8xf32>
    %c260 = arith.constant 260 : index
    %1215 = memref.load %arg2[%c260] : memref<288xf32, #tpu.memory_space<smem>>
    %1216 = vector.broadcast %1215 : f32 to vector<1x8x8xf32>
    %1217 = arith.mulf %1216, %27 : vector<1x8x8xf32>
    %1218 = arith.addf %1214, %1217 : vector<1x8x8xf32>
    %c261 = arith.constant 261 : index
    %1219 = memref.load %arg2[%c261] : memref<288xf32, #tpu.memory_space<smem>>
    %1220 = vector.broadcast %1219 : f32 to vector<1x8x8xf32>
    %1221 = arith.mulf %1220, %29 : vector<1x8x8xf32>
    %1222 = arith.addf %1218, %1221 : vector<1x8x8xf32>
    %c262 = arith.constant 262 : index
    %1223 = memref.load %arg2[%c262] : memref<288xf32, #tpu.memory_space<smem>>
    %1224 = vector.broadcast %1223 : f32 to vector<1x8x8xf32>
    %1225 = arith.mulf %1224, %31 : vector<1x8x8xf32>
    %1226 = arith.addf %1222, %1225 : vector<1x8x8xf32>
    %c263 = arith.constant 263 : index
    %1227 = memref.load %arg2[%c263] : memref<288xf32, #tpu.memory_space<smem>>
    %1228 = vector.broadcast %1227 : f32 to vector<1x8x8xf32>
    %1229 = arith.mulf %1228, %33 : vector<1x8x8xf32>
    %1230 = arith.addf %1226, %1229 : vector<1x8x8xf32>
    %c264 = arith.constant 264 : index
    %1231 = memref.load %arg2[%c264] : memref<288xf32, #tpu.memory_space<smem>>
    %1232 = vector.broadcast %1231 : f32 to vector<1x8x8xf32>
    %1233 = arith.mulf %1232, %35 : vector<1x8x8xf32>
    %1234 = arith.addf %1230, %1233 : vector<1x8x8xf32>
    %c265 = arith.constant 265 : index
    %1235 = memref.load %arg2[%c265] : memref<288xf32, #tpu.memory_space<smem>>
    %1236 = vector.broadcast %1235 : f32 to vector<1x8x8xf32>
    %1237 = arith.mulf %1236, %37 : vector<1x8x8xf32>
    %1238 = arith.addf %1234, %1237 : vector<1x8x8xf32>
    %c266 = arith.constant 266 : index
    %1239 = memref.load %arg2[%c266] : memref<288xf32, #tpu.memory_space<smem>>
    %1240 = vector.broadcast %1239 : f32 to vector<1x8x8xf32>
    %1241 = arith.mulf %1240, %39 : vector<1x8x8xf32>
    %1242 = arith.addf %1238, %1241 : vector<1x8x8xf32>
    %c267 = arith.constant 267 : index
    %1243 = memref.load %arg2[%c267] : memref<288xf32, #tpu.memory_space<smem>>
    %1244 = vector.broadcast %1243 : f32 to vector<1x8x8xf32>
    %1245 = arith.mulf %1244, %41 : vector<1x8x8xf32>
    %1246 = arith.addf %1242, %1245 : vector<1x8x8xf32>
    %c268 = arith.constant 268 : index
    %1247 = memref.load %arg2[%c268] : memref<288xf32, #tpu.memory_space<smem>>
    %1248 = vector.broadcast %1247 : f32 to vector<1x8x8xf32>
    %1249 = arith.mulf %1248, %43 : vector<1x8x8xf32>
    %1250 = arith.addf %1246, %1249 : vector<1x8x8xf32>
    %c269 = arith.constant 269 : index
    %1251 = memref.load %arg2[%c269] : memref<288xf32, #tpu.memory_space<smem>>
    %1252 = vector.broadcast %1251 : f32 to vector<1x8x8xf32>
    %1253 = arith.mulf %1252, %45 : vector<1x8x8xf32>
    %1254 = arith.addf %1250, %1253 : vector<1x8x8xf32>
    %c270 = arith.constant 270 : index
    %1255 = memref.load %arg2[%c270] : memref<288xf32, #tpu.memory_space<smem>>
    %1256 = vector.broadcast %1255 : f32 to vector<1x8x8xf32>
    %1257 = arith.mulf %1256, %47 : vector<1x8x8xf32>
    %1258 = arith.addf %1254, %1257 : vector<1x8x8xf32>
    %c271 = arith.constant 271 : index
    %1259 = memref.load %arg2[%c271] : memref<288xf32, #tpu.memory_space<smem>>
    %1260 = vector.broadcast %1259 : f32 to vector<1x8x8xf32>
    %1261 = arith.mulf %1260, %49 : vector<1x8x8xf32>
    %1262 = arith.addf %1258, %1261 : vector<1x8x8xf32>
    %c272 = arith.constant 272 : index
    %1263 = memref.load %arg2[%c272] : memref<288xf32, #tpu.memory_space<smem>>
    %1264 = vector.broadcast %1263 : f32 to vector<1x8x8xf32>
    %1265 = arith.mulf %1264, %51 : vector<1x8x8xf32>
    %1266 = arith.addf %1262, %1265 : vector<1x8x8xf32>
    %c273 = arith.constant 273 : index
    %1267 = memref.load %arg2[%c273] : memref<288xf32, #tpu.memory_space<smem>>
    %1268 = vector.broadcast %1267 : f32 to vector<1x8x8xf32>
    %1269 = arith.mulf %1268, %53 : vector<1x8x8xf32>
    %1270 = arith.addf %1266, %1269 : vector<1x8x8xf32>
    %c274 = arith.constant 274 : index
    %1271 = memref.load %arg2[%c274] : memref<288xf32, #tpu.memory_space<smem>>
    %1272 = vector.broadcast %1271 : f32 to vector<1x8x8xf32>
    %1273 = arith.mulf %1272, %55 : vector<1x8x8xf32>
    %1274 = arith.addf %1270, %1273 : vector<1x8x8xf32>
    %c275 = arith.constant 275 : index
    %1275 = memref.load %arg2[%c275] : memref<288xf32, #tpu.memory_space<smem>>
    %1276 = vector.broadcast %1275 : f32 to vector<1x8x8xf32>
    %1277 = arith.mulf %1276, %57 : vector<1x8x8xf32>
    %1278 = arith.addf %1274, %1277 : vector<1x8x8xf32>
    %c276 = arith.constant 276 : index
    %1279 = memref.load %arg2[%c276] : memref<288xf32, #tpu.memory_space<smem>>
    %1280 = vector.broadcast %1279 : f32 to vector<1x8x8xf32>
    %1281 = arith.mulf %1280, %59 : vector<1x8x8xf32>
    %1282 = arith.addf %1278, %1281 : vector<1x8x8xf32>
    %c277 = arith.constant 277 : index
    %1283 = memref.load %arg2[%c277] : memref<288xf32, #tpu.memory_space<smem>>
    %1284 = vector.broadcast %1283 : f32 to vector<1x8x8xf32>
    %1285 = arith.mulf %1284, %61 : vector<1x8x8xf32>
    %1286 = arith.addf %1282, %1285 : vector<1x8x8xf32>
    %c278 = arith.constant 278 : index
    %1287 = memref.load %arg2[%c278] : memref<288xf32, #tpu.memory_space<smem>>
    %1288 = vector.broadcast %1287 : f32 to vector<1x8x8xf32>
    %1289 = arith.mulf %1288, %63 : vector<1x8x8xf32>
    %1290 = arith.addf %1286, %1289 : vector<1x8x8xf32>
    %c279 = arith.constant 279 : index
    %1291 = memref.load %arg2[%c279] : memref<288xf32, #tpu.memory_space<smem>>
    %1292 = vector.broadcast %1291 : f32 to vector<1x8x8xf32>
    %1293 = arith.mulf %1292, %65 : vector<1x8x8xf32>
    %1294 = arith.addf %1290, %1293 : vector<1x8x8xf32>
    %c280 = arith.constant 280 : index
    %1295 = memref.load %arg2[%c280] : memref<288xf32, #tpu.memory_space<smem>>
    %1296 = vector.broadcast %1295 : f32 to vector<1x8x8xf32>
    %1297 = arith.mulf %1296, %67 : vector<1x8x8xf32>
    %1298 = arith.addf %1294, %1297 : vector<1x8x8xf32>
    %c281 = arith.constant 281 : index
    %1299 = memref.load %arg2[%c281] : memref<288xf32, #tpu.memory_space<smem>>
    %1300 = vector.broadcast %1299 : f32 to vector<1x8x8xf32>
    %1301 = arith.mulf %1300, %69 : vector<1x8x8xf32>
    %1302 = arith.addf %1298, %1301 : vector<1x8x8xf32>
    %c282 = arith.constant 282 : index
    %1303 = memref.load %arg2[%c282] : memref<288xf32, #tpu.memory_space<smem>>
    %1304 = vector.broadcast %1303 : f32 to vector<1x8x8xf32>
    %1305 = arith.mulf %1304, %71 : vector<1x8x8xf32>
    %1306 = arith.addf %1302, %1305 : vector<1x8x8xf32>
    %c283 = arith.constant 283 : index
    %1307 = memref.load %arg2[%c283] : memref<288xf32, #tpu.memory_space<smem>>
    %1308 = vector.broadcast %1307 : f32 to vector<1x8x8xf32>
    %1309 = arith.mulf %1308, %73 : vector<1x8x8xf32>
    %1310 = arith.addf %1306, %1309 : vector<1x8x8xf32>
    %c284 = arith.constant 284 : index
    %1311 = memref.load %arg2[%c284] : memref<288xf32, #tpu.memory_space<smem>>
    %1312 = vector.broadcast %1311 : f32 to vector<1x8x8xf32>
    %1313 = arith.mulf %1312, %75 : vector<1x8x8xf32>
    %1314 = arith.addf %1310, %1313 : vector<1x8x8xf32>
    %c285 = arith.constant 285 : index
    %1315 = memref.load %arg2[%c285] : memref<288xf32, #tpu.memory_space<smem>>
    %1316 = vector.broadcast %1315 : f32 to vector<1x8x8xf32>
    %1317 = arith.mulf %1316, %77 : vector<1x8x8xf32>
    %1318 = arith.addf %1314, %1317 : vector<1x8x8xf32>
    %c286 = arith.constant 286 : index
    %1319 = memref.load %arg2[%c286] : memref<288xf32, #tpu.memory_space<smem>>
    %1320 = vector.broadcast %1319 : f32 to vector<1x8x8xf32>
    %1321 = arith.mulf %1320, %79 : vector<1x8x8xf32>
    %1322 = arith.addf %1318, %1321 : vector<1x8x8xf32>
    %c287 = arith.constant 287 : index
    %1323 = memref.load %arg2[%c287] : memref<288xf32, #tpu.memory_space<smem>>
    %1324 = vector.broadcast %1323 : f32 to vector<1x8x8xf32>
    %1325 = arith.mulf %1324, %81 : vector<1x8x8xf32>
    %1326 = arith.addf %1322, %1325 : vector<1x8x8xf32>
    %cst_230 = arith.constant 5.000000e-01 : f32
    %1327 = vector.broadcast %cst_230 : f32 to vector<1x8x8xf32>
    %1328 = arith.mulf %1327, %1326 : vector<1x8x8xf32>
    %1329 = math.tanh %1328 : vector<1x8x8xf32>
    %cst_231 = arith.constant 1.000000e+00 : f32
    %1330 = vector.broadcast %cst_231 : f32 to vector<1x8x8xf32>
    %1331 = arith.addf %1329, %1330 : vector<1x8x8xf32>
    %cst_232 = arith.constant 5.000000e-01 : f32
    %1332 = vector.broadcast %cst_232 : f32 to vector<1x8x8xf32>
    %1333 = arith.mulf %1332, %1331 : vector<1x8x8xf32>
    %1334 = arith.mulf %1326, %1333 : vector<1x8x8xf32>
    %c0_233 = arith.constant 0 : index
    %c7_234 = arith.constant 7 : index
    %c0_235 = arith.constant 0 : index
    %c0_236 = arith.constant 0 : index
    %1335 = vector.load %arg4[%c0_233, %c7_234, %c0_235, %c0_236] : memref<1x8x8x8xf32, #tpu.memory_space<vmem>>, vector<1x1x8x8xf32>
    %1336 = vector.shape_cast %1335 : vector<1x1x8x8xf32> to vector<1x8x8xf32>
    %1337 = vector.shape_cast %1334 : vector<1x8x8xf32> to vector<1x1x8x8xf32>
    tpu.vector_store %arg4[%c0_233, %c7_234, %c0_235, %c0_236], %1337 {strides = array<i32>} : memref<1x8x8x8xf32, #tpu.memory_space<vmem>>, vector<1x1x8x8xf32>,
    return
  }
  func.func @transform_0(%arg0: i32) -> (i32, i32, i32, i32, i32, i32) {
    %c0_i32 = arith.constant 0 : i32
    %c0_i32_0 = arith.constant 0 : i32
    %c0_i32_1 = arith.constant 0 : i32
    %c0_i32_2 = arith.constant 0 : i32
    %c0_i32_3 = arith.constant 0 : i32
    %c0_i32_4 = arith.constant 0 : i32
    return %arg0, %c0_i32, %c0_i32_0, %c0_i32_1, %c0_i32_2, %c0_i32_3 : i32, i32, i32, i32, i32, i32
  }
  func.func @transform_1(%arg0: i32) -> i32 {
    %c0_i32 = arith.constant 0 : i32
    %c0_i32_0 = arith.constant 0 : i32
    return %c0_i32 : i32
  }
  func.func @transform_2(%arg0: i32) -> i32 {
    %c0_i32 = arith.constant 0 : i32
    %c0_i32_0 = arith.constant 0 : i32
    return %c0_i32 : i32
  }
  func.func @transform_3(%arg0: i32) -> (i32, i32, i32, i32) {
    %c0_i32 = arith.constant 0 : i32
    %c0_i32_0 = arith.constant 0 : i32
    %c0_i32_1 = arith.constant 0 : i32
    %c0_i32_2 = arith.constant 0 : i32
    return %arg0, %c0_i32, %c0_i32_0, %c0_i32_1 : i32, i32, i32, i32
  }
}

</mosaic_0001>

<bundles_post_ra>
// kernel: down_block.1
= control target key start
LH: loop header
LB: loop body
LE: loop exit
PB: predicated region body
PF: predicated region fallthrough
CT: control target
= control target key end

     0   :  { %8 = vsyncpa [#allocation5], 0  ;;  %s5170_s0 = inlined_call_operand.vmem [shape: f32[2,4,8,2,8,2], index: 0, kind: input, shape index: {}]   ;;  %s5171_s1 = inlined_call_operand.vmem [shape: f32[288], index: 1, kind: input, shape index: {}]   ;;  %s5172_s2 = inlined_call_operand.vmem [shape: f32[8], index: 2, kind: input, shape index: {}]   ;;  %s5173_s3 = inlined_call_operand.hbm [shape: f32[2,8,8,8], index: 3, kind: output, shape index: {}]  }
   0x1   :  { %9 = vsyncpa [#allocation7], 0 }
   0x2   :  { %10 = vsyncpa [#allocation4], 0 }
   0x3   :  { %12 = vsyncpa [#allocation4 + $0x1], 0  ;;  %s3380_s12 = smov 0   ;;  %s3382_s13 = smov 0  }
   0x4   :  { %s3384_s14 = smov 0   ;;  %s3386_s15 = smov 0  }
   0x5 LB: > { %s3401_s16 = sadd.s32 4294967295, %s3350_s15   ;;  %s2826_s17 = sadd.s32 4294967294, %s3350_s15   ;;  %s3350_s15 = sphi %s3386_s15, %s5191_s15   ;;  %s3346_s14 = sphi %s3384_s14, %s5190_s14   ;;  %s3342_s13 = sphi %s3382_s13, %s5189_s13   ;;  %s3338_s12 = sphi %s3380_s12, %s5188_s12  }
   0x6   : > { %s3405_s18 = sadd.s32 1, %s3350_s15   ;;  %s93_s19 = sadd.s32 1, %s3346_s14 }
   0x7   : > { %s90_s20 = ssub.s32 %s3350_s15, %s3405_s18  ;;  %p103_p0 = scmp.ne.s32.totalorder %s3346_s14, %s3342_s13 }
   0x8   : > { %p91_p1 = scmp.eq.s32.totalorder %s90_s20, 0  ;;  %p104_p2 = scmp.eq.s32.totalorder %s3401_s16, 1 }
   0x9   : > { %p109_p3 = scmp.ne.s32.totalorder %s3342_s13, %s3338_s12  ;;  %p110_p4 = scmp.eq.s32.totalorder %s2826_s17, 1 }
   0xa   : > { %s3416_s21 = scalar_select %p91_p1, %s3346_s14, %s93_s19  }
   0xb   : > { %p3418_p5 = por %p104_p2, %p103_p0  ;;  %p3422_p6 = por %p110_p4, %p109_p3 }
   0xc   : > { %p2827_p7 = scmp.ge.s32.totalorder %s3350_s15, 1  ;;  %p117_p8 = scmp.lt.s32.totalorder %s3350_s15, 3 }
   0xd   : > { %s5177_s22 = scalar_select %p3418_p5, 1, 0 }
   0xe   : > { %s5178_s23 = scalar_select %p3422_p6, 1, 0 }
   0xf   : > { %p5174_p9 = scmp.eq.s32.totalorder %s3401_s16, 0  ;;  %p3429_p10 = pnand %p2827_p7, %p117_p8 }
  0x10   : > { %s130_s27 = sshll.u32 %s5171_s1, 4  ;;  %s141_s30 = sshll.u32 %s5172_s2, 4  ;;  %s131_s27 = int_to_ptr.vmem [resolvable:$true] %s130_s27  ;;  %s142_s30 = int_to_ptr.vmem [resolvable:$true] %s141_s30 }
  0x11   : > { %s5179_s24 = scalar_select %p3429_p10, 1, 0 }
  0x12   : > { %p3155_p11 = pneg %p3429_p10  ;;  %s3250_s5 = scalar_lea.vmem %s131_s27, 48 }
  0x13   : > { %p3251_p13 = scmp.ne.s32.totalorder %s131_s27, %s3250_s5  ;;  %s3257_s6 = scalar_lea.vmem %s131_s27, 64 }
  0x14   : > { %p3443_p12 = pnand %p5174_p9, %p3155_p11  ;;  %p3258_p3 = scmp.lt.s32.totalorder %s131_s27, %s131_s27 }
  0x15   : > { %p3259_p4 = scmp.lt.s32.totalorder %s3257_s6, %s3250_s5 }
  0x16   : > { %p3252_p0 = pneg %p3443_p12 }
  0x17   : > { %p3260_p7 = por %p3259_p4, %p3258_p3 }
  0x18   : > { %p3253_p1 = pnand %p3252_p0, %p3251_p13 }
  0x1a   : > { %p3254_p2 = pneg %p3253_p1 }
  0x1c   : > { %p3261_p8 = pnand %p3260_p7, %p3254_p2 }
  0x1e   : > { %3264 = shalt.err (!%p3261_p8)
}
  0x1f   : > { %s3352_s7 = smov [#allocation3]   ;;  %s3265_s8 = scalar_lea.vmem %s142_s30, 16 }
  0x20   : > { %3158 = dma.vmem_to_smem (!%p3443_p12), %s131_s27, 48, %s3352_s7, [#allocation5]  }
  0x21   : > { %p3266_p11 = scmp.ne.s32.totalorder %s142_s30, %s3265_s8  ;;  %p3273_p5 = scmp.lt.s32.totalorder %s142_s30, %s142_s30 }
  0x22   : > { %p3274_p13 = scmp.lt.s32.totalorder %s3265_s8, %s3265_s8 }
  0x23   : > { %p3268_p9 = pnand %p3266_p11, %p3252_p0 }
  0x24   : > { %p3275_p1 = por %p3274_p13, %p3273_p5 }
  0x25   : > { %p3269_p6 = pneg %p3268_p9 }
  0x27   : > { %p3276_p10 = pnand %p3275_p1, %p3269_p6 }
  0x29   : > { %3279 = shalt.err (!%p3276_p10)
}
  0x2a   : > { %s3353_s9 = smov [#allocation6]   ;;  %p5181_p2 = scmp.ne.s32.totalorder %s5179_s24, 0 }
  0x2b   : > { %3161 = dma.vmem_to_smem (!%p3443_p12), %s142_s30, 16, %s3353_s9, [#allocation7]  }
  0x2c   : > { %162 = sbr.rel (%p5181_p2) target bundleno = 843 (0x34b), region = 32  ;;  %p5182_p3 = scmp.eq.s32.totalorder (!%p5181_p2), %s3401_s16, 0 }
  0x33   : > { %3325 = dma.done.wait (%p5182_p3), [#allocation5], 48   ;;  %p5183_p4 = pmov %p5182_p3 }
  0x34   : > { %p5184_p9 = pmov %p5182_p3 }
  0x35   : > { %3327 = vsyncadd (%p5183_p4), [#allocation5], 4294967248 }
  0x36   : > { %3329 = dma.done.wait (%p5184_p9), [#allocation7], 16   ;;  %p5185_p5 = pmov %p5182_p3 }
  0x38   : > { %3331 = vsyncadd (%p5185_p5), [#allocation7], 4294967280 }
  0x39   : > { %172 = sfence }
  0x3a   : > { %p191_p6 = scmp.lt.s32.totalorder %s3401_s16, 1  ;;  %vm260_vm0 = vcmask 15360   ;;  %vm485_vm1 = vcmask 73728   ;;  %vm494_vm2 = vcmask 7168   ;;  %vm496_vm3 = vcmask 1024   ;;  %s2838_s24 = sld [smem:[#allocation3 + $0x2]] }
  0x3b   : > { %vm504_vm4 = vcmask 80968   ;;  %vm506_vm5 = vcmask 74824   ;;  %vm677_vm6 = vcmask 1041409   ;;  %vm679_vm7 = vcmask 1042434   ;;  %s2837_s25 = sld [smem:[#allocation3 + $0x1]]  ;;  %s2840_s26 = sld [smem:[#allocation3 + $0x4]] }
  0x3c   : > { %s192_s10 = scalar_select %p191_p6, %s3401_s16, 1  ;;  %vm681_vm8 = vcmask 1043459   ;;  %vm683_vm9 = vcmask 1044484   ;;  %vm685_vm10 = vcmask 1045509   ;;  %vm687_vm11 = vcmask 1046534  }
  0x3d   : > { %vm689_vm12 = vcmask 1047559   ;;  %vm716_vm13 = vcmask 72712   ;;  %s2843_s27 = sld [smem:[#allocation3 + $0x7]]  ;;  %s2841_s28 = sld [smem:[#allocation3 + $0x5]]  ;;  %vm983_vm14 = vcmask 64512  }
  0x3e   : > { %s3143_s11 = sshll.u32 %s192_s10, 9  ;;  %s2844_s29 = sld [smem:[#allocation3 + $0x8]] }
  0x3f   : > { %s3474_s20 = scalar_lea.vmem %s5170_s0, %s3143_s11  ;;  %s3355_s30 = smov 126  }
  0x40   : > { %v198_v0 = vld [vmem:[%s3474_s20 + $0x10] sm:$0xff]  ;;  %v196_v1 = vld [vmem:[%s3474_s20] sm:$0xff]  ;;  %v199_v2 = vld [vmem:[%s3474_s20 + $0x18] sm:$0xff]  ;;  %s3356_s4 = smov 127   ;;  %s2847_s5 = sld [smem:[#allocation3 + $0xb]] }
  0x41   : > { %v267_v3 = vsel %vm260_vm0, %v198_v0, -inf  ;;  %v261_v4 = vsel %vm260_vm0, %v196_v1, -inf  ;;  %v197_v5 = vld [vmem:[%s3474_s20 + $0x8] sm:$0xff]  ;;  %v270_v6 = vsel %vm260_vm0, %v199_v2, -inf  ;;  %v200_v9 = vld [vmem:[%s3474_s20 + $0x20] sm:$0xff]  ;;  %v203_v10 = vld [vmem:[%s3474_s20 + $0x38] sm:$0xff] }
  0x42   : > { %268 = vmax.xlane.f32.xlu1 %v267_v3  ;;  %262 = vmax.xlane.f32.xlu0 %v261_v4  ;;  %v264_v7 = vsel %vm260_vm0, %v197_v5, -inf  ;;  %v201_v8 = vld [vmem:[%s3474_s20 + $0x28] sm:$0xff]  ;;  %v273_v12 = vsel %vm260_vm0, %v200_v9, -inf  ;;  %v202_v13 = vld [vmem:[%s3474_s20 + $0x30] sm:$0xff]  ;;  %v204_v15 = vld [vmem:[%s3474_s20 + $0x40] sm:$0xff]  ;;  %v282_v18 = vsel %vm260_vm0, %v203_v10, -inf }
  0x43   : > { %v276_v11 = vsel %vm260_vm0, %v201_v8, -inf  ;;  %v205_v14 = vld [vmem:[%s3474_s20 + $0x48] sm:$0xff]  ;;  %v207_v16 = vld [vmem:[%s3474_s20 + $0x58] sm:$0xff]  ;;  %v206_v17 = vld [vmem:[%s3474_s20 + $0x50] sm:$0xff]  ;;  %v279_v19 = vsel %vm260_vm0, %v202_v13, -inf  ;;  %v285_v21 = vsel %vm260_vm0, %v204_v15, -inf }
  0x44   : > { %v288_v20 = vsel %vm260_vm0, %v205_v14, -inf  ;;  %v229_v22 = vld [vmem:[%s3474_s20 + $0x108] sm:$0xff]  ;;  %v3500_v23 = vsel %vm260_vm0, %v207_v16, -inf  ;;  %v3503_v24 = vsel %vm260_vm0, %v206_v17, -inf  ;;  %v228_v26 = vld [vmem:[%s3474_s20 + $0x100] sm:$0xff]  ;;  %v231_v27 = vld [vmem:[%s3474_s20 + $0x118] sm:$0xff] }
  0x45   : > { %v3506_v25 = vsel %vm260_vm0, %v229_v22, -inf  ;;  %v230_v28 = vld [vmem:[%s3474_s20 + $0x110] sm:$0xff]  ;;  %v3512_v29 = vsel %vm260_vm0, %v228_v26, -inf  ;;  %v3515_v30 = vsel %vm260_vm0, %v231_v27, -inf  ;;  %v233_v32 = vld [vmem:[%s3474_s20 + $0x128] sm:$0xff]  ;;  %v232_v33 = vld [vmem:[%s3474_s20 + $0x120] sm:$0xff] }
  0x46   : > { %271 = vmax.xlane.f32.xlu1 %v270_v6  ;;  %265 = vmax.xlane.f32.xlu0 %v264_v7  ;;  %v3518_v31 = vsel %vm260_vm0, %v230_v28, -inf  ;;  %v235_v34 = vld [vmem:[%s3474_s20 + $0x138] sm:$0xff]  ;;  %v3524_v35 = vsel %vm260_vm0, %v233_v32, -inf  ;;  %v3527_v36 = vsel %vm260_vm0, %v232_v33, -inf  ;;  %v234_v38 = vld [vmem:[%s3474_s20 + $0x130] sm:$0xff]  ;;  %v237_v39 = vld [vmem:[%s3474_s20 + $0x148] sm:$0xff] }
  0x47   : > { %v3530_v37 = vsel %vm260_vm0, %v235_v34, -inf  ;;  %v236_v40 = vld [vmem:[%s3474_s20 + $0x140] sm:$0xff]  ;;  %v3536_v41 = vsel %vm260_vm0, %v234_v38, -inf  ;;  %v3539_v42 = vsel %vm260_vm0, %v237_v39, -inf  ;;  %v239_v44 = vld [vmem:[%s3474_s20 + $0x158] sm:$0xff]  ;;  %v238_v45 = vld [vmem:[%s3474_s20 + $0x150] sm:$0xff] }
  0x48   : > { %v3542_v43 = vsel %vm260_vm0, %v236_v40, -inf  ;;  %v241_v46 = vld [vmem:[%s3474_s20 + $0x168] sm:$0xff]  ;;  %v3548_v47 = vsel %vm260_vm0, %v239_v44, -inf  ;;  %v3551_v48 = vsel %vm260_vm0, %v238_v45, -inf  ;;  %v240_v50 = vld [vmem:[%s3474_s20 + $0x160] sm:$0xff]  ;;  %v243_v51 = vld [vmem:[%s3474_s20 + $0x178] sm:$0xff] }
  0x49   : > { %v3554_v49 = vsel %vm260_vm0, %v241_v46, -inf  ;;  %v242_v52 = vld [vmem:[%s3474_s20 + $0x170] sm:$0xff]  ;;  %v3560_v53 = vsel %vm260_vm0, %v240_v50, -inf  ;;  %v3563_v54 = vsel %vm260_vm0, %v243_v51, -inf  ;;  %v245_v56 = vld [vmem:[%s3474_s20 + $0x188] sm:$0xff]  ;;  %v244_v57 = vld [vmem:[%s3474_s20 + $0x180] sm:$0xff] }
  0x4a   : > { %277 = vmax.xlane.f32.xlu1 %v276_v11  ;;  %274 = vmax.xlane.f32.xlu0 %v273_v12  ;;  %v3566_v55 = vsel %vm260_vm0, %v242_v52, -inf  ;;  %v247_v58 = vld [vmem:[%s3474_s20 + $0x198] sm:$0xff]  ;;  %v3572_v59 = vsel %vm260_vm0, %v245_v56, -inf  ;;  %v3575_v60 = vsel %vm260_vm0, %v244_v57, -inf  ;;  %v246_v62 = vld [vmem:[%s3474_s20 + $0x190] sm:$0xff]  ;;  %v249_v63 = vld [vmem:[%s3474_s20 + $0x1a8] sm:$0xff] }
  0x4b   : > { %v3578_v61 = vsel %vm260_vm0, %v247_v58, -inf  ;;  %v248_v0 = vld [vmem:[%s3474_s20 + $0x1a0] sm:$0xff]  ;;  %v209_v1 = vld [vmem:[%s3474_s20 + $0x68] sm:$0xff]  ;;  %v3586_v3 = vsel %vm260_vm0, %v246_v62, -inf  ;;  %v3589_v4 = vsel %vm260_vm0, %v249_v63, -inf  ;;  %v251_v6 = vld [vmem:[%s3474_s20 + $0x1b8] sm:$0xff] }
  0x4c   : > { %v208_v2 = vld [vmem:[%s3474_s20 + $0x60] sm:$0xff]  ;;  %v3592_v5 = vsel %vm260_vm0, %v248_v0, -inf  ;;  %v250_v7 = vld [vmem:[%s3474_s20 + $0x1b0] sm:$0xff]  ;;  %v253_v8 = vld [vmem:[%s3474_s20 + $0x1c8] sm:$0xff]  ;;  %v3598_v9 = vsel %vm260_vm0, %v251_v6, -inf  ;;  %v300_v32 = vsel %vm260_vm0, %v209_v1, -inf }
  0x4d   : > { %v3601_v10 = vsel %vm260_vm0, %v250_v7, -inf  ;;  %v3604_v11 = vsel %vm260_vm0, %v253_v8, -inf  ;;  %v252_v12 = vld [vmem:[%s3474_s20 + $0x1c0] sm:$0xff]  ;;  %v255_v13 = vld [vmem:[%s3474_s20 + $0x1d8] sm:$0xff]  ;;  %v254_v14 = vld [vmem:[%s3474_s20 + $0x1d0] sm:$0xff]  ;;  %v297_v33 = vsel %vm260_vm0, %v208_v2, -inf }
  0x4e   : > { %283 = vmax.xlane.f32.xlu1 %v282_v18  ;;  %280 = vmax.xlane.f32.xlu0 %v279_v19  ;;  %v3610_v15 = vsel %vm260_vm0, %v252_v12, -inf  ;;  %v3613_v16 = vsel %vm260_vm0, %v255_v13, -inf  ;;  %v3616_v17 = vsel %vm260_vm0, %v254_v14, -inf  ;;  %v257_v18 = vld [vmem:[%s3474_s20 + $0x1e8] sm:$0xff]  ;;  %v256_v19 = vld [vmem:[%s3474_s20 + $0x1e0] sm:$0xff]  ;;  %v258_v27 = vld [vmem:[%s3474_s20 + $0x1f0] sm:$0xff] }
  0x4f   : > { %v3625_v22 = vsel %vm260_vm0, %v256_v19, -inf  ;;  %v3634_v28 = vsel %vm260_vm0, %v258_v27, -inf  ;;  %v211_v34 = vld [vmem:[%s3474_s20 + $0x78] sm:$0xff]  ;;  %v210_v38 = vld [vmem:[%s3474_s20 + $0x70] sm:$0xff]  ;;  %v212_v40 = vld [vmem:[%s3474_s20 + $0x80] sm:$0xff]  ;;  %v3354_v8 = vmov 0.0  }
  0x50   : > { %v306_v39 = vsel %vm260_vm0, %v211_v34, -inf  ;;  %v309_v45 = vsel %vm260_vm0, %v212_v40, -inf  ;;  %v215_v46 = vld [vmem:[%s3474_s20 + $0x98] sm:$0xff]  ;;  %v214_v50 = vld [vmem:[%s3474_s20 + $0x90] sm:$0xff]  ;;  %v217_v56 = vld [vmem:[%s3474_s20 + $0xa8] sm:$0xff]  ;;  %s2846_s6 = sld [smem:[#allocation3 + $0xa]] }
  0x51   : > { %v318_v51 = vsel %vm260_vm0, %v215_v46, -inf  ;;  %v315_v52 = vsel %vm260_vm0, %v214_v50, -inf  ;;  %v216_v57 = vld [vmem:[%s3474_s20 + $0xa0] sm:$0xff]  ;;  %v324_v58 = vsel %vm260_vm0, %v217_v56, -inf  ;;  %v219_v63 = vld [vmem:[%s3474_s20 + $0xb8] sm:$0xff]  ;;  %v218_v0 = vld [vmem:[%s3474_s20 + $0xb0] sm:$0xff] }
  0x52   : > { %289 = vmax.xlane.f32.xlu1 %v288_v20  ;;  %286 = vmax.xlane.f32.xlu0 %v285_v21  ;;  %v259_v20 = vld [vmem:[%s3474_s20 + $0x1f8] sm:$0xff]  ;;  %v3622_v21 = vsel %vm260_vm0, %v257_v18, -inf  ;;  %v321_v62 = vsel %vm260_vm0, %v216_v57, -inf  ;;  %v330_v1 = vsel %vm260_vm0, %v219_v63, -inf  ;;  %v327_v2 = vsel %vm260_vm0, %v218_v0, -inf  ;;  %v221_v6 = vld [vmem:[%s3474_s20 + $0xc8] sm:$0xff] }
  0x53   : > { %v3628_v26 = vsel %vm260_vm0, %v259_v20, -inf  ;;  %v220_v7 = vld [vmem:[%s3474_s20 + $0xc0] sm:$0xff]  ;;  %486 = vst.msk [vmem:[#allocation2] sm:$0x1] %vm485_vm1, %v3354_v8  ;;  %490 = vst.msk [vmem:[#allocation2 + $0x9] sm:$0x1] %vm485_vm1, %v3354_v8 }
  0x54   : > { %487 = vst.msk [vmem:[#allocation2 + $0x10] sm:$0x1] %vm485_vm1, %v3354_v8  ;;  %488 = vst.msk [vmem:[#allocation2 + $0x20] sm:$0x1] %vm485_vm1, %v3354_v8  ;;  %v336_v12 = vsel %vm260_vm0, %v221_v6, -inf  ;;  %v333_v13 = vsel %vm260_vm0, %v220_v7, -inf  ;;  %v751_v7 = vstv %s2838_s24 }
  0x55   : > { %489 = vst.msk [vmem:[#allocation2 + $0x30] sm:$0x1] %vm485_vm1, %v3354_v8  ;;  %491 = vst.msk [vmem:[#allocation2 + $0x19] sm:$0x1] %vm485_vm1, %v3354_v8  ;;  %v223_v14 = vld [vmem:[%s3474_s20 + $0xd8] sm:$0xff]  ;;  %v222_v18 = vld [vmem:[%s3474_s20 + $0xd0] sm:$0xff] }
  0x56   : > { %295 = vmax.xlane.f32.xlu1 %v3500_v23  ;;  %292 = vmax.xlane.f32.xlu0 %v3503_v24  ;;  %v303_v23 = vsel %vm260_vm0, %v210_v38, -inf  ;;  %v213_v24 = vld [vmem:[%s3474_s20 + $0x88] sm:$0xff]  ;;  %492 = vst.msk [vmem:[#allocation2 + $0x29] sm:$0x1] %vm485_vm1, %v3354_v8  ;;  %493 = vst.msk [vmem:[#allocation2 + $0x39] sm:$0x1] %vm485_vm1, %v3354_v8 }
  0x57   : > { %v312_v44 = vsel %vm260_vm0, %v213_v24, -inf  ;;  %495 = vst.msk [vmem:[#allocation2] sm:$0xff] %vm494_vm2, %v3354_v8  ;;  %498 = vst.msk [vmem:[#allocation2 + $0x10] sm:$0xff] %vm494_vm2, %v3354_v8  ;;  %v342_v19 = vsel %vm260_vm0, %v223_v14, -inf  ;;  %v339_v20 = vsel %vm260_vm0, %v222_v18, -inf  ;;  %v225_v27 = vld [vmem:[%s3474_s20 + $0xe8] sm:$0xff] }
  0x58   : > { %497 = vst.msk [vmem:[#allocation2 + $0x8] sm:$0x3] %vm496_vm3, %v3354_v8  ;;  %499 = vst.msk [vmem:[#allocation2 + $0x18] sm:$0x3] %vm496_vm3, %v3354_v8  ;;  %v227_v38 = vld [vmem:[%s3474_s20 + $0xf8] sm:$0xff]  ;;  %s2850_s7 = sld [smem:[#allocation3 + $0xe]] }
  0x59   : > { %500 = vst.msk [vmem:[#allocation2 + $0x20] sm:$0xff] %vm494_vm2, %v3354_v8  ;;  %502 = vst.msk [vmem:[#allocation2 + $0x30] sm:$0xff] %vm494_vm2, %v3354_v8  ;;  %s2849_s8 = sld [smem:[#allocation3 + $0xd]]  ;;  %s2853_s9 = sld [smem:[#allocation3 + $0x11]] }
  0x5a   : > { %301 = vmax.xlane.f32.xlu1 %v300_v32  ;;  %298 = vmax.xlane.f32.xlu0 %v297_v33  ;;  %501 = vst.msk [vmem:[#allocation2 + $0x28] sm:$0x3] %vm496_vm3, %v3354_v8  ;;  %503 = vst.msk [vmem:[#allocation2 + $0x38] sm:$0x3] %vm496_vm3, %v3354_v8  ;;  %v224_v32 = vld [vmem:[%s3474_s20 + $0xe0] sm:$0xff]  ;;  %v348_v33 = vsel %vm260_vm0, %v225_v27, -inf }
  0x5b   : > { %505 = vst.msk [vmem:[#allocation2] sm:$0xff] %vm504_vm4, %v3354_v8  ;;  %508 = vst.msk [vmem:[#allocation2 + $0x10] sm:$0xff] %vm504_vm4, %v3354_v8  ;;  %v345_v34 = vsel %vm260_vm0, %v224_v32, -inf  ;;  %v763_v32 = vstv %s2840_s26  ;;  %s2852_s10 = sld [smem:[#allocation3 + $0x10]]  ;;  %s2856_s11 = sld [smem:[#allocation3 + $0x14]] }
  0x5c   : > { %507 = vst.msk [vmem:[#allocation2 + $0x8] sm:$0x3] %vm506_vm5, %v3354_v8  ;;  %509 = vst.msk [vmem:[#allocation2 + $0x18] sm:$0x3] %vm506_vm5, %v3354_v8  ;;  %s2855_s17 = sld [smem:[#allocation3 + $0x13]]  ;;  %s2859_s19 = sld [smem:[#allocation3 + $0x17]] }
  0x5d   : > { %510 = vst.msk [vmem:[#allocation2 + $0x20] sm:$0xff] %vm504_vm4, %v3354_v8  ;;  %512 = vst.msk [vmem:[#allocation2 + $0x30] sm:$0xff] %vm504_vm4, %v3354_v8  ;;  %s2862_s24 = sld [smem:[#allocation3 + $0x1a]]  ;;  %s2865_s26 = sld [smem:[#allocation3 + $0x1d]] }
  0x5e   : > { %307 = vmax.xlane.f32.xlu1 %v306_v39  ;;  %304 = vmax.xlane.f32.xlu0 %v303_v23  ;;  %511 = vst.msk [vmem:[#allocation2 + $0x28] sm:$0x3] %vm506_vm5, %v3354_v8  ;;  %513 = vst.msk [vmem:[#allocation2 + $0x38] sm:$0x3] %vm506_vm5, %v3354_v8  ;;  %v226_v39 = vld [vmem:[%s3474_s20 + $0xf0] sm:$0xff]  ;;  %v354_v23 = vsel %vm260_vm0, %v227_v38, -inf  ;;  %v743_v8 = vstv %s2837_s25 }
  0x5f   : > { %v351_v24 = vsel %vm260_vm0, %v226_v39, -inf  ;;  %s2858_s20 = sld [smem:[#allocation3 + $0x16]]  ;;  %s2861_s25 = sld [smem:[#allocation3 + $0x19]] }
  0x60   : > { %p5186_p12 = scmp.ne.s32.totalorder %s5177_s22, 0 }
  0x62   : > { %313 = vmax.xlane.f32.xlu1 %v312_v44  ;;  %310 = vmax.xlane.f32.xlu0 %v309_v45 }
  0x66   : > { %319 = vmax.xlane.f32.xlu1 %v318_v51  ;;  %316 = vmax.xlane.f32.xlu0 %v315_v52 }
  0x6a   : > { %325 = vmax.xlane.f32.xlu1 %v324_v58  ;;  %322 = vmax.xlane.f32.xlu0 %v321_v62 }
  0x6e   : > { %331 = vmax.xlane.f32.xlu1 %v330_v1  ;;  %328 = vmax.xlane.f32.xlu0 %v327_v2 }
  0x72   : > { %337 = vmax.xlane.f32.xlu1 %v336_v12  ;;  %334 = vmax.xlane.f32.xlu0 %v333_v13 }
  0x76   : > { %343 = vmax.xlane.f32.xlu1 %v342_v19  ;;  %340 = vmax.xlane.f32.xlu0 %v339_v20 }
  0x7a   : > { %349 = vmax.xlane.f32.xlu1 %v348_v33  ;;  %346 = vmax.xlane.f32.xlu0 %v345_v34  ;;  %v783_v33 = vstv %s2843_s27  ;;  %s2864_s27 = sld [smem:[#allocation3 + $0x1c]] }
  0x7e   : > { %355 = vmax.xlane.f32.xlu1 %v354_v23  ;;  %352 = vmax.xlane.f32.xlu0 %v351_v24  ;;  %v771_v24 = vstv %s2841_s28  ;;  %s2868_s28 = sld [smem:[#allocation3 + $0x20]] }
  0x82   : > { %361 = vmax.xlane.f32.xlu1 %v3506_v25  ;;  %358 = vmax.xlane.f32.xlu0 %v3512_v29 }
  0x86   : > { %367 = vmax.xlane.f32.xlu1 %v3515_v30  ;;  %364 = vmax.xlane.f32.xlu0 %v3518_v31 }
  0x8a   : > { %373 = vmax.xlane.f32.xlu1 %v3524_v35  ;;  %370 = vmax.xlane.f32.xlu0 %v3527_v36  ;;  %v546_v35 = vlaneseq }
  0x8e   : > { %379 = vmax.xlane.f32.xlu1 %v3530_v37  ;;  %376 = vmax.xlane.f32.xlu0 %v3536_v41  ;;  %v547_v41 = vand.u32 127, %v546_v35 }
  0x92   : > { %385 = vmax.xlane.f32.xlu1 %v3539_v42  ;;  %382 = vmax.xlane.f32.xlu0 %v3542_v43 }
  0x96   : > { %391 = vmax.xlane.f32.xlu1 %v3548_v47  ;;  %388 = vmax.xlane.f32.xlu0 %v3551_v48  ;;  %v548_v47 = vadd.s32 4294967295, %v547_v41  ;;  %v550_v48 = vshrl.u32 %v546_v35, 7  ;;  %v791_v35 = vstv %s2844_s29  ;;  %s2867_s29 = sld [smem:[#allocation3 + $0x1f]] }
  0x9a   : > { %397 = vmax.xlane.f32.xlu1 %v3554_v49  ;;  %394 = vmax.xlane.f32.xlu0 %v3560_v53 }
  0x9e   : > { %403 = vmax.xlane.f32.xlu1 %v3563_v54  ;;  %400 = vmax.xlane.f32.xlu0 %v3566_v55  ;;  %v3722_v54 = vsub.s32 %v548_v47, %v550_v48 }
  0xa2   : > { %409 = vmax.xlane.f32.xlu1 %v3572_v59  ;;  %406 = vmax.xlane.f32.xlu0 %v3575_v60 }
  0xa6   : > { %415 = vmax.xlane.f32.xlu1 %v3578_v61  ;;  %412 = vmax.xlane.f32.xlu0 %v3586_v3 }
  0xaa   : > { %421 = vmax.xlane.f32.xlu1 %v3589_v4  ;;  %418 = vmax.xlane.f32.xlu0 %v3592_v5 }
  0xae   : > { %427 = vmax.xlane.f32.xlu1 %v3598_v9  ;;  %424 = vmax.xlane.f32.xlu0 %v3601_v10 }
  0xb2   : > { %433 = vmax.xlane.f32.xlu1 %v3604_v11  ;;  %430 = vmax.xlane.f32.xlu0 %v3610_v15 }
  0xb6   : > { %439 = vmax.xlane.f32.xlu1 %v3613_v16  ;;  %436 = vmax.xlane.f32.xlu0 %v3616_v17 }
  0xba   : > { %445 = vmax.xlane.f32.xlu1 %v3622_v21  ;;  %442 = vmax.xlane.f32.xlu0 %v3625_v22 }
  0xbe   : > { %451 = vmax.xlane.f32.xlu1 %v3628_v26  ;;  %448 = vmax.xlane.f32.xlu0 %v3634_v28 }
  0xcf   : > { %v269_v25 = vpop.xlane.xlu1 %268  ;;  %v263_v29 = vpop.xlane.xlu0 %262 }
  0xd3   : > { %v272_v30 = vpop.xlane.xlu1 %271  ;;  %v266_v31 = vpop.xlane.xlu0 %265 }
  0xd4   : > { %v454_v55 = vmax.f32 %v269_v25, %v272_v30  ;;  %v453_v59 = vmax.f32 %v263_v29, %v266_v31 }
  0xd6   : > { %v556_v9 = vrot.slane %v454_v55, %v3722_v54  ;;  %v552_v10 = vrot.slane %v453_v59, %v3722_v54 }
  0xd7   : > { %v278_v36 = vpop.xlane.xlu1 %277  ;;  %v275_v37 = vpop.xlane.xlu0 %274 }
  0xd8   : > { %v455_v60 = vmax.f32 %v275_v37, %v278_v36  ;;  %v678_v28 = vsel %vm677_vm6, %v556_v9, %v552_v10 }
  0xda   : > { %v560_v15 = vrot.slane %v455_v60, %v3722_v54 }
  0xdb   : > { %v284_v42 = vpop.xlane.xlu1 %283  ;;  %v281_v43 = vpop.xlane.xlu0 %280 }
  0xdc   : > { %v456_v4 = vmax.f32 %v281_v43, %v284_v42  ;;  %v680_v44 = vsel %vm679_vm7, %v560_v15, %v678_v28 }
  0xde   : > { %v564_v21 = vrot.slane %v456_v4, %v3722_v54 }
  0xdf   : > { %v290_v49 = vpop.xlane.xlu1 %289  ;;  %v287_v53 = vpop.xlane.xlu0 %286 }
  0xe0   : > { %v457_v5 = vmax.f32 %v287_v53, %v290_v49  ;;  %v682_v51 = vsel %vm681_vm8, %v564_v21, %v680_v44 }
  0xe2   : > { %v568_v26 = vrot.slane %v457_v5, %v3722_v54 }
  0xe3   : > { %v296_v61 = vpop.xlane.xlu1 %295  ;;  %v293_v3 = vpop.xlane.xlu0 %292 }
  0xe4   : > { %v458_v11 = vmax.f32 %v293_v3, %v296_v61  ;;  %v684_v56 = vsel %vm683_vm9, %v568_v26, %v682_v51 }
  0xe6   : > { %v572_v40 = vrot.slane %v458_v11, %v3722_v54 }
  0xe7   : > { %v302_v16 = vpop.xlane.xlu1 %301  ;;  %v299_v17 = vpop.xlane.xlu0 %298 }
  0xe8   : > { %v459_v22 = vmax.f32 %v299_v17, %v302_v16  ;;  %v686_v57 = vsel %vm685_vm10, %v572_v40, %v684_v56  ;;  %v811_v56 = vstv %s2847_s5  ;;  %s2871_s5 = sld [smem:[#allocation3 + $0x23]] }
  0xea   : > { %v576_v45 = vrot.slane %v459_v22, %v3722_v54 }
  0xeb   : > { %v308_v46 = vpop.xlane.xlu1 %307  ;;  %v305_v50 = vpop.xlane.xlu0 %304 }
  0xec   : > { %v460_v52 = vmax.f32 %v305_v50, %v308_v46  ;;  %v688_v62 = vsel %vm687_vm11, %v576_v45, %v686_v57  ;;  %v803_v57 = vstv %s2846_s6  ;;  %s2870_s6 = sld [smem:[#allocation3 + $0x22]] }
  0xee   : > { %v580_v58 = vrot.slane %v460_v52, %v3722_v54 }
  0xef   : > { %v314_v63 = vpop.xlane.xlu1 %313  ;;  %v311_v0 = vpop.xlane.xlu0 %310 }
  0xf0   : > { %v690_v1 = vsel %vm689_vm12, %v580_v58, %v688_v62  ;;  %v461_v42 = vmax.f32 %v311_v0, %v314_v63 }
  0xf1   : > { %717 = vst.msk [vmem:[#allocation2 + $0x1] sm:$0xff] %vm716_vm13, %v690_v1 }
  0xf2   : > { %v584_v61 = vrot.slane %v461_v42, %v3722_v54 }
  0xf3   : > { %v320_v2 = vpop.xlane.xlu1 %319  ;;  %v317_v6 = vpop.xlane.xlu0 %316 }
  0xf4   : > { %v462_v31 = vmax.f32 %v317_v6, %v320_v2  ;;  %v831_v6 = vstv %s2850_s7  ;;  %s2875_s7 = sld [smem:[#allocation3 + $0x26]] }
  0xf6   : > { %v588_v49 = vrot.slane %v462_v31, %v3722_v54 }
  0xf7   : > { %v326_v12 = vpop.xlane.xlu1 %325  ;;  %v323_v13 = vpop.xlane.xlu0 %322 }
  0xf8   : > { %v3740_v14 = vld [vmem:[#allocation2] sm:$0xff]  ;;  %v463_v36 = vmax.f32 %v323_v13, %v326_v12  ;;  %v691_v9 = vsel %vm677_vm6, %v588_v49, %v584_v61 }
  0xf9   : > { %v752_v18 = vmul.f32 %v751_v7, %v3740_v14  ;;  %v744_v19 = vmul.f32 %v743_v8, %v3740_v14  ;;  %v3744_v20 = vld [vmem:[#allocation2 + $0x1] sm:$0xff]  ;;  %v823_v7 = vstv %s2849_s8  ;;  %s2874_s8 = sld [smem:[#allocation3 + $0x25]] }
  0xfa   : > { %v3746_v27 = vld [vmem:[#allocation2 + $0x2] sm:$0xff]  ;;  %v764_v39 = vmul.f32 %v763_v32, %v3744_v20  ;;  %v772_v30 = vmul.f32 %v771_v24, %v3744_v20  ;;  %v592_v55 = vrot.slane %v463_v36, %v3722_v54  ;;  %v851_v32 = vstv %s2853_s9  ;;  %s738_s9 = sld [smem:[#allocation3]] }
  0xfb   : > { %v332_v34 = vpop.xlane.xlu1 %331  ;;  %754 = vrot.lane.b32.xlu1 %v752_v18, %s3355_s30  ;;  %746 = vrot.lane.b32.xlu0 %v744_v19, %s3356_s4  ;;  %v329_v38 = vpop.xlane.xlu0 %328  ;;  %v784_v23 = vmul.f32 %v783_v33, %v3746_v27  ;;  %v792_v48 = vmul.f32 %v791_v35, %v3746_v27  ;;  %v843_v33 = vstv %s2852_s10  ;;  %s2878_s10 = sld [smem:[#allocation3 + $0x29]] }
  0xfc   : > { %v464_v43 = vmax.f32 %v329_v38, %v332_v34  ;;  %v692_v11 = vsel %vm679_vm7, %v592_v55, %v691_v9 }
  0xfe   : > { %v596_v3 = vrot.slane %v464_v43, %v3722_v54 }
  0xff   : > { %v338_v25 = vpop.xlane.xlu1 %337  ;;  %766 = vrot.lane.b32.xlu1 %v764_v39, %s3356_s4  ;;  %786 = vrot.lane.b32.xlu0 %v784_v23, %s3356_s4  ;;  %v335_v29 = vpop.xlane.xlu0 %334 }
 0x100   : > { %v465_v47 = vmax.f32 %v335_v29, %v338_v25  ;;  %v693_v21 = vsel %vm681_vm8, %v596_v3, %v692_v11 }
 0x102   : > { %v600_v5 = vrot.slane %v465_v47, %v3722_v54 }
 0x103   : > { %v344_v37 = vpop.xlane.xlu1 %343  ;;  %774 = vrot.lane.b32.xlu1 %v772_v30, %s3355_s30  ;;  %v341_v41 = vpop.xlane.xlu0 %340 }
 0x104   : > { %v466_v53 = vmax.f32 %v341_v41, %v344_v37  ;;  %v694_v26 = vsel %vm683_vm9, %v600_v5, %v693_v21 }
 0x106   : > { %v604_v10 = vrot.slane %v466_v53, %v3722_v54 }
 0x107   : > { %v350_v59 = vpop.xlane.xlu1 %349  ;;  %794 = vrot.lane.b32.xlu1 %v792_v48, %s3355_s30  ;;  %v347_v60 = vpop.xlane.xlu0 %346 }
 0x108   : > { %v467_v4 = vmax.f32 %v347_v60, %v350_v59  ;;  %v695_v28 = vsel %vm685_vm10, %v604_v10, %v694_v26 }
 0x10a   : > { %v608_v15 = vrot.slane %v467_v4, %v3722_v54 }
 0x10b   : > { %v356_v16 = vpop.xlane.xlu1 %355  ;;  %v353_v17 = vpop.xlane.xlu0 %352 }
 0x10c   : > { %v468_v22 = vmax.f32 %v353_v17, %v356_v16  ;;  %v696_v44 = vsel %vm687_vm11, %v608_v15, %v695_v28 }
 0x10e   : > { %v612_v40 = vrot.slane %v468_v22, %v3722_v54 }
 0x10f   : > { %v362_v45 = vpop.xlane.xlu1 %361  ;;  %v359_v46 = vpop.xlane.xlu0 %358 }
 0x110   : > { %v697_v50 = vsel %vm689_vm12, %v612_v40, %v696_v44  ;;  %v469_v31 = vmax.f32 %v359_v46, %v362_v45  ;;  %v871_v44 = vstv %s2856_s11  ;;  %v863_v45 = vstv %s2855_s17  ;;  %s2877_s11 = sld [smem:[#allocation3 + $0x28]] }
 0x111   : > { %718 = vst.msk [vmem:[#allocation2 + $0x11] sm:$0xff] %vm716_vm13, %v697_v50  ;;  %s736_s17 = sld [smem:[#allocation6]] }
 0x112   : > { %v616_v48 = vrot.slane %v469_v31, %v3722_v54 }
 0x113   : > { %v368_v51 = vpop.xlane.xlu1 %367  ;;  %v365_v52 = vpop.xlane.xlu0 %364 }
 0x114   : > { %v470_v24 = vmax.f32 %v365_v52, %v368_v51 }
 0x116   : > { %v620_v37 = vrot.slane %v470_v24, %v3722_v54 }
 0x117   : > { %v374_v58 = vpop.xlane.xlu1 %373  ;;  %v371_v62 = vpop.xlane.xlu0 %370 }
 0x118   : > { %v3774_v63 = vld [vmem:[#allocation2 + $0x10] sm:$0xff]  ;;  %v471_v25 = vmax.f32 %v371_v62, %v374_v58  ;;  %v698_v59 = vsel %vm677_vm6, %v620_v37, %v616_v48  ;;  %v891_v58 = vstv %s2859_s19  ;;  %v883_v62 = vstv %s2858_s20  ;;  %s2881_s19 = sld [smem:[#allocation3 + $0x2c]]  ;;  %s2880_s20 = sld [smem:[#allocation3 + $0x2b]] }
 0x119   : > { %v812_v0 = vmul.f32 %v811_v56, %v3774_v63  ;;  %v804_v1 = vmul.f32 %v803_v57, %v3774_v63  ;;  %v3778_v2 = vld [vmem:[#allocation2 + $0x11] sm:$0xff] }
 0x11a   : > { %v832_v13 = vmul.f32 %v831_v6, %v3778_v2  ;;  %v824_v18 = vmul.f32 %v823_v7, %v3778_v2  ;;  %v3784_v19 = vld [vmem:[#allocation2 + $0x12] sm:$0xff]  ;;  %v624_v42 = vrot.slane %v471_v25, %v3722_v54 }
 0x11b   : > { %v380_v8 = vpop.xlane.xlu1 %379  ;;  %814 = vrot.lane.b32.xlu1 %v812_v0, %s3355_s30  ;;  %806 = vrot.lane.b32.xlu0 %v804_v1, %s3356_s4  ;;  %v377_v12 = vpop.xlane.xlu0 %376  ;;  %v852_v39 = vmul.f32 %v851_v32, %v3784_v19  ;;  %v844_v23 = vmul.f32 %v843_v33, %v3784_v19 }
 0x11c   : > { %v472_v35 = vmax.f32 %v377_v12, %v380_v8  ;;  %v699_v61 = vsel %vm679_vm7, %v624_v42, %v698_v59  ;;  %v911_v12 = vstv %s2862_s24  ;;  %s3862_s24 = sld [smem:[#allocation3 + $0x3]] }
 0x11e   : > { %v628_v49 = vrot.slane %v472_v35, %v3722_v54 }
 0x11f   : > { %v386_v34 = vpop.xlane.xlu1 %385  ;;  %834 = vrot.lane.b32.xlu1 %v832_v13, %s3355_s30  ;;  %826 = vrot.lane.b32.xlu0 %v824_v18, %s3356_s4  ;;  %v383_v38 = vpop.xlane.xlu0 %382  ;;  %v903_v13 = vstv %s2861_s25  ;;  %s3864_s25 = sld [smem:[#allocation3 + $0x2f]] }
 0x120   : > { %v473_v36 = vmax.f32 %v383_v38, %v386_v34  ;;  %v700_v9 = vsel %vm681_vm8, %v628_v49, %v699_v61 }
 0x122   : > { %v632_v55 = vrot.slane %v473_v36, %v3722_v54 }
 0x123   : > { %v392_v29 = vpop.xlane.xlu1 %391  ;;  %854 = vrot.lane.b32.xlu1 %v852_v39, %s3355_s30  ;;  %846 = vrot.lane.b32.xlu0 %v844_v23, %s3356_s4  ;;  %v389_v30 = vpop.xlane.xlu0 %388 }
 0x124   : > { %v474_v41 = vmax.f32 %v389_v30, %v392_v29  ;;  %v701_v11 = vsel %vm683_vm9, %v632_v55, %v700_v9 }
 0x126   : > { %v636_v60 = vrot.slane %v474_v41, %v3722_v54 }
 0x127   : > { %v398_v43 = vpop.xlane.xlu1 %397  ;;  %v395_v47 = vpop.xlane.xlu0 %394 }
 0x128   : > { %v475_v53 = vmax.f32 %v395_v47, %v398_v43  ;;  %v702_v15 = vsel %vm685_vm10, %v636_v60, %v701_v11 }
 0x12a   : > { %v640_v3 = vrot.slane %v475_v53, %v3722_v54 }
 0x12b   : > { %v404_v4 = vpop.xlane.xlu1 %403  ;;  %v401_v5 = vpop.xlane.xlu0 %400 }
 0x12c   : > { %v476_v10 = vmax.f32 %v401_v5, %v404_v4  ;;  %v703_v17 = vsel %vm687_vm11, %v640_v3, %v702_v15 }
 0x12e   : > { %v644_v16 = vrot.slane %v476_v10, %v3722_v54 }
 0x12f   : > { %v410_v21 = vpop.xlane.xlu1 %409  ;;  %v407_v22 = vpop.xlane.xlu0 %406 }
 0x130   : > { %v704_v26 = vsel %vm689_vm12, %v644_v16, %v703_v17  ;;  %v477_v25 = vmax.f32 %v407_v22, %v410_v21  ;;  %v931_v16 = vstv %s2865_s26  ;;  %v923_v17 = vstv %s2864_s27  ;;  %s3866_s26 = sld [smem:[#allocation3 + $0x2e]]  ;;  %s3873_s27 = sld [smem:[#allocation3 + $0x32]] }
 0x131   : > { %719 = vst.msk [vmem:[#allocation2 + $0x21] sm:$0xff] %vm716_vm13, %v704_v26 }
 0x132   : > { %v648_v42 = vrot.slane %v477_v25, %v3722_v54 }
 0x133   : > { %v416_v28 = vpop.xlane.xlu1 %415  ;;  %v413_v40 = vpop.xlane.xlu0 %412 }
 0x134   : > { %v478_v38 = vmax.f32 %v413_v40, %v416_v28  ;;  %v951_v28 = vstv %s2868_s28  ;;  %v943_v40 = vstv %s2867_s29  ;;  %s3875_s28 = sld [smem:[#allocation3 + $0x31]]  ;;  %s3879_s29 = sld [smem:[#allocation3 + $0x6]] }
 0x136   : > { %v652_v31 = vrot.slane %v478_v38, %v3722_v54  ;;  %v1040_v38 = vstv %s2881_s19  ;;  %s2898_s19 = sld [smem:[#allocation3 + $0x3d]] }
 0x137   : > { %v422_v46 = vpop.xlane.xlu1 %421  ;;  %v419_v50 = vpop.xlane.xlu0 %418 }
 0x138   : > { %v3808_v51 = vld [vmem:[#allocation2 + $0x20] sm:$0xff]  ;;  %v479_v39 = vmax.f32 %v419_v50, %v422_v46  ;;  %v705_v49 = vsel %vm677_vm6, %v652_v31, %v648_v42  ;;  %v971_v50 = vstv %s2871_s5  ;;  %v759_v31 = vstv %s3862_s24  ;;  %s3886_s5 = sld [smem:[#allocation3 + $0x35]]  ;;  %s2901_s24 = sld [smem:[#allocation3 + $0x40]] }
 0x139   : > { %v872_v52 = vmul.f32 %v871_v44, %v3808_v51  ;;  %v864_v56 = vmul.f32 %v863_v45, %v3808_v51  ;;  %v3812_v57 = vld [vmem:[#allocation2 + $0x21] sm:$0xff]  ;;  %v760_v42 = vmul.f32 %v759_v31, %v3744_v20 }
 0x13a   : > { %v892_v6 = vmul.f32 %v891_v58, %v3812_v57  ;;  %v884_v7 = vmul.f32 %v883_v62, %v3812_v57  ;;  %v3818_v8 = vld [vmem:[#allocation2 + $0x22] sm:$0xff]  ;;  %v656_v36 = vrot.slane %v479_v39, %v3722_v54  ;;  %v1000_v62 = vstv %s2875_s7  ;;  %s3895_s7 = sld [smem:[#allocation3 + $0x9]] }
 0x13b   : > { %v428_v0 = vpop.xlane.xlu1 %427  ;;  %874 = vrot.lane.b32.xlu1 %v872_v52, %s3355_s30  ;;  %866 = vrot.lane.b32.xlu0 %v864_v56, %s3356_s4  ;;  %v425_v1 = vpop.xlane.xlu0 %424  ;;  %v912_v33 = vmul.f32 %v911_v12, %v3818_v8  ;;  %v904_v34 = vmul.f32 %v903_v13, %v3818_v8  ;;  %v963_v52 = vstv %s2870_s6  ;;  %v1020_v12 = vstv %s2878_s10  ;;  %s3888_s6 = sld [smem:[#allocation3 + $0x34]]  ;;  %s2896_s10 = sld [smem:[#allocation3 + $0x3b]] }
 0x13c   : > { %v480_v29 = vmax.f32 %v425_v1, %v428_v0  ;;  %v706_v55 = vsel %vm679_vm7, %v656_v36, %v705_v49  ;;  %v992_v0 = vstv %s2874_s8  ;;  %v1001_v1 = vmul.f32 %v1000_v62, %v3740_v14  ;;  %s3899_s8 = sld [smem:[#allocation3 + $0x38]] }
 0x13d   : > { %v1012_v13 = vstv %s2877_s11  ;;  %v1032_v39 = vstv %s2880_s20  ;;  %v1060_v36 = vstv %s3864_s25  ;;  %s2895_s11 = sld [smem:[#allocation3 + $0x3a]]  ;;  %s2902_s20 = sld [smem:[#allocation3 + $0x41]] }
 0x13e   : > { %v660_v43 = vrot.slane %v480_v29, %v3722_v54  ;;  %v1041_v29 = vmul.f32 %v1040_v38, %v3746_v27  ;;  %s2905_s25 = sld [smem:[#allocation3 + $0x44]] }
 0x13f   : > { %v434_v18 = vpop.xlane.xlu1 %433  ;;  %894 = vrot.lane.b32.xlu1 %v892_v6, %s3355_s30  ;;  %886 = vrot.lane.b32.xlu0 %v884_v7, %s3356_s4  ;;  %v431_v32 = vpop.xlane.xlu0 %430  ;;  %v993_v6 = vmul.f32 %v992_v0, %v3740_v14  ;;  %v739_v7 = vstv %s738_s9  ;;  %s3901_s9 = sld [smem:[#allocation3 + $0x37]] }
 0x140   : > { %v481_v30 = vmax.f32 %v431_v32, %v434_v18  ;;  %v707_v3 = vsel %vm681_vm8, %v660_v43, %v706_v55  ;;  %v740_v18 = vmul.f32 %v739_v7, %v3740_v14  ;;  %v1021_v32 = vmul.f32 %v1020_v12, %v3744_v20 }
 0x141   : > { %v1072_v55 = vstv %s3875_s28  ;;  %v1140_v62 = vstv %s2896_s10  ;;  %s2908_s28 = sld [smem:[#allocation3 + $0x47]]  ;;  %s3954_s10 = sld [smem:[#allocation3 + $0x12]] }
 0x142   : > { %v664_v48 = vrot.slane %v481_v30, %v3722_v54  ;;  %v1033_v30 = vmul.f32 %v1032_v39, %v3746_v27 }
 0x143   : > { %v440_v23 = vpop.xlane.xlu1 %439  ;;  %914 = vrot.lane.b32.xlu1 %v912_v33, %s3355_s30  ;;  %906 = vrot.lane.b32.xlu0 %v904_v34, %s3356_s4  ;;  %v437_v24 = vpop.xlane.xlu0 %436  ;;  %v1013_v33 = vmul.f32 %v1012_v13, %v3744_v20  ;;  %v737_v34 = vstv %s736_s17  ;;  %s2899_s17 = sld [smem:[#allocation3 + $0x3e]]  ;;  %v1132_v0 = vstv %s2895_s11  ;;  %s3958_s11 = sld [smem:[#allocation3 + $0x50]] }
 0x144   : > { %v482_v35 = vmax.f32 %v437_v24, %v440_v23  ;;  %v708_v5 = vsel %vm683_vm9, %v664_v48, %v707_v3  ;;  %v741_v23 = vadd.f32 %v740_v18, %v737_v34  ;;  %v1133_v7 = vmul.f32 %v1132_v0, %v3812_v57 }
 0x145   : > { %v1152_v13 = vstv %s2898_s19  ;;  %v1172_v34 = vstv %s2901_s24  ;;  %s2922_s19 = sld [smem:[#allocation3 + $0x53]]  ;;  %s2925_s24 = sld [smem:[#allocation3 + $0x56]] }
 0x146   : > { %v668_v53 = vrot.slane %v482_v35, %v3722_v54 }
 0x147   : > { %v446_v37 = vpop.xlane.xlu1 %445  ;;  %v443_v41 = vpop.xlane.xlu0 %442 }
 0x148   : > { %v483_v47 = vmax.f32 %v443_v41, %v446_v37  ;;  %v709_v9 = vsel %vm685_vm10, %v668_v53, %v708_v5  ;;  %v1052_v37 = vstv %s3866_s26  ;;  %v1080_v53 = vstv %s3873_s27  ;;  %s2904_s26 = sld [smem:[#allocation3 + $0x43]]  ;;  %s2848_s27 = sld [smem:[#allocation3 + $0xc]] }
 0x149   : > { %v1053_v48 = vmul.f32 %v1052_v37, %v3774_v63  ;;  %v1081_v3 = vmul.f32 %v1080_v53, %v3778_v2  ;;  %v1160_v12 = vstv %s2899_s17  ;;  %s3960_s17 = sld [smem:[#allocation3 + $0x4f]] }
 0x14a   : > { %v672_v59 = vrot.slane %v483_v47, %v3722_v54  ;;  %v1061_v47 = vmul.f32 %v1060_v36, %v3774_v63  ;;  %v1161_v18 = vmul.f32 %v1160_v12, %v3818_v8  ;;  %v1220_v36 = vstv %s2908_s28  ;;  %s2931_s28 = sld [smem:[#allocation3 + $0x5c]] }
 0x14b   : > { %v452_v60 = vpop.xlane.xlu1 %451  ;;  %v449_v61 = vpop.xlane.xlu0 %448  ;;  %v1309_v0 = vstv %s2922_s19  ;;  %s4013_s19 = sld [smem:[#allocation3 + $0x1b]] }
 0x14c   : > { %v484_v4 = vmax.f32 %v449_v61, %v452_v60  ;;  %v710_v11 = vsel %vm687_vm11, %v672_v59, %v709_v9  ;;  %v779_v59 = vstv %s3879_s29  ;;  %s2907_s29 = sld [smem:[#allocation3 + $0x46]] }
 0x14d   : > { %v780_v5 = vmul.f32 %v779_v59, %v3746_v27 }
 0x14e   : > { %v676_v10 = vrot.slane %v484_v4, %v3722_v54  ;;  %v1073_v4 = vmul.f32 %v1072_v55, %v3778_v2  ;;  %v819_v31 = vstv %s2848_s27  ;;  %s2927_s27 = sld [smem:[#allocation3 + $0x58]] }
 0x150   : > { %v711_v15 = vsel %vm689_vm12, %v676_v10, %v710_v11  ;;  %v1100_v10 = vstv %s3886_s5  ;;  %v1092_v11 = vstv %s3888_s6  ;;  %s3935_s5 = sld [smem:[#allocation3 + $0x4a]]  ;;  %s3937_s6 = sld [smem:[#allocation3 + $0x49]] }
 0x151   : > { %720 = vst.msk [vmem:[#allocation2 + $0x31] sm:$0xff] %vm716_vm13, %v711_v15 }
 0x152   : > { %v1212_v37 = vstv %s2907_s29  ;;  %s2930_s29 = sld [smem:[#allocation3 + $0x5b]] }
 0x156   : > { %v1249_v53 = vstv %s3935_s5  ;;  %v1241_v55 = vstv %s3937_s6  ;;  %s2857_s5 = sld [smem:[#allocation3 + $0x15]]  ;;  %s2934_s6 = sld [smem:[#allocation3 + $0x5f]] }
 0x158   : > { %v3842_v21 = vld [vmem:[#allocation2 + $0x30] sm:$0xff] }
 0x159   : > { %v932_v22 = vmul.f32 %v931_v16, %v3842_v21  ;;  %v924_v54 = vmul.f32 %v923_v17, %v3842_v21  ;;  %v3846_v26 = vld [vmem:[#allocation2 + $0x31] sm:$0xff]  ;;  %v1101_v17 = vmul.f32 %v1100_v10, %v3784_v19  ;;  %v1173_v39 = vmul.f32 %v1172_v34, %v3842_v21 }
 0x15a   : > { %v952_v44 = vmul.f32 %v951_v28, %v3846_v26  ;;  %v944_v45 = vmul.f32 %v943_v40, %v3846_v26  ;;  %v3852_v46 = vld [vmem:[#allocation2 + $0x32] sm:$0xff]  ;;  %v1120_v40 = vstv %s3899_s8  ;;  %s3945_s8 = sld [smem:[#allocation3 + $0x4d]] }
 0x15b   : > { %934 = vrot.lane.b32.xlu1 %v932_v22, %s3355_s30  ;;  %926 = vrot.lane.b32.xlu0 %v924_v54, %s3356_s4  ;;  %v972_v56 = vmul.f32 %v971_v50, %v3852_v46  ;;  %v964_v58 = vmul.f32 %v963_v52, %v3852_v46  ;;  %v1093_v22 = vmul.f32 %v1092_v11, %v3784_v19  ;;  %v799_v54 = vstv %s3895_s7  ;;  %s3941_s7 = sld [smem:[#allocation3 + $0xf]] }
 0x15c   : > { %v800_v52 = vmul.f32 %v799_v54, %v3774_v63 }
 0x15f   : > { %954 = vrot.lane.b32.xlu1 %v952_v44, %s3355_s30  ;;  %946 = vrot.lane.b32.xlu0 %v944_v45, %s3356_s4  ;;  %v1112_v44 = vstv %s3901_s9  ;;  %s3947_s9 = sld [smem:[#allocation3 + $0x4c]] }
 0x160   : > { %v1269_v11 = vstv %s3945_s8  ;;  %s3994_s8 = sld [smem:[#allocation3 + $0x62]] }
 0x163   : > { %974 = vrot.lane.b32.xlu1 %v972_v56, %s3355_s30  ;;  %966 = vrot.lane.b32.xlu0 %v964_v58, %s3356_s4  ;;  %v1121_v56 = vmul.f32 %v1120_v40, %v3808_v51  ;;  %v1113_v58 = vmul.f32 %v1112_v44, %v3808_v51  ;;  %v1289_v44 = vstv %s3958_s11  ;;  %s4004_s11 = sld [smem:[#allocation3 + $0x65]] }
 0x167   : > { %1003 = vrot.lane.b32.xlu1 %v1001_v1, %s3355_s30  ;;  %995 = vrot.lane.b32.xlu0 %v993_v6, %s3356_s4  ;;  %v1141_v6 = vmul.f32 %v1140_v62, %v3812_v57 }
 0x16b   : > { %1023 = vrot.lane.b32.xlu1 %v1021_v32, %s3355_s30  ;;  %1015 = vrot.lane.b32.xlu0 %v1013_v33, %s3356_s4  ;;  %v1153_v32 = vmul.f32 %v1152_v13, %v3818_v8  ;;  %v1180_v33 = vstv %s2902_s20  ;;  %s2921_s20 = sld [smem:[#allocation3 + $0x52]]  ;;  %v1329_v13 = vstv %s2925_s24  ;;  %s4019_s24 = sld [smem:[#allocation3 + $0x67]] }
 0x16c   : > { %v1181_v38 = vmul.f32 %v1180_v33, %v3842_v21 }
 0x16d   : > { %v755_v24 = vpop.permute.xlu1 %754  ;;  %v747_v25 = vpop.permute.xlu0 %746 }
 0x16e   : > { %v749_v35 = vadd.f32 %v747_v25, %v741_v23  ;;  %v1200_v23 = vstv %s2905_s25  ;;  %s2924_s25 = sld [smem:[#allocation3 + $0x55]] }
 0x16f   : > { %1043 = vrot.lane.b32.xlu1 %v1041_v29, %s3355_s30  ;;  %1035 = vrot.lane.b32.xlu0 %v1033_v30, %s3356_s4  ;;  %v1201_v29 = vmul.f32 %v1200_v23, %v3846_v26 }
 0x170   : > { %v757_v41 = vadd.f32 %v755_v24, %v749_v35  ;;  %v1192_v24 = vstv %s2904_s26  ;;  %s2928_s26 = sld [smem:[#allocation3 + $0x59]] }
 0x171   : > { %v767_v43 = vpop.permute.xlu1 %766  ;;  %v787_v16 = vpop.permute.xlu0 %786  ;;  %v1193_v30 = vmul.f32 %v1192_v24, %v3846_v26  ;;  %v1369_v24 = vstv %s2931_s28  ;;  %s2950_s28 = sld [smem:[#allocation3 + $0x6d]] }
 0x172   : > { %v761_v49 = vadd.f32 %v760_v42, %v757_v41 }
 0x173   : > { %1063 = vrot.lane.b32.xlu1 %v1061_v47, %s3355_s30  ;;  %1055 = vrot.lane.b32.xlu0 %v1053_v48, %s3356_s4  ;;  %v1221_v47 = vmul.f32 %v1220_v36, %v3852_v46  ;;  %v1213_v48 = vmul.f32 %v1212_v37, %v3852_v46  ;;  %v1389_v37 = vstv %s2934_s6  ;;  %s2957_s6 = sld [smem:[#allocation3 + $0x74]] }
 0x174   : > { %v769_v60 = vadd.f32 %v767_v43, %v761_v49  ;;  %v820_v43 = vmul.f32 %v819_v31, %v3778_v2 }
 0x175   : > { %v775_v61 = vpop.permute.xlu1 %774 }
 0x176   : > { %v777_v9 = vadd.f32 %v775_v61, %v769_v60  ;;  %v839_v60 = vstv %s3941_s7  ;;  %v1349_v34 = vstv %s2928_s26  ;;  %s2933_s7 = sld [smem:[#allocation3 + $0x5e]]  ;;  %s2945_s26 = sld [smem:[#allocation3 + $0x6a]] }
 0x177   : > { %1083 = vrot.lane.b32.xlu1 %v1081_v3, %s3355_s30  ;;  %1075 = vrot.lane.b32.xlu0 %v1073_v4, %s3356_s4  ;;  %v1250_v4 = vmul.f32 %v1249_v53, %v3740_v14  ;;  %v840_v10 = vmul.f32 %v839_v60, %v3784_v19 }
 0x178   : > { %v781_v15 = vadd.f32 %v780_v5, %v777_v9  ;;  %v1242_v5 = vmul.f32 %v1241_v55, %v3740_v14  ;;  %v1409_v55 = vstv %s3994_s8  ;;  %s4049_s8 = sld [smem:[#allocation3 + $0x1e]] }
 0x179   : > { %v795_v45 = vpop.permute.xlu1 %794 }
 0x17a   : > { %v789_v28 = vadd.f32 %v787_v16, %v781_v15  ;;  %v1261_v15 = vstv %s3947_s9  ;;  %s3996_s9 = sld [smem:[#allocation3 + $0x61]] }
 0x17b   : > { %1103 = vrot.lane.b32.xlu1 %v1101_v17, %s3355_s30  ;;  %1095 = vrot.lane.b32.xlu0 %v1093_v22, %s3356_s4  ;;  %v1270_v22 = vmul.f32 %v1269_v11, %v3744_v20  ;;  %v1262_v54 = vmul.f32 %v1261_v15, %v3744_v20  ;;  %v1429_v15 = vstv %s4004_s11  ;;  %s4059_s11 = sld [smem:[#allocation3 + $0x24]] }
 0x17c   : > { %v797_v50 = vadd.f32 %v795_v45, %v789_v28  ;;  %v859_v28 = vstv %s3954_s10  ;;  %v1281_v45 = vstv %s3960_s17  ;;  %s4000_s10 = sld [smem:[#allocation3 + $0x18]]  ;;  %s4006_s17 = sld [smem:[#allocation3 + $0x64]] }
 0x17d   : > { %v1282_v62 = vmul.f32 %v1281_v45, %v3746_v27 }
 0x17e   : > { %v801_v1 = vadd.f32 %v800_v52, %v797_v50 }
 0x17f   : > { %1123 = vrot.lane.b32.xlu1 %v1121_v56, %s3355_s30  ;;  %1115 = vrot.lane.b32.xlu0 %v1113_v58, %s3356_s4  ;;  %v860_v56 = vmul.f32 %v859_v28, %v3808_v51  ;;  %v1290_v58 = vmul.f32 %v1289_v44, %v3746_v27 }
 0x183   : > { %1143 = vrot.lane.b32.xlu1 %v1141_v6, %s3355_s30  ;;  %1135 = vrot.lane.b32.xlu0 %v1133_v7, %s3356_s4  ;;  %v1310_v7 = vmul.f32 %v1309_v0, %v3774_v63 }
 0x187   : > { %1163 = vrot.lane.b32.xlu1 %v1161_v18, %s3355_s30  ;;  %1155 = vrot.lane.b32.xlu0 %v1153_v32, %s3356_s4  ;;  %v1321_v18 = vstv %s2924_s25  ;;  %v1330_v32 = vmul.f32 %v1329_v13, %v3778_v2  ;;  %s2946_s25 = sld [smem:[#allocation3 + $0x6b]] }
 0x188   : > { %v1322_v33 = vmul.f32 %v1321_v18, %v3778_v2 }
 0x18b   : > { %1183 = vrot.lane.b32.xlu1 %v1181_v38, %s3355_s30  ;;  %1175 = vrot.lane.b32.xlu0 %v1173_v39, %s3356_s4  ;;  %v1341_v38 = vstv %s2927_s27  ;;  %v1350_v39 = vmul.f32 %v1349_v34, %v3784_v19  ;;  %s2951_s27 = sld [smem:[#allocation3 + $0x6e]] }
 0x18c   : > { %v1342_v23 = vmul.f32 %v1341_v38, %v3784_v19 }
 0x18d   : > { %v807_v25 = vpop.permute.xlu0 %806  ;;  %v815_v41 = vpop.permute.xlu1 %814 }
 0x18e   : > { %v809_v35 = vadd.f32 %v807_v25, %v801_v1  ;;  %v1301_v1 = vstv %s2921_s20  ;;  %v1361_v25 = vstv %s2930_s29  ;;  %s4017_s20 = sld [smem:[#allocation3 + $0x68]]  ;;  %s2954_s29 = sld [smem:[#allocation3 + $0x71]] }
 0x18f   : > { %1203 = vrot.lane.b32.xlu1 %v1201_v29, %s3355_s30  ;;  %1195 = vrot.lane.b32.xlu0 %v1193_v30, %s3356_s4  ;;  %v1302_v12 = vmul.f32 %v1301_v1, %v3774_v63  ;;  %v1370_v30 = vmul.f32 %v1369_v24, %v3808_v51  ;;  %v1362_v31 = vmul.f32 %v1361_v25, %v3808_v51  ;;  %v1469_v1 = vstv %s2946_s25  ;;  %s4076_s25 = sld [smem:[#allocation3 + $0x7d]] }
 0x190   : > { %v817_v42 = vadd.f32 %v815_v41, %v809_v35  ;;  %v879_v35 = vstv %s2857_s5  ;;  %v1381_v41 = vstv %s2933_s7  ;;  %s2953_s5 = sld [smem:[#allocation3 + $0x70]]  ;;  %s2956_s7 = sld [smem:[#allocation3 + $0x73]] }
 0x191   : > { %v827_v59 = vpop.permute.xlu0 %826  ;;  %v835_v3 = vpop.permute.xlu1 %834  ;;  %v1498_v18 = vstv %s2951_s27  ;;  %s4086_s27 = sld [smem:[#allocation3 + $0x27]] }
 0x192   : > { %v821_v49 = vadd.f32 %v820_v43, %v817_v42 }
 0x193   : > { %1223 = vrot.lane.b32.xlu1 %v1221_v47, %s3355_s30  ;;  %1215 = vrot.lane.b32.xlu0 %v1213_v48, %s3356_s4  ;;  %v880_v47 = vmul.f32 %v879_v35, %v3812_v57  ;;  %v1390_v48 = vmul.f32 %v1389_v37, %v3812_v57  ;;  %v939_v35 = vstv %s4049_s8  ;;  %s4119_s8 = sld [smem:[#allocation3 + $0x86]] }
 0x194   : > { %v829_v61 = vadd.f32 %v827_v59, %v821_v49  ;;  %v1382_v49 = vmul.f32 %v1381_v41, %v3812_v57  ;;  %v1401_v59 = vstv %s3996_s9  ;;  %v1449_v45 = vstv %s4017_s20  ;;  %s4051_s9 = sld [smem:[#allocation3 + $0x77]]  ;;  %s4067_s20 = sld [smem:[#allocation3 + $0x21]] }
 0x195   : > { %v847_v17 = vpop.permute.xlu0 %846  ;;  %v855_v50 = vpop.permute.xlu1 %854  ;;  %v1518_v38 = vstv %s2954_s29  ;;  %s4092_s29 = sld [smem:[#allocation3 + $0x7f]] }
 0x196   : > { %v837_v9 = vadd.f32 %v835_v3, %v829_v61  ;;  %v899_v61 = vstv %s4000_s10  ;;  %s4053_s10 = sld [smem:[#allocation3 + $0x76]]  ;;  %v1530_v25 = vstv %s2956_s7  ;;  %s4112_s7 = sld [smem:[#allocation3 + $0x2a]] }
 0x197   : > { %1252 = vrot.lane.b32.xlu1 %v1250_v4, %s3355_s30  ;;  %1244 = vrot.lane.b32.xlu0 %v1242_v5, %s3356_s4  ;;  %v1410_v5 = vmul.f32 %v1409_v55, %v3818_v8  ;;  %v900_v11 = vmul.f32 %v899_v61, %v3818_v8 }
 0x198   : > { %v841_v16 = vadd.f32 %v840_v10, %v837_v9  ;;  %v1402_v9 = vmul.f32 %v1401_v59, %v3818_v8 }
 0x19a   : > { %v849_v40 = vadd.f32 %v847_v17, %v841_v16  ;;  %v1421_v16 = vstv %s4006_s17  ;;  %s4061_s17 = sld [smem:[#allocation3 + $0x7a]]  ;;  %v1558_v37 = vstv %s4051_s9  ;;  %v959_v61 = vstv %s4067_s20  ;;  %s4121_s9 = sld [smem:[#allocation3 + $0x85]] }
 0x19b   : > { %1272 = vrot.lane.b32.xlu1 %v1270_v22, %s3355_s30  ;;  %1264 = vrot.lane.b32.xlu0 %v1262_v54, %s3356_s4  ;;  %v1430_v54 = vmul.f32 %v1429_v15, %v3842_v21  ;;  %v1422_v28 = vmul.f32 %v1421_v16, %v3842_v21  ;;  %s4153_s20 = sld [smem:[#allocation3 + $0x8b]] }
 0x19c   : > { %v857_v52 = vadd.f32 %v855_v50, %v849_v40  ;;  %v919_v40 = vstv %s4013_s19  ;;  %v1441_v50 = vstv %s4019_s24  ;;  %s4063_s19 = sld [smem:[#allocation3 + $0x79]]  ;;  %v1550_v41 = vstv %s4053_s10  ;;  %s4132_s10 = sld [smem:[#allocation3 + $0x2d]] }
 0x19d   : > { %v1442_v0 = vmul.f32 %v1441_v50, %v3846_v26  ;;  %s4072_s24 = sld [smem:[#allocation6 + $0x1]] }
 0x19e   : > { %v861_v6 = vadd.f32 %v860_v56, %v857_v52 }
 0x19f   : > { %1292 = vrot.lane.b32.xlu1 %v1290_v58, %s3355_s30  ;;  %1284 = vrot.lane.b32.xlu0 %v1282_v62, %s3356_s4  ;;  %v920_v58 = vmul.f32 %v919_v40, %v3842_v21  ;;  %v1450_v62 = vmul.f32 %v1449_v45, %v3846_v26 }
 0x1a0   : > { %v1578_v59 = vstv %s4061_s17  ;;  %s4139_s17 = sld [smem:[#allocation3 + $0x88]] }
 0x1a3   : > { %1312 = vrot.lane.b32.xlu1 %v1310_v7, %s3355_s30  ;;  %1304 = vrot.lane.b32.xlu0 %v1302_v12, %s3356_s4  ;;  %v1470_v12 = vmul.f32 %v1469_v1, %v3852_v46  ;;  %v986_v15 = vstv %s4072_s24  ;;  %s4157_s24 = sld [smem:[#allocation3 + $0x30]] }
 0x1a7   : > { %1332 = vrot.lane.b32.xlu1 %v1330_v32, %s3355_s30  ;;  %1324 = vrot.lane.b32.xlu0 %v1322_v33, %s3356_s4  ;;  %v1490_v32 = vstv %s2950_s28  ;;  %v1499_v33 = vmul.f32 %v1498_v18, %v3740_v14  ;;  %s4090_s28 = sld [smem:[#allocation3 + $0x80]] }
 0x1a8   : > { %v1491_v34 = vmul.f32 %v1490_v32, %v3740_v14  ;;  %v1538_v14 = vstv %s2957_s6  ;;  %s4108_s6 = sld [smem:[#allocation3 + $0x82]] }
 0x1ab   : > { %1352 = vrot.lane.b32.xlu1 %v1350_v39, %s3355_s30  ;;  %1344 = vrot.lane.b32.xlu0 %v1342_v23, %s3356_s4  ;;  %v1510_v39 = vstv %s2953_s5  ;;  %v1519_v23 = vmul.f32 %v1518_v38, %v3744_v20  ;;  %s4106_s5 = sld [smem:[#allocation3 + $0x83]] }
 0x1ac   : > { %v1511_v24 = vmul.f32 %v1510_v39, %v3744_v20  ;;  %v1539_v20 = vmul.f32 %v1538_v14, %v3746_v27 }
 0x1ad   : > { %v867_v29 = vpop.permute.xlu0 %866  ;;  %v875_v42 = vpop.permute.xlu1 %874 }
 0x1ae   : > { %v869_v36 = vadd.f32 %v867_v29, %v861_v6  ;;  %v1461_v6 = vstv %s2945_s26  ;;  %s4078_s26 = sld [smem:[#allocation3 + $0x7c]]  ;;  %v1630_v39 = vstv %s4108_s6 }
 0x1af   : > { %1372 = vrot.lane.b32.xlu1 %v1370_v30, %s3355_s30  ;;  %1364 = vrot.lane.b32.xlu0 %v1362_v31, %s3356_s4  ;;  %v1462_v13 = vmul.f32 %v1461_v6, %v3852_v46  ;;  %v1531_v31 = vmul.f32 %v1530_v25, %v3746_v27  ;;  %v940_v27 = vmul.f32 %v939_v35, %v3846_v26  ;;  %v1658_v35 = vstv %s4119_s8  ;;  %s4198_s8 = sld [smem:[#allocation3 + $0x94]] }
 0x1b0   : > { %v877_v43 = vadd.f32 %v875_v42, %v869_v36 }
 0x1b1   : > { %v887_v60 = vpop.permute.xlu0 %886  ;;  %v895_v4 = vpop.permute.xlu1 %894  ;;  %v1638_v38 = vstv %s4106_s5  ;;  %s4182_s5 = sld [smem:[#allocation3 + $0x91]] }
 0x1b2   : > { %v881_v53 = vadd.f32 %v880_v47, %v877_v43  ;;  %v1639_v25 = vmul.f32 %v1638_v38, %v3812_v57 }
 0x1b3   : > { %1392 = vrot.lane.b32.xlu1 %v1390_v48, %s3355_s30  ;;  %1384 = vrot.lane.b32.xlu0 %v1382_v49, %s3356_s4  ;;  %v1559_v48 = vmul.f32 %v1558_v37, %v3774_v63  ;;  %v1551_v49 = vmul.f32 %v1550_v41, %v3774_v63  ;;  %v4097_v63 = vld [vmem:[#allocation2] sm:$0xff]  ;;  %v1048_v41 = vstv %s4132_s10 }
 0x1b4   : > { %v889_v3 = vadd.f32 %v887_v60, %v881_v53  ;;  %v988_v53 = vstv %s4059_s11  ;;  %v1570_v60 = vstv %s4063_s19  ;;  %s4137_s11 = sld [smem:[#allocation3 + $0x89]]  ;;  %s4151_s19 = sld [smem:[#allocation3 + $0x8c]] }
 0x1b5   : > { %v907_v22 = vpop.permute.xlu0 %906  ;;  %v915_v52 = vpop.permute.xlu1 %914 }
 0x1b6   : > { %v897_v10 = vadd.f32 %v895_v4, %v889_v3  ;;  %v989_v4 = vmul.f32 %v4097_v63, %v988_v53 }
 0x1b7   : > { %1412 = vrot.lane.b32.xlu1 %v1410_v5, %s3355_s30  ;;  %1404 = vrot.lane.b32.xlu0 %v1402_v9, %s3356_s4 }
 0x1b8   : > { %v901_v17 = vadd.f32 %v900_v11, %v897_v10  ;;  %v1579_v10 = vmul.f32 %v1578_v59, %v3778_v2  ;;  %v1571_v11 = vmul.f32 %v1570_v60, %v3778_v2 }
 0x1ba   : > { %v909_v44 = vadd.f32 %v907_v22, %v901_v17  ;;  %v960_v17 = vmul.f32 %v959_v61, %v3852_v46  ;;  %v1598_v22 = vstv %s4076_s25  ;;  %s4162_s25 = sld [smem:[#allocation3 + $0x8f]] }
 0x1bb   : > { %1432 = vrot.lane.b32.xlu1 %v1430_v54, %s3355_s30  ;;  %1424 = vrot.lane.b32.xlu0 %v1422_v28, %s3356_s4  ;;  %v1590_v54 = vstv %s4078_s26  ;;  %v990_v28 = vadd.f32 %v989_v4, %v986_v15  ;;  %v1599_v45 = vmul.f32 %v1598_v22, %v3784_v19  ;;  %s4166_s26 = sld [smem:[#allocation3 + $0x8e]]  ;;  %v1068_v15 = vstv %s4157_s24  ;;  %s4233_s24 = sld [smem:[#allocation3 + $0x9a]] }
 0x1bc   : > { %v917_v56 = vadd.f32 %v915_v52, %v909_v44  ;;  %v1591_v50 = vmul.f32 %v1590_v54, %v3784_v19  ;;  %v1008_v52 = vstv %s4086_s27  ;;  %v4127_v19 = vld [vmem:[#allocation2 + $0x1] sm:$0xff]  ;;  %s188_s27 = sand.u32 1, %s3342_s13  }
 0x1bd   : > { %s2834_s6 = sshll.u32 %s188_s27, 6 }
 0x1be   : > { %v921_v7 = vadd.f32 %v920_v58, %v917_v56  ;;  %s4205_s10 = scalar_lea.vmem [#allocation8], %s2834_s6  ;;  %s4270_s6 = sld [smem:[#allocation3 + $0xa1]] }
 0x1bf   : > { %1452 = vrot.lane.b32.xlu1 %v1450_v62, %s3355_s30  ;;  %1444 = vrot.lane.b32.xlu0 %v1442_v0, %s3356_s4  ;;  %v1618_v62 = vstv %s4090_s28  ;;  %v1610_v0 = vstv %s4092_s29  ;;  %s4176_s28 = sld [smem:[#allocation3 + $0x33]]  ;;  %s4180_s29 = sld [smem:[#allocation3 + $0x92]] }
 0x1c0   : > { %v1619_v18 = vmul.f32 %v1618_v62, %v3808_v51  ;;  %v1611_v32 = vmul.f32 %v1610_v0, %v3808_v51 }
 0x1c3   : > { %1472 = vrot.lane.b32.xlu1 %v1470_v12, %s3355_s30  ;;  %1464 = vrot.lane.b32.xlu0 %v1462_v13, %s3356_s4 }
 0x1c7   : > { %1501 = vrot.lane.b32.xlu1 %v1499_v33, %s3355_s30  ;;  %1493 = vrot.lane.b32.xlu0 %v1491_v34, %s3356_s4 }
 0x1cb   : > { %1521 = vrot.lane.b32.xlu1 %v1519_v23, %s3355_s30  ;;  %1513 = vrot.lane.b32.xlu0 %v1511_v24, %s3356_s4  ;;  %v1028_v23 = vstv %s4112_s7  ;;  %s4192_s7 = sld [smem:[#allocation3 + $0x95]] }
 0x1cd   : > { %v935_v29 = vpop.permute.xlu1 %934  ;;  %v927_v30 = vpop.permute.xlu0 %926 }
 0x1ce   : > { %v929_v36 = vadd.f32 %v927_v30, %v921_v7  ;;  %v1009_v7 = vmul.f32 %v4127_v19, %v1008_v52 }
 0x1cf   : > { %1541 = vrot.lane.b32.xlu1 %v1539_v20, %s3355_s30  ;;  %1533 = vrot.lane.b32.xlu0 %v1531_v31, %s3356_s4  ;;  %v4146_v20 = vld [vmem:[#allocation2 + $0x2] sm:$0xff] }
 0x1d0   : > { %v937_v42 = vadd.f32 %v935_v29, %v929_v36  ;;  %v1631_v29 = vmul.f32 %v1630_v39, %v3812_v57  ;;  %v1029_v31 = vmul.f32 %v4146_v20, %v1028_v23  ;;  %v1650_v36 = vstv %s4121_s9  ;;  %s4203_s9 = sld [smem:[#allocation3 + $0x36]] }
 0x1d1   : > { %v955_v43 = vpop.permute.xlu1 %954  ;;  %v947_v47 = vpop.permute.xlu0 %946  ;;  %v1767_v23 = vstv %s4192_s7  ;;  %s4272_s7 = sld [smem:[#allocation3 + $0xa0]] }
 0x1d2   : > { %v941_v55 = vadd.f32 %v940_v27, %v937_v42  ;;  %v1659_v27 = vmul.f32 %v1658_v35, %v3818_v8 }
 0x1d3   : > { %1561 = vrot.lane.b32.xlu1 %v1559_v48, %s3355_s30  ;;  %1553 = vrot.lane.b32.xlu0 %v1551_v49, %s3356_s4  ;;  %v1678_v48 = vstv %s4137_s11  ;;  %v1670_v49 = vstv %s4139_s17  ;;  %s4214_s11 = sld [smem:[#allocation3 + $0x98]]  ;;  %s4216_s17 = sld [smem:[#allocation3 + $0x97]] }
 0x1d4   : > { %v949_v3 = vadd.f32 %v947_v47, %v941_v55  ;;  %v4171_v55 = vld [vmem:[#allocation2 + $0x10] sm:$0xff]  ;;  %v1679_v61 = vmul.f32 %v1678_v48, %v3842_v21 }
 0x1d5   : > { %v975_v5 = vpop.permute.xlu1 %974  ;;  %v967_v9 = vpop.permute.xlu0 %966 }
 0x1d6   : > { %v957_v16 = vadd.f32 %v955_v43, %v949_v3  ;;  %v1651_v43 = vmul.f32 %v1650_v36, %v3818_v8  ;;  %v1049_v8 = vmul.f32 %v4171_v55, %v1048_v41  ;;  %v1671_v3 = vmul.f32 %v1670_v49, %v3842_v21  ;;  %v4246_v36 = vld [vmem:[#allocation2 + $0x20] sm:$0xff] }
 0x1d7   : > { %1581 = vrot.lane.b32.xlu1 %v1579_v10, %s3355_s30  ;;  %1573 = vrot.lane.b32.xlu0 %v1571_v11, %s3356_s4  ;;  %v1690_v10 = vstv %s4153_s20  ;;  %s4231_s20 = sld [smem:[#allocation3 + $0x9b]] }
 0x1d8   : > { %v961_v2 = vadd.f32 %v960_v17, %v957_v16 }
 0x1d9   : > { %v1004_v40 = vpop.permute.xlu1 %1003  ;;  %v996_v44 = vpop.permute.xlu0 %995  ;;  %v1779_v41 = vstv %s4216_s17  ;;  %s4294_s17 = sld [smem:[#allocation3 + $0xa3]] }
 0x1da   : > { %v969_v56 = vadd.f32 %v967_v9, %v961_v2  ;;  %v998_v58 = vadd.f32 %v996_v44, %v990_v28  ;;  %v1698_v9 = vstv %s4151_s19  ;;  %v1691_v2 = vmul.f32 %v1690_v10, %v3846_v26  ;;  %v4194_v44 = vld [vmem:[#allocation2 + $0x11] sm:$0xff]  ;;  %s4225_s19 = sld [smem:[#allocation3 + $0x39]] }
 0x1db   : > { %1601 = vrot.lane.b32.xlu1 %v1599_v45, %s3355_s30  ;;  %1593 = vrot.lane.b32.xlu0 %v1591_v50, %s3356_s4  ;;  %v1699_v54 = vmul.f32 %v1698_v9, %v3846_v26  ;;  %v1718_v28 = vstv %s4162_s25  ;;  %v1069_v45 = vmul.f32 %v4194_v44, %v1068_v15  ;;  %v1710_v50 = vstv %s4166_s26  ;;  %s4244_s25 = sld [smem:[#allocation3 + $0x48]]  ;;  %s4251_s26 = sld [smem:[#allocation3 + $0x9e]] }
 0x1dc   : > { %v4125_v1 = vadd.f32 %v975_v5, %v969_v56  ;;  %v1006_v6 = vadd.f32 %v1004_v40, %v998_v58  ;;  %v1088_v56 = vstv %s4176_s28  ;;  %v1719_v0 = vmul.f32 %v1718_v28, %v3852_v46  ;;  %s4253_s28 = sld [smem:[#allocation3 + $0x9d]] }
 0x1dd   : > { %v1024_v12 = vpop.permute.xlu1 %1023  ;;  %v1016_v13 = vpop.permute.xlu0 %1015  ;;  %v1780_v49 = vmul.f32 %v4146_v20, %v1779_v41 }
 0x1de   : > { %v978_v33 = vmul.f32 0.5, %v4125_v1  ;;  %v1010_v34 = vadd.f32 %v1009_v7, %v1006_v6  ;;  %v1711_v6 = vmul.f32 %v1710_v50, %v3852_v46  ;;  %v1747_v7 = vstv %s4180_s29  ;;  %s4255_s29 = sld [smem:[#allocation3 + $0x3c]] }
 0x1df   : > { %1621 = vrot.lane.b32.xlu1 %v1619_v18, %s3355_s30  ;;  %1613 = vrot.lane.b32.xlu0 %v1611_v32, %s3356_s4  ;;  %v4220_v18 = vld [vmem:[#allocation2 + $0x12] sm:$0xff] }
 0x1e0   : > { %3210 = vtanh.f32 %v978_v33  ;;  %v1018_v51 = vadd.f32 %v1016_v13, %v1010_v34  ;;  %v1089_v32 = vmul.f32 %v4220_v18, %v1088_v56  ;;  %v1748_v34 = vmul.f32 %v4097_v63, %v1747_v7 }
 0x1e1   : > { %v1044_v24 = vpop.permute.xlu1 %1043  ;;  %v1036_v14 = vpop.permute.xlu0 %1035 }
 0x1e2   : > { %v1026_v30 = vadd.f32 %v1024_v12, %v1018_v51  ;;  %v1739_v12 = vstv %s4182_s5  ;;  %v1759_v51 = vstv %s4198_s8  ;;  %s4266_s5 = sld [smem:[#allocation6 + $0x2]]  ;;  %s4279_s8 = sld [smem:[#allocation3 + $0x3f]] }
 0x1e3   : > { %1641 = vrot.lane.b32.xlu1 %v1639_v25, %s3355_s30  ;;  %1633 = vrot.lane.b32.xlu0 %v1631_v29, %s3356_s4  ;;  %v1740_v38 = vmul.f32 %v4097_v63, %v1739_v12 }
 0x1e4   : > { %v1030_v57 = vadd.f32 %v1029_v31, %v1026_v30  ;;  %v1768_v30 = vmul.f32 %v4127_v19, %v1767_v23  ;;  %v1760_v31 = vmul.f32 %v4127_v19, %v1759_v51  ;;  %v4337_v51 = vld [vmem:[#allocation2 + $0x30] sm:$0xff] }
 0x1e5   : > { %v1064_v37 = vpop.permute.xlu1 %1063  ;;  %v1056_v42 = vpop.permute.xlu0 %1055 }
 0x1e6   : > { %v1038_v47 = vadd.f32 %v1036_v14, %v1030_v57 }
 0x1e7   : > { %1661 = vrot.lane.b32.xlu1 %v1659_v27, %s3355_s30  ;;  %1653 = vrot.lane.b32.xlu0 %v1651_v43, %s3356_s4  ;;  %v1128_v27 = vstv %s4225_s19  ;;  %s4313_s19 = sld [smem:[#allocation3 + $0xa7]] }
 0x1e8   : > { %v1046_v53 = vadd.f32 %v1044_v24, %v1038_v47  ;;  %v1108_v24 = vstv %s4203_s9  ;;  %s4288_s9 = sld [smem:[#allocation3 + $0x4b]]  ;;  %v1235_v50 = vstv %s4266_s5  ;;  %s4345_s5 = sld [smem:[#allocation3 + $0x51]] }
 0x1e9   : > { %v1084_v59 = vpop.permute.xlu1 %1083  ;;  %v1076_v60 = vpop.permute.xlu0 %1075  ;;  %v1109_v57 = vmul.f32 %v4246_v36, %v1108_v24 }
 0x1ea   : > { %v3211_v4 = vpop.eup %3210  ;;  %v1050_v5 = vadd.f32 %v1049_v8, %v1046_v53  ;;  %v1807_v8 = vstv %s4231_s20  ;;  %s4315_s20 = sld [smem:[#allocation3 + $0xa6]] }
 0x1eb   : > { %v980_v11 = vadd.f32 1.0, %v3211_v4  ;;  %1681 = vrot.lane.b32.xlu1 %v1679_v61, %s3355_s30  ;;  %1673 = vrot.lane.b32.xlu0 %v1671_v3, %s3356_s4  ;;  %v4276_v61 = vld [vmem:[#allocation2 + $0x21] sm:$0xff]  ;;  %v1808_v9 = vmul.f32 %v4171_v55, %v1807_v8 }
 0x1ec   : > { %v1058_v21 = vadd.f32 %v1056_v42, %v1050_v5  ;;  %v1129_v3 = vmul.f32 %v4276_v61, %v1128_v27 }
 0x1ed   : > { %v981_v16 = vmul.f32 0.5, %v980_v11  ;;  %v1104_v17 = vpop.permute.xlu1 %1103  ;;  %v1096_v22 = vpop.permute.xlu0 %1095  ;;  %v1237_v11 = vstv %s4244_s25  ;;  %s4321_s25 = sld [smem:[#allocation3 + $0x4e]]  ;;  %v1887_v41 = vstv %s4313_s19  ;;  %s4384_s19 = sld [smem:[#allocation3 + $0xb5]] }
 0x1ee   : > { %v1066_v40 = vadd.f32 %v1064_v37, %v1058_v21  ;;  %v1787_v37 = vstv %s4214_s11  ;;  %v1827_v21 = vstv %s4251_s26  ;;  %s4292_s11 = sld [smem:[#allocation3 + $0xa4]]  ;;  %s4327_s26 = sld [smem:[#allocation3 + $0xaa]] }
 0x1ef   : > { %v982_v52 = vmul.f32 %v981_v16, %v4125_v1  ;;  %1701 = vrot.lane.b32.xlu1 %v1699_v54, %s3355_s30  ;;  %1693 = vrot.lane.b32.xlu0 %v1691_v2, %s3356_s4  ;;  %v1788_v48 = vmul.f32 %v4146_v20, %v1787_v37  ;;  %v1819_v16 = vstv %s4253_s28  ;;  %v1238_v54 = vmul.f32 %v4097_v63, %v1237_v11  ;;  %s4329_s28 = sld [smem:[#allocation3 + $0xa9]] }
 0x1f0   : > { %v1070_v26 = vadd.f32 %v1069_v45, %v1066_v40  ;;  %v1828_v40 = vmul.f32 %v4194_v44, %v1827_v21  ;;  %v1820_v45 = vmul.f32 %v4194_v44, %v1819_v16 }
 0x1f1   : > { %984 = vst.msk [vmem:[%s4205_s10] sm:$0xff] %vm983_vm14, %v982_v52  ;;  %v1124_v58 = vpop.permute.xlu1 %1123  ;;  %v1116_v62 = vpop.permute.xlu0 %1115 }
 0x1f2   : > { %v1078_v1 = vadd.f32 %v1076_v60, %v1070_v26  ;;  %v4308_v26 = vld [vmem:[#allocation2 + $0x22] sm:$0xff] }
 0x1f3   : > { %1721 = vrot.lane.b32.xlu1 %v1719_v0, %s3355_s30  ;;  %1713 = vrot.lane.b32.xlu0 %v1711_v6, %s3356_s4  ;;  %v1239_v6 = vadd.f32 %v1238_v54, %v1235_v50 }
 0x1f4   : > { %v1086_v13 = vadd.f32 %v1084_v59, %v1078_v1  ;;  %v1799_v59 = vstv %s4233_s24  ;;  %s4317_s24 = sld [smem:[#allocation3 + $0x42]]  ;;  %v1168_v1 = vstv %s4279_s8  ;;  %s4367_s8 = sld [smem:[#allocation3 + $0xb0]] }
 0x1f5   : > { %v4223_v46 = vpop.permute.xlu1 %1143  ;;  %v1136_v33 = vpop.permute.xlu0 %1135  ;;  %v1800_v10 = vmul.f32 %v4171_v55, %v1799_v59  ;;  %v1169_v24 = vmul.f32 %v4337_v51, %v1168_v1  ;;  %v4389_v1 = vld [vmem:[#allocation2 + $0x32] sm:$0xff] }
 0x1f6   : > { %v1090_v39 = vadd.f32 %v1089_v32, %v1086_v13 }
 0x1f7   : > { %1750 = vrot.lane.b32.xlu1 %v1748_v34, %s3355_s30  ;;  %1742 = vrot.lane.b32.xlu0 %v1740_v38, %s3356_s4  ;;  %v1867_v38 = vstv %s4292_s11  ;;  %s4373_s11 = sld [smem:[#allocation3 + $0x54]] }
 0x1f8   : > { %v1098_v14 = vadd.f32 %v1096_v22, %v1090_v39  ;;  %v1859_v39 = vstv %s4294_s17  ;;  %s4379_s17 = sld [smem:[#allocation3 + $0xd9]] }
 0x1f9   : > { %v4238_v25 = vpop.permute.xlu1 %1163  ;;  %v4240_v29 = vpop.permute.xlu0 %1155 }
 0x1fa   : > { %v1106_v35 = vadd.f32 %v1104_v17, %v1098_v14  ;;  %v1148_v17 = vstv %s4255_s29  ;;  %s4341_s29 = sld [smem:[#allocation3 + $0x45]]  ;;  %v1188_v27 = vstv %s4317_s24  ;;  %s4399_s24 = sld [smem:[#allocation3 + $0xb6]] }
 0x1fb   : > { %1770 = vrot.lane.b32.xlu1 %v1768_v30, %s3355_s30  ;;  %1762 = vrot.lane.b32.xlu0 %v1760_v31, %s3356_s4  ;;  %v1149_v56 = vmul.f32 %v4308_v26, %v1148_v17 }
 0x1fc   : > { %v1110_v42 = vadd.f32 %v1109_v57, %v1106_v35  ;;  %v1868_v35 = vmul.f32 %v4246_v36, %v1867_v38  ;;  %v1860_v57 = vmul.f32 %v4246_v36, %v1859_v39 }
 0x1fd   : > { %v4260_v43 = vpop.permute.xlu1 %1183  ;;  %v4262_v47 = vpop.permute.xlu0 %1175 }
 0x1fe   : > { %v1118_v53 = vadd.f32 %v1116_v62, %v1110_v42  ;;  %v1839_v62 = vstv %s4272_s7  ;;  %v1879_v42 = vstv %s4315_s20  ;;  %s4351_s7 = sld [smem:[#allocation3 + $0xac]]  ;;  %s4395_s20 = sld [smem:[#allocation3 + $0x57]] }
 0x1ff   : > { %1790 = vrot.lane.b32.xlu1 %v1788_v48, %s3355_s30  ;;  %1782 = vrot.lane.b32.xlu0 %v1780_v49, %s3356_s4  ;;  %v1840_v32 = vmul.f32 %v4220_v18, %v1839_v62  ;;  %v1277_v48 = vstv %s4321_s25  ;;  %s4401_s25 = sld [smem:[#allocation3 + $0xfd]] }
 0x200   : > { %v1126_v60 = vadd.f32 %v1124_v58, %v1118_v53  ;;  %v1847_v58 = vstv %s4270_s6  ;;  %s4349_s6 = sld [smem:[#allocation3 + $0xad]] }
 0x201   : > { %v4281_v4 = vpop.permute.xlu1 %1203  ;;  %v4283_v5 = vpop.permute.xlu0 %1195  ;;  %v1848_v13 = vmul.f32 %v4220_v18, %v1847_v58 }
 0x202   : > { %v1130_v15 = vadd.f32 %v1129_v3, %v1126_v60  ;;  %v1888_v60 = vmul.f32 %v4276_v61, %v1887_v41  ;;  %v1880_v3 = vmul.f32 %v4276_v61, %v1879_v42  ;;  %v1988_v42 = vstv %s4384_s19  ;;  %s4464_s19 = sld [smem:[#allocation3 + $0xdd]] }
 0x203   : > { %1810 = vrot.lane.b32.xlu1 %v1808_v9, %s3355_s30  ;;  %1802 = vrot.lane.b32.xlu0 %v1800_v10, %s3356_s4  ;;  %v1907_v9 = vstv %s4327_s26  ;;  %v1899_v10 = vstv %s4329_s28  ;;  %s4415_s26 = sld [smem:[#allocation3 + $0xfe]]  ;;  %s4417_s28 = sld [smem:[#allocation3 + $0xda]] }
 0x204   : > { %v1138_v22 = vadd.f32 %v1136_v33, %v1130_v15  ;;  %v4363_v15 = vld [vmem:[#allocation2 + $0x31] sm:$0xff]  ;;  %v1908_v50 = vmul.f32 %v4308_v26, %v1907_v9 }
 0x205   : > { %v4300_v2 = vpop.permute.xlu1 %1223  ;;  %v4302_v28 = vpop.permute.xlu0 %1215  ;;  %v1189_v21 = vmul.f32 %v4363_v15, %v1188_v27  ;;  %v1337_v27 = vstv %s4395_s20  ;;  %s4466_s20 = sld [smem:[#allocation3 + $0x60]] }
 0x206   : > { %v1146_v52 = vadd.f32 %v4223_v46, %v1138_v22  ;;  %v1257_v46 = vstv %s4288_s9  ;;  %s4369_s9 = sld [smem:[#allocation3 + $0xaf]]  ;;  %v1208_v22 = vstv %s4341_s29  ;;  %v1927_v62 = vstv %s4349_s6  ;;  %s4421_s29 = sld [smem:[#allocation3 + $0x5a]] }
 0x207   : > { %1830 = vrot.lane.b32.xlu1 %v1828_v40, %s3355_s30  ;;  %1822 = vrot.lane.b32.xlu0 %v1820_v45, %s3356_s4  ;;  %v1258_v30 = vmul.f32 %v4127_v19, %v1257_v46  ;;  %v1297_v40 = vstv %s4345_s5  ;;  %v1928_v46 = vmul.f32 %v4337_v51, %v1927_v62  ;;  %s4429_s5 = sld [smem:[#allocation3 + $0xdc]]  ;;  %s4431_s6 = sld [smem:[#allocation3 + $0xb8]] }
 0x208   : > { %v1150_v0 = vadd.f32 %v1149_v56, %v1146_v52  ;;  %v1900_v52 = vmul.f32 %v4308_v26, %v1899_v10  ;;  %v1338_v10 = vmul.f32 %v4220_v18, %v1337_v27 }
 0x209   : > { %v1253_v7 = vpop.permute.xlu1 %1252  ;;  %v1245_v12 = vpop.permute.xlu0 %1244 }
 0x20a   : > { %v1158_v33 = vadd.f32 %v4240_v29, %v1150_v0  ;;  %v1247_v34 = vadd.f32 %v1245_v12, %v1239_v6  ;;  %v1919_v0 = vstv %s4351_s7  ;;  %s4438_s7 = sld [smem:[#allocation3 + $0x5d]] }
 0x20b   : > { %1850 = vrot.lane.b32.xlu1 %v1848_v13, %s3355_s30  ;;  %1842 = vrot.lane.b32.xlu0 %v1840_v32, %s3356_s4 }
 0x20c   : > { %v1166_v23 = vadd.f32 %v4238_v25, %v1158_v33  ;;  %v1255_v14 = vadd.f32 %v1253_v7, %v1247_v34  ;;  %v1209_v7 = vmul.f32 %v4389_v1, %v1208_v22  ;;  %v1920_v33 = vmul.f32 %v4337_v51, %v1919_v0 }
 0x20d   : > { %v1273_v29 = vpop.permute.xlu1 %1272  ;;  %v1265_v31 = vpop.permute.xlu0 %1264  ;;  %v1939_v39 = vstv %s4369_s9  ;;  %v2245_v22 = vstv %s4417_s28  ;;  %s4446_s9 = sld [smem:[#allocation3 + $0x100]]  ;;  %v2257_v0 = vstv %s4429_s5  ;;  %s4489_s28 = sld [smem:[#allocation3 + $0x63]] }
 0x20e   : > { %v1170_v25 = vadd.f32 %v1169_v24, %v1166_v23  ;;  %v1259_v37 = vadd.f32 %v1258_v30, %v1255_v14  ;;  %v1317_v23 = vstv %s4373_s11  ;;  %s4457_s11 = sld [smem:[#allocation3 + $0x6c]] }
 0x20f   : > { %1870 = vrot.lane.b32.xlu1 %v1868_v35, %s3355_s30  ;;  %1862 = vrot.lane.b32.xlu0 %v1860_v57, %s3356_s4  ;;  %v1940_v35 = vmul.f32 %v4363_v15, %v1939_v39  ;;  %v2237_v57 = vstv %s4379_s17  ;;  %v1318_v41 = vmul.f32 %v4194_v44, %v1317_v23  ;;  %s4462_s17 = sld [smem:[#allocation3 + $0x101]]  ;;  %s4502_s5 = sld [smem:[#allocation3 + $0xbc]] }
 0x210   : > { %v1178_v49 = vadd.f32 %v4262_v47, %v1170_v25  ;;  %v1267_v53 = vadd.f32 %v1265_v31, %v1259_v37  ;;  %v1278_v47 = vmul.f32 %v4146_v20, %v1277_v48 }
 0x211   : > { %v1293_v8 = vpop.permute.xlu1 %1292  ;;  %v1285_v59 = vpop.permute.xlu0 %1284 }
 0x212   : > { %v1186_v11 = vadd.f32 %v4260_v43, %v1178_v49  ;;  %v1275_v16 = vadd.f32 %v1273_v29, %v1267_v53  ;;  %v2238_v53 = vmul.f32 %v4097_v63, %v2237_v57 }
 0x213   : > { %1890 = vrot.lane.b32.xlu1 %v1888_v60, %s3355_s30  ;;  %1882 = vrot.lane.b32.xlu0 %v1880_v3, %s3356_s4  ;;  %v1996_v60 = vstv %s4399_s24  ;;  %v2486_v3 = vstv %s4401_s25  ;;  %s4477_s24 = sld [smem:[#allocation6 + $0x3]]  ;;  %s4481_s25 = sld [smem:[#allocation3 + $0xdf]] }
 0x214   : > { %v1190_v43 = vadd.f32 %v1189_v21, %v1186_v11  ;;  %v1279_v17 = vadd.f32 %v1278_v47, %v1275_v16  ;;  %v1997_v16 = vmul.f32 %v4097_v63, %v1996_v60  ;;  %v2487_v47 = vmul.f32 %v4097_v63, %v2486_v3 }
 0x215   : > { %v1313_v54 = vpop.permute.xlu1 %1312  ;;  %v1305_v45 = vpop.permute.xlu0 %1304  ;;  %v2506_v39 = vstv %s4446_s9  ;;  %s4527_s9 = sld [smem:[#allocation3 + $0x66]] }
 0x216   : > { %v1198_v56 = vadd.f32 %v4283_v5, %v1190_v43  ;;  %v1287_v58 = vadd.f32 %v1285_v59, %v1279_v17  ;;  %v1298_v5 = vmul.f32 %v4171_v55, %v1297_v40  ;;  %v2494_v17 = vstv %s4415_s26  ;;  %s4483_s26 = sld [smem:[#allocation3 + $0xbb]] }
 0x217   : > { %1910 = vrot.lane.b32.xlu1 %v1908_v50, %s3355_s30  ;;  %1902 = vrot.lane.b32.xlu0 %v1900_v52, %s3356_s4  ;;  %v2495_v52 = vmul.f32 %v4097_v63, %v2494_v17  ;;  %v2507_v57 = vmul.f32 %v4127_v19, %v2506_v39 }
 0x218   : > { %v1206_v6 = vadd.f32 %v4281_v4, %v1198_v56  ;;  %v1295_v12 = vadd.f32 %v1293_v8, %v1287_v58  ;;  %v1947_v4 = vstv %s4367_s8  ;;  %v1989_v8 = vmul.f32 %v4097_v63, %v1988_v42  ;;  %s4444_s8 = sld [smem:[#allocation3 + $0xb9]] }
 0x219   : > { %v1333_v13 = vpop.permute.xlu1 %1332  ;;  %v1325_v32 = vpop.permute.xlu0 %1324  ;;  %v1948_v31 = vmul.f32 %v4363_v15, %v1947_v4  ;;  %v2246_v56 = vmul.f32 %v4097_v63, %v2245_v22  ;;  %v2514_v42 = vstv %s4462_s17  ;;  %s4537_s17 = sld [smem:[#allocation3 + $0xe2]] }
 0x21a   : > { %v1210_v34 = vadd.f32 %v1209_v7, %v1206_v6  ;;  %v1299_v38 = vadd.f32 %v1298_v5, %v1295_v12  ;;  %v2008_v6 = vstv %s4431_s6  ;;  %s4504_s6 = sld [smem:[#allocation3 + $0x103]] }
 0x21b   : > { %1930 = vrot.lane.b32.xlu1 %v1928_v46, %s3355_s30  ;;  %1922 = vrot.lane.b32.xlu0 %v1920_v33, %s3356_s4  ;;  %v2258_v33 = vmul.f32 %v4127_v19, %v2257_v0 }
 0x21c   : > { %v1218_v24 = vadd.f32 %v4302_v28, %v1210_v34  ;;  %v1307_v14 = vadd.f32 %v1305_v45, %v1299_v38  ;;  %v2009_v34 = vmul.f32 %v4127_v19, %v2008_v6 }
 0x21d   : > { %v1353_v30 = vpop.permute.xlu1 %1352  ;;  %v1345_v29 = vpop.permute.xlu0 %1344 }
 0x21e   : > { %v4411_v25 = vadd.f32 %v4300_v2, %v1218_v24  ;;  %v1315_v37 = vadd.f32 %v1313_v54, %v1307_v14  ;;  %v1357_v54 = vstv %s4421_s29  ;;  %v2016_v4 = vstv %s4444_s8  ;;  %s4498_s29 = sld [smem:[#allocation3 + $0x6f]]  ;;  %s4525_s8 = sld [smem:[#allocation3 + $0xe0]] }
 0x21f   : > { %1950 = vrot.lane.b32.xlu1 %v1948_v31, %s3355_s30  ;;  %1942 = vrot.lane.b32.xlu0 %v1940_v35, %s3356_s4  ;;  %v1358_v62 = vmul.f32 %v4246_v36, %v1357_v54  ;;  %v2017_v35 = vmul.f32 %v4127_v19, %v2016_v4 }
 0x220   : > { %v1227_v28 = vmul.f32 0.5, %v4411_v25  ;;  %v1319_v2 = vadd.f32 %v1318_v41, %v1315_v37  ;;  %v1486_v37 = vstv %s4457_s11  ;;  %s4531_s11 = sld [smem:[#allocation3 + $0x72]] }
 0x221   : > { %v1373_v48 = vpop.permute.xlu1 %1372  ;;  %v1365_v49 = vpop.permute.xlu0 %1364  ;;  %v1487_v27 = vmul.f32 %v4097_v63, %v1486_v37 }
 0x222   : > { %3212 = vtanh.f32 %v1227_v28  ;;  %v1327_v59 = vadd.f32 %v1325_v32, %v1319_v2  ;;  %v2265_v28 = vstv %s4464_s19  ;;  %s4539_s19 = sld [smem:[#allocation3 + $0xbe]] }
 0x223   : > { %2240 = vrot.lane.b32.xlu1 %v2238_v53, %s3356_s4  ;;  %1991 = vrot.lane.b32.xlu0 %v1989_v8, %s3356_s4  ;;  %v2515_v53 = vmul.f32 %v4127_v19, %v2514_v42  ;;  %v2266_v8 = vmul.f32 %v4127_v19, %v2265_v28 }
 0x224   : > { %v1335_v9 = vadd.f32 %v1333_v13, %v1327_v59  ;;  %v1377_v13 = vstv %s4438_s7  ;;  %v1484_v59 = vstv %s4477_s24  ;;  %s4523_s7 = sld [smem:[#allocation3 + $0x104]]  ;;  %v1506_v22 = vstv %s4498_s29  ;;  %s4553_s24 = sld [smem:[#allocation3 + $0x75]] }
 0x225   : > { %v4436_v11 = vpop.permute.xlu1 %1392  ;;  %v1385_v21 = vpop.permute.xlu0 %1384  ;;  %v1378_v14 = vmul.f32 %v4276_v61, %v1377_v13  ;;  %v1507_v6 = vmul.f32 %v4127_v19, %v1506_v22  ;;  %v1437_v19 = vstv %s4527_s9  ;;  %s4575_s29 = sld [smem:[#allocation3 + $0xe3]]  ;;  %s4603_s9 = sld [smem:[#allocation3 + $0xc2]] }
 0x226   : > { %v1339_v43 = vadd.f32 %v1338_v10, %v1335_v9  ;;  %v2277_v9 = vstv %s4481_s25  ;;  %v2028_v10 = vstv %s4483_s26  ;;  %s4557_s25 = sld [smem:[#allocation3 + $0xbf]]  ;;  %s4559_s26 = sld [smem:[#allocation3 + $0x106]] }
 0x227   : > { %1999 = vrot.lane.b32.xlu1 %v1997_v16, %s3355_s30  ;;  %2489 = vrot.lane.b32.xlu0 %v2487_v47, %s3356_s4  ;;  %v2029_v17 = vmul.f32 %v4146_v20, %v2028_v10 }
 0x228   : > { %v1347_v40 = vadd.f32 %v1345_v29, %v1339_v43  ;;  %v2278_v43 = vmul.f32 %v4146_v20, %v2277_v9 }
 0x229   : > { %v4451_v45 = vpop.permute.xlu1 %1412  ;;  %v4453_v50 = vpop.permute.xlu0 %1404 }
 0x22a   : > { %v1355_v58 = vadd.f32 %v1353_v30, %v1347_v40 }
 0x22b   : > { %2497 = vrot.lane.b32.xlu1 %v2495_v52, %s3355_s30  ;;  %2248 = vrot.lane.b32.xlu0 %v2246_v56, %s3355_s30  ;;  %v2036_v52 = vstv %s4502_s5  ;;  %v2526_v56 = vstv %s4504_s6  ;;  %s4579_s5 = sld [smem:[#allocation3 + $0x78]]  ;;  %s4585_s6 = sld [smem:[#allocation3 + $0xe5]] }
 0x22c   : > { %v3213_v7 = vpop.eup %3212  ;;  %v1359_v12 = vadd.f32 %v1358_v62, %v1355_v58  ;;  %v2546_v9 = vstv %s4559_s26  ;;  %s4642_s26 = sld [smem:[#allocation3 + $0x81]] }
 0x22d   : > { %v1229_v5 = vadd.f32 1.0, %v3213_v7  ;;  %v4471_v32 = vpop.permute.xlu1 %1432  ;;  %v4473_v46 = vpop.permute.xlu0 %1424 }
 0x22e   : > { %v1367_v38 = vadd.f32 %v1365_v49, %v1359_v12  ;;  %v2037_v12 = vmul.f32 %v4146_v20, %v2036_v52 }
 0x22f   : > { %v1230_v23 = vmul.f32 0.5, %v1229_v5  ;;  %2260 = vrot.lane.b32.xlu1 %v2258_v33, %s3356_s4  ;;  %2011 = vrot.lane.b32.xlu0 %v2009_v34, %s3356_s4  ;;  %v2527_v5 = vmul.f32 %v4146_v20, %v2526_v56  ;;  %v2534_v33 = vstv %s4523_s7  ;;  %v2285_v34 = vstv %s4525_s8  ;;  %s4590_s7 = sld [smem:[#allocation3 + $0xc1]]  ;;  %s4599_s8 = sld [smem:[#allocation3 + $0x7b]] }
 0x230   : > { %v1375_v24 = vadd.f32 %v1373_v48, %v1367_v38  ;;  %v1526_v38 = vstv %s4531_s11  ;;  %s4605_s11 = sld [smem:[#allocation3 + $0x109]] }
 0x231   : > { %v1231_v30 = vmul.f32 %v1230_v23, %v4411_v25  ;;  %v4491_v29 = vpop.permute.xlu1 %1452  ;;  %v4493_v31 = vpop.permute.xlu0 %1444  ;;  %v1397_v25 = vstv %s4466_s20  ;;  %s4549_s20 = sld [smem:[#allocation3 + $0x69]]  ;;  %v1527_v28 = vmul.f32 %v4146_v20, %v1526_v38 }
 0x232   : > { %v1379_v41 = vadd.f32 %v1378_v14, %v1375_v24  ;;  %v1398_v3 = vmul.f32 %v4308_v26, %v1397_v25  ;;  %v2535_v14 = vmul.f32 %v4146_v20, %v2534_v33 }
 0x233   : > { %2909 = vst.msk [vmem:[%s4205_s10 + $0x8] sm:$0xff] %vm983_vm14, %v1231_v30  ;;  %2019 = vrot.lane.b32.xlu1 %v2017_v35, %s3355_s30  ;;  %2509 = vrot.lane.b32.xlu0 %v2507_v57, %s3356_s4  ;;  %v2286_v30 = vmul.f32 %v4146_v20, %v2285_v34  ;;  %v2297_v35 = vstv %s4537_s17  ;;  %s4619_s17 = sld [smem:[#allocation3 + $0x10a]] }
 0x234   : > { %v1387_v2 = vadd.f32 %v1385_v21, %v1379_v41  ;;  %v1417_v21 = vstv %s4489_s28  ;;  %v2048_v57 = vstv %s4539_s19  ;;  %v1438_v41 = vmul.f32 %v4363_v15, %v1437_v19  ;;  %s4573_s28 = sld [smem:[#allocation3 + $0x107]]  ;;  %s4621_s19 = sld [smem:[#allocation3 + $0xe6]] }
 0x235   : > { %v4512_v48 = vpop.permute.xlu1 %1472  ;;  %v4514_v49 = vpop.permute.xlu0 %1464  ;;  %v1418_v62 = vmul.f32 %v4337_v51, %v1417_v21  ;;  %v2298_v20 = vmul.f32 %v4171_v55, %v2297_v35 }
 0x236   : > { %v1395_v60 = vadd.f32 %v4436_v11, %v1387_v2  ;;  %v1488_v11 = vadd.f32 %v1487_v27, %v1484_v59  ;;  %v1546_v27 = vstv %s4553_s24  ;;  %s4633_s24 = sld [smem:[#allocation3 + $0xe8]] }
 0x237   : > { %2517 = vrot.lane.b32.xlu1 %v2515_v53, %s3355_s30  ;;  %2268 = vrot.lane.b32.xlu0 %v2266_v8, %s3355_s30  ;;  %v2049_v8 = vmul.f32 %v4171_v55, %v2048_v57  ;;  %v1547_v21 = vmul.f32 %v4171_v55, %v1546_v27 }
 0x238   : > { %v1399_v63 = vadd.f32 %v1398_v3, %v1395_v60  ;;  %v2056_v3 = vstv %s4557_s25  ;;  %s4635_s25 = sld [smem:[#allocation3 + $0xc4]] }
 0x239   : > { %v1502_v16 = vpop.permute.xlu1 %1501  ;;  %v1494_v47 = vpop.permute.xlu0 %1493 }
 0x23a   : > { %v1407_v54 = vadd.f32 %v4453_v50, %v1399_v63  ;;  %v1496_v40 = vadd.f32 %v1494_v47, %v1488_v11  ;;  %v2057_v47 = vmul.f32 %v4171_v55, %v2056_v3 }
 0x23b   : > { %2280 = vrot.lane.b32.xlu1 %v2278_v43, %s3356_s4  ;;  %2031 = vrot.lane.b32.xlu0 %v2029_v17, %s3356_s4  ;;  %v2547_v43 = vmul.f32 %v4171_v55, %v2546_v9  ;;  %v1626_v9 = vstv %s4642_s26  ;;  %s4729_s26 = sld [smem:[#allocation3 + $0x110]] }
 0x23c   : > { %v1415_v58 = vadd.f32 %v4451_v45, %v1407_v54  ;;  %v1504_v0 = vadd.f32 %v1502_v16, %v1496_v40  ;;  %v2554_v54 = vstv %s4573_s28  ;;  %v2305_v40 = vstv %s4575_s29  ;;  %s4648_s28 = sld [smem:[#allocation3 + $0xc5]]  ;;  %s4650_s29 = sld [smem:[#allocation3 + $0x10c]] }
 0x23d   : > { %v1522_v50 = vpop.permute.xlu1 %1521  ;;  %v1514_v7 = vpop.permute.xlu0 %1513 }
 0x23e   : > { %v1419_v13 = vadd.f32 %v1418_v62, %v1415_v58  ;;  %v1508_v45 = vadd.f32 %v1507_v6, %v1504_v0  ;;  %v2555_v0 = vmul.f32 %v4171_v55, %v2554_v54  ;;  %v2306_v6 = vmul.f32 %v4171_v55, %v2305_v40 }
 0x23f   : > { %2039 = vrot.lane.b32.xlu1 %v2037_v12, %s3355_s30  ;;  %2529 = vrot.lane.b32.xlu0 %v2527_v5, %s3356_s4 }
 0x240   : > { %v1427_v4 = vadd.f32 %v4473_v46, %v1419_v13  ;;  %v1516_v39 = vadd.f32 %v1514_v7, %v1508_v45  ;;  %v2068_v13 = vstv %s4590_s7  ;;  %s4668_s7 = sld [smem:[#allocation3 + $0xe9]] }
 0x241   : > { %v1542_v23 = vpop.permute.xlu1 %1541  ;;  %v1534_v24 = vpop.permute.xlu0 %1533  ;;  %v2069_v19 = vmul.f32 %v4194_v44, %v2068_v13 }
 0x242   : > { %v1435_v37 = vadd.f32 %v4471_v32, %v1427_v4  ;;  %v1524_v42 = vadd.f32 %v1522_v50, %v1516_v39  ;;  %v1457_v32 = vstv %s4549_s20  ;;  %v2317_v50 = vstv %s4585_s6  ;;  %s4625_s20 = sld [smem:[#allocation3 + $0x7e]]  ;;  %s4666_s6 = sld [smem:[#allocation3 + $0x10d]] }
 0x243   : > { %2537 = vrot.lane.b32.xlu1 %v2535_v14, %s3355_s30  ;;  %2288 = vrot.lane.b32.xlu0 %v2286_v30, %s3355_s30  ;;  %v1458_v63 = vmul.f32 %v4389_v1, %v1457_v32  ;;  %v2318_v34 = vmul.f32 %v4194_v44, %v2317_v50  ;;  %v2076_v4 = vstv %s4603_s9  ;;  %v2566_v39 = vstv %s4605_s11  ;;  %s4681_s9 = sld [smem:[#allocation6 + $0x4]]  ;;  %s4685_s11 = sld [smem:[#allocation3 + $0xeb]] }
 0x244   : > { %v1439_v46 = vadd.f32 %v1438_v41, %v1435_v37  ;;  %v1528_v25 = vadd.f32 %v1527_v28, %v1524_v42  ;;  %v2077_v35 = vmul.f32 %v4194_v44, %v2076_v4  ;;  %v2567_v57 = vmul.f32 %v4194_v44, %v2566_v39 }
 0x245   : > { %v1562_v2 = vpop.permute.xlu1 %1561  ;;  %v1554_v53 = vpop.permute.xlu0 %1553  ;;  %v2574_v41 = vstv %s4619_s17  ;;  %v2325_v42 = vstv %s4621_s19  ;;  %s4687_s17 = sld [smem:[#allocation3 + $0xc7]] }
 0x246   : > { %v1447_v59 = vadd.f32 %v4493_v31, %v1439_v46  ;;  %v1536_v60 = vadd.f32 %v1534_v24, %v1528_v25  ;;  %v2326_v27 = vmul.f32 %v4194_v44, %v2325_v42  ;;  %s4693_s19 = sld [smem:[#allocation3 + $0x87]] }
 0x247   : > { %2300 = vrot.lane.b32.xlu1 %v2298_v20, %s3356_s4  ;;  %2051 = vrot.lane.b32.xlu0 %v2049_v8, %s3356_s4  ;;  %v2337_v8 = vstv %s4633_s24  ;;  %s4706_s24 = sld [smem:[#allocation3 + $0xc8]] }
 0x248   : > { %v1455_v10 = vadd.f32 %v4491_v29, %v1447_v59  ;;  %v1544_v11 = vadd.f32 %v1542_v23, %v1536_v60  ;;  %v1566_v29 = vstv %s4579_s5  ;;  %v1606_v28 = vstv %s4625_s20  ;;  %s4661_s5 = sld [smem:[#allocation3 + $0x90]]  ;;  %s4702_s20 = sld [smem:[#allocation3 + $0x93]] }
 0x249   : > { %v1582_v31 = vpop.permute.xlu1 %1581  ;;  %v1574_v16 = vpop.permute.xlu0 %1573  ;;  %v1567_v5 = vmul.f32 %v4194_v44, %v1566_v29  ;;  %v1607_v20 = vmul.f32 %v4246_v36, %v1606_v28  ;;  %v2088_v59 = vstv %s4635_s25  ;;  %s4708_s25 = sld [smem:[#allocation3 + $0x10f]] }
 0x24a   : > { %v1459_v17 = vadd.f32 %v1458_v63, %v1455_v10  ;;  %v1548_v22 = vadd.f32 %v1547_v21, %v1544_v11  ;;  %v2338_v11 = vmul.f32 %v4220_v18, %v2337_v8  ;;  %v2089_v21 = vmul.f32 %v4220_v18, %v2088_v59 }
 0x24b   : > { %2059 = vrot.lane.b32.xlu1 %v2057_v47, %s3355_s30  ;;  %2549 = vrot.lane.b32.xlu0 %v2547_v43, %s3356_s4  ;;  %v2586_v47 = vstv %s4650_s29  ;;  %s4733_s29 = sld [smem:[#allocation3 + $0x8a]]  ;;  %v2614_v59 = vstv %s4729_s26  ;;  %s4800_s26 = sld [smem:[#allocation3 + $0xcd]] }
 0x24c   : > { %v1467_v52 = vadd.f32 %v4514_v49, %v1459_v17  ;;  %v1556_v56 = vadd.f32 %v1554_v53, %v1548_v22  ;;  %v1586_v49 = vstv %s4599_s8  ;;  %s4670_s8 = sld [smem:[#allocation3 + $0x84]]  ;;  %v1627_v22 = vmul.f32 %v4276_v61, %v1626_v9 }
 0x24d   : > { %v1602_v58 = vpop.permute.xlu1 %1601  ;;  %v1594_v62 = vpop.permute.xlu0 %1593  ;;  %v1587_v24 = vmul.f32 %v4220_v18, %v1586_v49 }
 0x24e   : > { %v4615_v7 = vadd.f32 %v4512_v48, %v1467_v52  ;;  %v1564_v12 = vadd.f32 %v1562_v2, %v1556_v56  ;;  %v2575_v2 = vmul.f32 %v4194_v44, %v2574_v41  ;;  %v2587_v56 = vmul.f32 %v4220_v18, %v2586_v47 }
 0x24f   : > { %2557 = vrot.lane.b32.xlu1 %v2555_v0, %s3355_s30  ;;  %2308 = vrot.lane.b32.xlu0 %v2306_v6, %s3355_s30  ;;  %v2594_v0 = vstv %s4666_s6  ;;  %v2345_v6 = vstv %s4668_s7  ;;  %s4743_s6 = sld [smem:[#allocation3 + $0xee]]  ;;  %s4745_s7 = sld [smem:[#allocation3 + $0xca]] }
 0x250   : > { %v1476_v55 = vmul.f32 0.5, %v4615_v7  ;;  %v1568_v48 = vadd.f32 %v1567_v5, %v1564_v12  ;;  %v4715_v12 = vld [vmem:[#allocation2] sm:$0xff]  ;;  %v2346_v49 = vmul.f32 %v4220_v18, %v2345_v6  ;;  %v2606_v41 = vstv %s4708_s25  ;;  %s4795_s25 = sld [smem:[#allocation3 + $0xf1]] }
 0x251   : > { %v1622_v45 = vpop.permute.xlu1 %1621  ;;  %v1614_v33 = vpop.permute.xlu0 %1613  ;;  %v2607_v8 = vmul.f32 %v4246_v36, %v2606_v41 }
 0x252   : > { %3214 = vtanh.f32 %v1476_v55  ;;  %v1576_v38 = vadd.f32 %v1574_v16, %v1568_v48  ;;  %v2096_v16 = vstv %s4648_s28  ;;  %v1646_v50 = vstv %s4670_s8  ;;  %s4731_s28 = sld [smem:[#allocation3 + $0xec]]  ;;  %s4757_s8 = sld [smem:[#allocation3 + $0x8d]] }
 0x253   : > { %2320 = vrot.lane.b32.xlu1 %v2318_v34, %s3356_s4  ;;  %2071 = vrot.lane.b32.xlu0 %v2069_v19, %s3356_s4  ;;  %v2097_v52 = vmul.f32 %v4220_v18, %v2096_v16  ;;  %v2595_v48 = vmul.f32 %v4220_v18, %v2594_v0  ;;  %v1647_v34 = vmul.f32 %v4308_v26, %v1646_v50  ;;  %v2357_v19 = vstv %s4685_s11  ;;  %s4765_s11 = sld [smem:[#allocation3 + $0xcb]] }
 0x254   : > { %v1584_v23 = vadd.f32 %v1582_v31, %v1576_v38  ;;  %v2108_v38 = vstv %s4687_s17  ;;  %v1666_v26 = vstv %s4693_s19  ;;  %s4767_s17 = sld [smem:[#allocation3 + $0x112]]  ;;  %v2615_v16 = vmul.f32 %v4246_v36, %v2614_v59  ;;  %s4783_s19 = sld [smem:[#allocation3 + $0x113]] }
 0x255   : > { %v4640_v14 = vpop.permute.xlu1 %1641  ;;  %v1634_v30 = vpop.permute.xlu0 %1633  ;;  %v1667_v28 = vmul.f32 %v4337_v51, %v1666_v26 }
 0x256   : > { %v1588_v37 = vadd.f32 %v1587_v24, %v1584_v23  ;;  %v2358_v24 = vmul.f32 %v4246_v36, %v2357_v19  ;;  %v4806_v19 = vld [vmem:[#allocation2 + $0x10] sm:$0xff] }
 0x257   : > { %2079 = vrot.lane.b32.xlu1 %v2077_v35, %s3355_s30  ;;  %2569 = vrot.lane.b32.xlu0 %v2567_v57, %s3356_s4 }
 0x258   : > { %v1596_v46 = vadd.f32 %v1594_v62, %v1588_v37  ;;  %v2116_v37 = vstv %s4706_s24  ;;  %s4789_s24 = sld [smem:[#allocation3 + $0x9c]] }
 0x259   : > { %v4655_v25 = vpop.permute.xlu1 %1661  ;;  %v4657_v32 = vpop.permute.xlu0 %1653 }
 0x25a   : > { %v1604_v53 = vadd.f32 %v1602_v58, %v1596_v46  ;;  %v1735_v58 = vstv %s4661_s5  ;;  %s4737_s5 = sld [smem:[#allocation3 + $0x96]] }
 0x25b   : > { %2577 = vrot.lane.b32.xlu1 %v2575_v2, %s3355_s30  ;;  %2328 = vrot.lane.b32.xlu0 %v2326_v27, %s3355_s30  ;;  %v1736_v5 = vmul.f32 %v4715_v12, %v1735_v58  ;;  %v4754_v2 = vld [vmem:[#allocation2 + $0x1] sm:$0xff] }
 0x25c   : > { %v3215_v44 = vpop.eup %3214  ;;  %v1608_v60 = vadd.f32 %v1607_v20, %v1604_v53  ;;  %v2117_v20 = vmul.f32 %v4246_v36, %v2116_v37 }
 0x25d   : > { %v1478_v3 = vadd.f32 1.0, %v3215_v44  ;;  %v4675_v10 = vpop.permute.xlu1 %1681  ;;  %v4677_v63 = vpop.permute.xlu0 %1673  ;;  %v2365_v44 = vstv %s4731_s28  ;;  %s4811_s28 = sld [smem:[#allocation3 + $0x9f]] }
 0x25e   : > { %v1616_v31 = vadd.f32 %v1614_v33, %v1608_v60  ;;  %v1686_v60 = vstv %s4733_s29  ;;  %v2366_v47 = vmul.f32 %v4246_v36, %v2365_v44  ;;  %s4815_s29 = sld [smem:[#allocation3 + $0xce]] }
 0x25f   : > { %v1479_v43 = vmul.f32 0.5, %v1478_v3  ;;  %2340 = vrot.lane.b32.xlu1 %v2338_v11, %s3356_s4  ;;  %2091 = vrot.lane.b32.xlu0 %v2089_v21, %s3356_s4 }
 0x260   : > { %v1624_v17 = vadd.f32 %v1622_v45, %v1616_v31  ;;  %v1733_v45 = vstv %s4681_s9  ;;  %s4761_s9 = sld [smem:[#allocation3 + $0x99]]  ;;  %v1775_v3 = vstv %s4737_s5  ;;  %s4817_s5 = sld [smem:[#allocation3 + $0x115]] }
 0x261   : > { %v1480_v54 = vmul.f32 %v1479_v43, %v4615_v7  ;;  %v4695_v40 = vpop.permute.xlu1 %1701  ;;  %v4697_v29 = vpop.permute.xlu0 %1693  ;;  %v1737_v4 = vadd.f32 %v1736_v5, %v1733_v45  ;;  %v2377_v43 = vstv %s4743_s6  ;;  %s4835_s6 = sld [smem:[#allocation3 + $0x116]] }
 0x262   : > { %v1628_v62 = vadd.f32 %v1627_v22, %v1624_v17  ;;  %v2128_v17 = vstv %s4745_s7  ;;  %v2378_v6 = vmul.f32 %v4276_v61, %v2377_v43  ;;  %s4837_s7 = sld [smem:[#allocation3 + $0xf2]] }
 0x263   : > { %2947 = vst.msk [vmem:[%s4205_s10 + $0x10] sm:$0xff] %vm983_vm14, %v1480_v54  ;;  %2099 = vrot.lane.b32.xlu1 %v2097_v52, %s3355_s30  ;;  %2589 = vrot.lane.b32.xlu0 %v2587_v56, %s3356_s4  ;;  %v1687_v54 = vmul.f32 %v4363_v15, %v1686_v60  ;;  %v4780_v56 = vld [vmem:[#allocation2 + $0x2] sm:$0xff]  ;;  %v1706_v15 = vstv %s4757_s8  ;;  %v2129_v50 = vmul.f32 %v4276_v61, %v2128_v17  ;;  %s4841_s8 = sld [smem:[#allocation3 + $0xa2]] }
 0x264   : > { %v1636_v7 = vadd.f32 %v1634_v30, %v1628_v62  ;;  %v1755_v30 = vstv %s4702_s20  ;;  %s4785_s20 = sld [smem:[#allocation3 + $0xef]] }
 0x265   : > { %v4718_v13 = vpop.permute.xlu1 %1721  ;;  %v4720_v55 = vpop.permute.xlu0 %1713  ;;  %v1756_v27 = vmul.f32 %v4754_v2, %v1755_v30 }
 0x266   : > { %v1644_v33 = vadd.f32 %v4640_v14, %v1636_v7  ;;  %v2109_v14 = vmul.f32 %v4246_v36, %v2108_v38  ;;  %v1795_v62 = vstv %s4761_s9  ;;  %s4853_s9 = sld [smem:[#allocation3 + $0xf4]] }
 0x267   : > { %2597 = vrot.lane.b32.xlu1 %v2595_v48, %s3355_s30  ;;  %2348 = vrot.lane.b32.xlu0 %v2346_v49, %s3355_s30  ;;  %v2136_v48 = vstv %s4765_s11  ;;  %v2626_v49 = vstv %s4767_s17  ;;  %s4855_s11 = sld [smem:[#allocation3 + $0xd0]]  ;;  %s4862_s17 = sld [smem:[#allocation3 + $0xa5]] }
 0x268   : > { %v1648_v18 = vadd.f32 %v1647_v34, %v1644_v33  ;;  %v1707_v33 = vmul.f32 %v4389_v1, %v1706_v15  ;;  %v2627_v26 = vmul.f32 %v4276_v61, %v2626_v49  ;;  %v1815_v1 = vstv %s4789_s24  ;;  %s4876_s24 = sld [smem:[#allocation3 + $0xd1]] }
 0x269   : > { %v1751_v39 = vpop.permute.xlu1 %1750  ;;  %v1743_v23 = vpop.permute.xlu0 %1742 }
 0x26a   : > { %v1656_v35 = vadd.f32 %v4657_v32, %v1648_v18  ;;  %v1745_v57 = vadd.f32 %v1743_v23, %v1737_v4  ;;  %v2137_v4 = vmul.f32 %v4276_v61, %v2136_v48 }
 0x26b   : > { %2360 = vrot.lane.b32.xlu1 %v2358_v24, %s3356_s4  ;;  %2111 = vrot.lane.b32.xlu0 %v2109_v14, %s3356_s4  ;;  %v2385_v24 = vstv %s4785_s20  ;;  %s4872_s20 = sld [smem:[#allocation3 + $0xb4]] }
 0x26c   : > { %v1664_v42 = vadd.f32 %v4655_v25, %v1656_v35  ;;  %v1753_v46 = vadd.f32 %v1751_v39, %v1745_v57  ;;  %v4823_v57 = vld [vmem:[#allocation2 + $0x21] sm:$0xff] }
 0x26d   : > { %v1771_v32 = vpop.permute.xlu1 %1770  ;;  %v1763_v53 = vpop.permute.xlu0 %1762  ;;  %v2386_v41 = vmul.f32 %v4823_v57, %v2385_v24 }
 0x26e   : > { %v1668_v25 = vadd.f32 %v1667_v28, %v1664_v42  ;;  %v1757_v51 = vadd.f32 %v1756_v27, %v1753_v46  ;;  %v2397_v42 = vstv %s4795_s25  ;;  %v4831_v27 = vld [vmem:[#allocation2 + $0x11] sm:$0xff]  ;;  %s4878_s25 = sld [smem:[#allocation3 + $0x118]] }
 0x26f   : > { %2119 = vrot.lane.b32.xlu1 %v2117_v20, %s3355_s30  ;;  %2609 = vrot.lane.b32.xlu0 %v2607_v8, %s3356_s4  ;;  %v1835_v20 = vstv %s4811_s28  ;;  %s4885_s28 = sld [smem:[#allocation6 + $0x5]] }
 0x270   : > { %v1676_v9 = vadd.f32 %v4677_v63, %v1668_v25  ;;  %v1765_v11 = vadd.f32 %v1763_v53, %v1757_v51  ;;  %v1776_v63 = vmul.f32 %v4780_v56, %v1775_v3  ;;  %v4847_v51 = vld [vmem:[#allocation2 + $0x22] sm:$0xff]  ;;  %v2156_v3 = vstv %s4815_s29  ;;  %s4893_s29 = sld [smem:[#allocation3 + $0xfc]] }
 0x271   : > { %v1791_v21 = vpop.permute.xlu1 %1790  ;;  %v1783_v31 = vpop.permute.xlu0 %1782  ;;  %v2398_v59 = vmul.f32 %v4847_v51, %v2397_v42  ;;  %v2157_v43 = vmul.f32 %v4847_v51, %v2156_v3 }
 0x272   : > { %v1684_v22 = vadd.f32 %v4675_v10, %v1676_v9  ;;  %v1773_v52 = vadd.f32 %v1771_v32, %v1765_v11  ;;  %v1816_v32 = vmul.f32 %v4831_v27, %v1815_v1  ;;  %v2646_v9 = vstv %s4817_s5  ;;  %s4900_s5 = sld [smem:[#allocation3 + $0x119]] }
 0x273   : > { %2617 = vrot.lane.b32.xlu1 %v2615_v16, %s3355_s30  ;;  %2368 = vrot.lane.b32.xlu0 %v2366_v47, %s3355_s30  ;;  %v2647_v17 = vmul.f32 %v4847_v51, %v2646_v9 }
 0x274   : > { %v1688_v36 = vadd.f32 %v1687_v54, %v1684_v22  ;;  %v1777_v10 = vadd.f32 %v1776_v63, %v1773_v52  ;;  %v2654_v54 = vstv %s4835_s6  ;;  %v2405_v52 = vstv %s4837_s7  ;;  %s4902_s6 = sld [smem:[#allocation3 + $0xf5]]  ;;  %s4904_s7 = sld [smem:[#allocation3 + $0xa8]] }
 0x275   : > { %v1811_v58 = vpop.permute.xlu1 %1810  ;;  %v1803_v0 = vpop.permute.xlu0 %1802  ;;  %v1855_v63 = vstv %s4841_s8  ;;  %s4908_s8 = sld [smem:[#allocation6 + $0x7]]  ;;  %v2666_v24 = vstv %s4878_s25  ;;  %s4951_s25 = sld [smem:[#allocation3 + $0xdb]] }
 0x276   : > { %v1696_v7 = vadd.f32 %v4697_v29, %v1688_v36  ;;  %v1785_v5 = vadd.f32 %v1783_v31, %v1777_v10  ;;  %v1796_v29 = vmul.f32 %v4806_v19, %v1795_v62  ;;  %v2406_v62 = vmul.f32 %v4847_v51, %v2405_v52 }
 0x277   : > { %2380 = vrot.lane.b32.xlu1 %v2378_v6, %s3356_s4  ;;  %2131 = vrot.lane.b32.xlu0 %v2129_v50, %s3356_s4  ;;  %v4895_v6 = vld [vmem:[#allocation2 + $0x20] sm:$0xff] }
 0x278   : > { %v1704_v45 = vadd.f32 %v4695_v40, %v1696_v7  ;;  %v1793_v34 = vadd.f32 %v1791_v21, %v1785_v5  ;;  %v2634_v40 = vstv %s4783_s19  ;;  %v4859_v21 = vld [vmem:[#allocation2 + $0x12] sm:$0xff]  ;;  %s4864_s19 = sld [smem:[#allocation3 + $0xd8]]  ;;  %v1856_v50 = vmul.f32 %v4895_v6, %v1855_v63 }
 0x279   : > { %v1831_v38 = vpop.permute.xlu1 %1830  ;;  %v1823_v18 = vpop.permute.xlu0 %1822  ;;  %v2635_v37 = vmul.f32 %v4823_v57, %v2634_v40  ;;  %v1836_v31 = vmul.f32 %v4859_v21, %v1835_v20  ;;  %v2417_v7 = vstv %s4853_s9  ;;  %v2168_v5 = vstv %s4855_s11  ;;  %s4921_s9 = sld [smem:[#allocation3 + $0xf7]]  ;;  %s4923_s11 = sld [smem:[#allocation3 + $0xd3]] }
 0x27a   : > { %v1708_v39 = vadd.f32 %v1707_v33, %v1704_v45  ;;  %v1797_v23 = vadd.f32 %v1796_v29, %v1793_v34  ;;  %v1875_v45 = vstv %s4862_s17  ;;  %v2176_v40 = vstv %s4876_s24  ;;  %s4931_s17 = sld [smem:[#allocation3 + $0xb7]]  ;;  %s4949_s24 = sld [smem:[#allocation3 + $0x11b]] }
 0x27b   : > { %2139 = vrot.lane.b32.xlu1 %v2137_v4, %s3355_s30  ;;  %2629 = vrot.lane.b32.xlu0 %v2627_v26, %s3356_s4 }
 0x27c   : > { %v1716_v14 = vadd.f32 %v4720_v55, %v1708_v39  ;;  %v1805_v61 = vadd.f32 %v1803_v0, %v1797_v23  ;;  %v2148_v55 = vstv %s4800_s26  ;;  %s4883_s26 = sld [smem:[#allocation6 + $0x6]]  ;;  %v1984_v39 = vstv %s4872_s20  ;;  %s4939_s20 = sld [smem:[#allocation3 + $0xd4]] }
 0x27d   : > { %v1851_v30 = vpop.permute.xlu1 %1850  ;;  %v1843_v35 = vpop.permute.xlu0 %1842  ;;  %v2149_v44 = vmul.f32 %v4847_v51, %v2148_v55 }
 0x27e   : > { %v4829_v28 = vadd.f32 %v4718_v13, %v1716_v14  ;;  %v1813_v46 = vadd.f32 %v1811_v58, %v1805_v61  ;;  %v2655_v58 = vmul.f32 %v4847_v51, %v2654_v54  ;;  %v2233_v33 = vstv %s4864_s19  ;;  %s4935_s19 = sld [smem:[#allocation3 + $0xab]] }
 0x27f   : > { %2637 = vrot.lane.b32.xlu1 %v2635_v37, %s3355_s30  ;;  %2388 = vrot.lane.b32.xlu0 %v2386_v41, %s3355_s30  ;;  %v1982_v61 = vstv %s4885_s28  ;;  %v2234_v37 = vmul.f32 %v4715_v12, %v2233_v33  ;;  %v1985_v41 = vmul.f32 %v4715_v12, %v1984_v39  ;;  %s4965_s28 = sld [smem:[#allocation3 + $0x11c]]  ;;  %v2188_v54 = vstv %s4923_s11  ;;  %s5004_s11 = sld [smem:[#allocation3 + $0xfa]] }
 0x280   : > { %v1725_v13 = vmul.f32 0.5, %v4829_v28  ;;  %v1817_v53 = vadd.f32 %v1816_v32, %v1813_v46  ;;  %v2253_v33 = vstv %s4951_s25  ;;  %s5027_s25 = sld [smem:[#allocation3 + $0xb3]] }
 0x281   : > { %v4845_v8 = vpop.permute.xlu1 %1870  ;;  %v1863_v25 = vpop.permute.xlu0 %1862  ;;  %v1986_v3 = vadd.f32 %v1985_v41, %v1982_v61 }
 0x282   : > { %3216 = vtanh.f32 %v1725_v13  ;;  %v1825_v60 = vadd.f32 %v1823_v18, %v1817_v53  ;;  %v4916_v18 = vld [vmem:[#allocation2 + $0x30] sm:$0xff]  ;;  %v2231_v14 = vstv %s4883_s26  ;;  %v2482_v53 = vstv %s4893_s29  ;;  %s4961_s26 = sld [smem:[#allocation3 + $0xff]]  ;;  %s4971_s29 = sld [smem:[#allocation3 + $0xf8]] }
 0x283   : > { %2400 = vrot.lane.b32.xlu1 %v2398_v59, %s3356_s4  ;;  %2151 = vrot.lane.b32.xlu0 %v2149_v44, %s3356_s4  ;;  %v2418_v4 = vmul.f32 %v4916_v18, %v2417_v7  ;;  %v2169_v26 = vmul.f32 %v4916_v18, %v2168_v5  ;;  %v2177_v55 = vmul.f32 %v4916_v18, %v2176_v40  ;;  %v2480_v59 = vstv %s4908_s8  ;;  %v4982_v5 = vld [vmem:[#allocation2 + $0x31] sm:$0xff]  ;;  %s4997_s8 = sld [smem:[#allocation3 + $0xba]] }
 0x284   : > { %v1833_v11 = vadd.f32 %v1831_v38, %v1825_v60  ;;  %v2667_v13 = vmul.f32 %v4916_v18, %v2666_v24  ;;  %v2235_v60 = vadd.f32 %v2234_v37, %v2231_v14  ;;  %v2483_v9 = vmul.f32 %v4715_v12, %v2482_v53 }
 0x285   : > { %v4866_v16 = vpop.permute.xlu1 %1890  ;;  %v4868_v47 = vpop.permute.xlu0 %1882  ;;  %v2694_v14 = vstv %s4965_s28  ;;  %v2254_v37 = vmul.f32 %v4754_v2, %v2253_v33  ;;  %s5046_s28 = sld [smem:[#allocation3 + $0xfb]] }
 0x286   : > { %v1837_v22 = vadd.f32 %v1836_v31, %v1833_v11 }
 0x287   : > { %2159 = vrot.lane.b32.xlu1 %v2157_v43, %s3355_s30  ;;  %2649 = vrot.lane.b32.xlu0 %v2647_v17, %s3356_s4 }
 0x288   : > { %v1845_v36 = vadd.f32 %v1843_v35, %v1837_v22  ;;  %v1876_v35 = vmul.f32 %v4823_v57, %v1875_v45  ;;  %v2437_v22 = vstv %s4921_s9  ;;  %v2686_v45 = vstv %s4949_s24  ;;  %s5002_s9 = sld [smem:[#allocation3 + $0x11e]]  ;;  %s5021_s24 = sld [smem:[#allocation3 + $0xd7]] }
 0x289   : > { %v4887_v10 = vpop.permute.xlu1 %1910  ;;  %v4889_v15 = vpop.permute.xlu0 %1902  ;;  %v2445_v41 = vstv %s4971_s29  ;;  %s5051_s29 = sld [smem:[#allocation3 + $0xbd]] }
 0x28a   : > { %v1853_v0 = vadd.f32 %v1851_v30, %v1845_v36  ;;  %v2004_v36 = vstv %s4931_s17  ;;  %s5010_s17 = sld [smem:[#allocation3 + $0xde]] }
 0x28b   : > { %2657 = vrot.lane.b32.xlu1 %v2655_v58, %s3355_s30  ;;  %2408 = vrot.lane.b32.xlu0 %v2406_v62, %s3355_s30  ;;  %v1915_v62 = vstv %s4935_s19  ;;  %v2005_v39 = vmul.f32 %v4754_v2, %v2004_v36  ;;  %s5012_s19 = sld [smem:[#allocation3 + $0xb1]] }
 0x28c   : > { %v3217_v48 = vpop.eup %3216  ;;  %v1857_v49 = vadd.f32 %v1856_v50, %v1853_v0  ;;  %v2484_v0 = vadd.f32 %v2483_v9, %v2480_v59  ;;  %v2196_v50 = vstv %s4939_s20  ;;  %v1916_v24 = vmul.f32 %v4916_v18, %v1915_v62  ;;  %s5018_s20 = sld [smem:[#allocation3 + $0x102]] }
 0x28d   : > { %v1727_v34 = vadd.f32 1.0, %v3217_v48  ;;  %v4912_v29 = vpop.permute.xlu1 %1930  ;;  %v4914_v38 = vpop.permute.xlu0 %1922  ;;  %v2438_v48 = vmul.f32 %v4982_v5, %v2437_v22 }
 0x28e   : > { %v1865_v23 = vadd.f32 %v1863_v25, %v1857_v49  ;;  %v2425_v25 = vstv %s4902_s6  ;;  %v2189_v49 = vmul.f32 %v4982_v5, %v2188_v54  ;;  %s4988_s6 = sld [smem:[#allocation3 + $0xd6]]  ;;  %v2706_v22 = vstv %s5002_s9  ;;  %s3078_s9 = sld [smem:[#allocation3 + $0xe7]] }
 0x28f   : > { %v1728_v1 = vmul.f32 0.5, %v1727_v34  ;;  %2420 = vrot.lane.b32.xlu1 %v2418_v4, %s3356_s4  ;;  %2171 = vrot.lane.b32.xlu0 %v2169_v26, %s3356_s4  ;;  %v2426_v17 = vmul.f32 %v4916_v18, %v2425_v25  ;;  %v2457_v54 = vstv %s5004_s11  ;;  %s3116_s11 = sld [smem:[#allocation3 + $0x10b]] }
 0x290   : > { %v1873_v30 = vadd.f32 %v4845_v8, %v1865_v23  ;;  %v2674_v8 = vstv %s4900_s5  ;;  %s4975_s5 = sld [smem:[#allocation3 + $0xae]]  ;;  %v2502_v23 = vstv %s4961_s26  ;;  %v2273_v36 = vstv %s5010_s17  ;;  %s5044_s26 = sld [smem:[#allocation3 + $0x11f]] }
 0x291   : > { %v1729_v42 = vmul.f32 %v1728_v1, %v4829_v28  ;;  %v4942_v46 = vpop.permute.xlu1 %1950  ;;  %v4944_v32 = vpop.permute.xlu0 %1942  ;;  %v1895_v28 = vstv %s4904_s7  ;;  %v2675_v43 = vmul.f32 %v4916_v18, %v2674_v8  ;;  %s4990_s7 = sld [smem:[#allocation3 + $0xb2]]  ;;  %s3043_s17 = sld [smem:[#allocation3 + $0xc6]] }
 0x292   : > { %v1877_v20 = vadd.f32 %v1876_v35, %v1873_v30  ;;  %v1896_v52 = vmul.f32 %v4847_v51, %v1895_v28  ;;  %v2197_v30 = vmul.f32 %v4982_v5, %v2196_v50  ;;  %v2687_v35 = vmul.f32 %v4982_v5, %v2686_v45 }
 0x293   : > { %2985 = vst.msk [vmem:[%s4205_s10 + $0x18] sm:$0xff] %vm983_vm14, %v1729_v42  ;;  %2179 = vrot.lane.b32.xlu1 %v2177_v55, %s3355_s30  ;;  %2669 = vrot.lane.b32.xlu0 %v2667_v13, %s3356_s4  ;;  %v2503_v13 = vmul.f32 %v4754_v2, %v2502_v23  ;;  %v2695_v2 = vmul.f32 %v4982_v5, %v2694_v14  ;;  %v1967_v23 = vstv %s5027_s25  ;;  %s3084_s25 = sld [smem:[#allocation3 + $0xed]] }
 0x294   : > { %v1885_v44 = vadd.f32 %v4868_v47, %v1877_v20 }
 0x295   : > { %v2241_v11 = vpop.permute.xlu1 %2240  ;;  %v1992_v31 = vpop.permute.xlu0 %1991 }
 0x296   : > { %v1893_v47 = vadd.f32 %v4866_v16, %v1885_v44  ;;  %v2243_v12 = vadd.f32 %v2241_v11, %v2235_v60  ;;  %v1994_v63 = vadd.f32 %v1992_v31, %v1986_v3  ;;  %v1935_v53 = vstv %s4975_s5  ;;  %s5065_s5 = sld [smem:[#allocation3 + $0xe1]] }
 0x297   : > { %2677 = vrot.lane.b32.xlu1 %v2675_v43, %s3355_s30  ;;  %2428 = vrot.lane.b32.xlu0 %v2426_v17, %s3355_s30  ;;  %v2446_v44 = vmul.f32 %v4982_v5, %v2445_v41  ;;  %v2208_v60 = vstv %s4988_s6  ;;  %v1959_v3 = vstv %s4990_s7  ;;  %v1936_v9 = vmul.f32 %v4982_v5, %v1935_v53  ;;  %s5067_s6 = sld [smem:[#allocation3 + $0x105]]  ;;  %s3075_s7 = sld [smem:[#allocation3 + $0xe4]] }
 0x298   : > { %v1897_v58 = vadd.f32 %v1896_v52, %v1893_v47  ;;  %v2024_v43 = vstv %s4997_s8  ;;  %v2714_v41 = vstv %s5044_s26  ;;  %s3113_s8 = sld [smem:[#allocation3 + $0x108]]  ;;  %s3122_s26 = sld [smem:[#allocation3 + $0x111]] }
 0x299   : > { %v2000_v7 = vpop.permute.xlu1 %1999  ;;  %v2490_v16 = vpop.permute.xlu0 %2489 }
 0x29a   : > { %v1905_v34 = vadd.f32 %v4889_v15, %v1897_v58  ;;  %v2002_v4 = vadd.f32 %v2000_v7, %v1994_v63  ;;  %v2492_v26 = vadd.f32 %v2490_v16, %v2484_v0  ;;  %v1955_v58 = vstv %s5012_s19  ;;  %s3081_s19 = sld [smem:[#allocation3 + $0xea]] }
 0x29b   : > { %2440 = vrot.lane.b32.xlu1 %v2438_v48, %s3356_s4  ;;  %2191 = vrot.lane.b32.xlu0 %v2189_v49, %s3356_s4  ;;  %v2025_v7 = vmul.f32 %v4780_v56, %v2024_v43  ;;  %v2522_v16 = vstv %s5018_s20  ;;  %s3119_s20 = sld [smem:[#allocation3 + $0x10e]] }
 0x29c   : > { %v1913_v40 = vadd.f32 %v4887_v10, %v1905_v34  ;;  %v2006_v1 = vadd.f32 %v2005_v39, %v2002_v4  ;;  %v2274_v39 = vmul.f32 %v4780_v56, %v2273_v36 }
 0x29d   : > { %v2498_v15 = vpop.permute.xlu1 %2497  ;;  %v2249_v61 = vpop.permute.xlu0 %2248 }
 0x29e   : > { %v1917_v10 = vadd.f32 %v1916_v24, %v1913_v40  ;;  %v2500_v42 = vadd.f32 %v2498_v15, %v2492_v26  ;;  %v2251_v55 = vadd.f32 %v2249_v61, %v2243_v12  ;;  %v5036_v12 = vld [vmem:[#allocation2 + $0x32] sm:$0xff] }
 0x29f   : > { %2199 = vrot.lane.b32.xlu1 %v2197_v30, %s3355_s30  ;;  %2689 = vrot.lane.b32.xlu0 %v2687_v35, %s3356_s4  ;;  %v1960_v63 = vmul.f32 %v5036_v12, %v1959_v3  ;;  %v1956_v45 = vmul.f32 %v5036_v12, %v1955_v58  ;;  %v2707_v4 = vmul.f32 %v5036_v12, %v2706_v22 }
 0x2a0   : > { %v1925_v20 = vadd.f32 %v4914_v38, %v1917_v10  ;;  %v2255_v8 = vadd.f32 %v2254_v37, %v2251_v55  ;;  %v2504_v25 = vadd.f32 %v2503_v13, %v2500_v42  ;;  %v2458_v26 = vmul.f32 %v5036_v12, %v2457_v54 }
 0x2a1   : > { %v2261_v28 = vpop.permute.xlu1 %2260  ;;  %v2012_v59 = vpop.permute.xlu0 %2011  ;;  %v1968_v37 = vmul.f32 %v5036_v12, %v1967_v23  ;;  %v2465_v10 = vstv %s5046_s28  ;;  %v2044_v42 = vstv %s5051_s29  ;;  %s3049_s28 = sld [smem:[#allocation3 + $0xcc]]  ;;  %s3087_s29 = sld [smem:[#allocation3 + $0xf0]] }
 0x2a2   : > { %v1933_v38 = vadd.f32 %v4912_v29, %v1925_v20  ;;  %v2263_v11 = vadd.f32 %v2261_v28, %v2255_v8  ;;  %v2014_v31 = vadd.f32 %v2012_v59, %v2006_v1  ;;  %v2209_v29 = vmul.f32 %v5036_v12, %v2208_v60 }
 0x2a3   : > { %2697 = vrot.lane.b32.xlu1 %v2695_v2, %s3355_s30  ;;  %2448 = vrot.lane.b32.xlu0 %v2446_v44, %s3355_s30  ;;  %v2523_v1 = vmul.f32 %v4780_v56, %v2522_v16  ;;  %v2715_v20 = vmul.f32 %v5036_v12, %v2714_v41  ;;  %v2466_v8 = vmul.f32 %v5036_v12, %v2465_v10  ;;  %v2293_v59 = vstv %s5065_s5  ;;  %s3125_s5 = sld [smem:[#allocation3 + $0x114]] }
 0x2a4   : > { %v1937_v17 = vadd.f32 %v1936_v9, %v1933_v38  ;;  %v2045_v28 = vmul.f32 %v4806_v19, %v2044_v42  ;;  %v2542_v2 = vstv %s5067_s6  ;;  %s3052_s6 = sld [smem:[#allocation3 + $0xcf]] }
 0x2a5   : > { %v2020_v47 = vpop.permute.xlu1 %2019  ;;  %v2510_v52 = vpop.permute.xlu0 %2509  ;;  %v2543_v43 = vmul.f32 %v4806_v19, %v2542_v2 }
 0x2a6   : > { %v1945_v62 = vadd.f32 %v4944_v32, %v1937_v17  ;;  %v2022_v0 = vadd.f32 %v2020_v47, %v2014_v31  ;;  %v2512_v50 = vadd.f32 %v2510_v52, %v2504_v25  ;;  %v2216_v32 = vstv %s5021_s24  ;;  %s3046_s24 = sld [smem:[#allocation3 + $0xc9]] }
 0x2a7   : > { %2211 = vrot.lane.b32.xlu1 %v2209_v29, %s3356_s4  ;;  %1962 = vrot.lane.b32.xlu0 %v1960_v63, %s3356_s4  ;;  %v2217_v35 = vmul.f32 %v5036_v12, %v2216_v32  ;;  %v2294_v31 = vmul.f32 %v4806_v19, %v2293_v59  ;;  %v2104_v59 = vstv %s3043_s17  ;;  %s3134_s17 = sld [smem:[#allocation3 + $0x11d]] }
 0x2a8   : > { %v1953_v48 = vadd.f32 %v4942_v46, %v1945_v62  ;;  %v2026_v49 = vadd.f32 %v2025_v7, %v2022_v0  ;;  %v2313_v0 = vstv %s3075_s7  ;;  %s3128_s7 = sld [smem:[#allocation3 + $0x117]] }
 0x2a9   : > { %v2518_v33 = vpop.permute.xlu1 %2517  ;;  %v2269_v34 = vpop.permute.xlu0 %2268 }
 0x2aa   : > { %v2520_v40 = vadd.f32 %v2518_v33, %v2512_v50  ;;  %v2271_v24 = vadd.f32 %v2269_v34, %v2263_v11  ;;  %v5061_v46 = vadd.f32 %v1956_v45, %v1953_v48  ;;  %v2562_v50 = vstv %s3113_s8  ;;  %s3055_s8 = sld [smem:[#allocation3 + $0xd2]] }
 0x2ab   : > { %2709 = vrot.lane.b32.xlu1 %v2707_v4, %s3356_s4  ;;  %2460 = vrot.lane.b32.xlu0 %v2458_v26, %s3356_s4  ;;  %s3037_s4 = sld [smem:[#allocation3 + $0xc0]]  ;;  %v2314_v33 = vmul.f32 %v4831_v27, %v2313_v0  ;;  %v2563_v34 = vmul.f32 %v4831_v27, %v2562_v50 }
 0x2ac   : > { %v2275_v14 = vadd.f32 %v2274_v39, %v2271_v24  ;;  %v2524_v15 = vadd.f32 %v2523_v1, %v2520_v40  ;;  %v2124_v0 = vstv %s3046_s24  ;;  %s2742_s24 = sshll.u32 %s4205_s10, 4  ;;  %s5121_s24 = int_to_ptr.vmem [resolvable:$true] %s2742_s24 }
 0x2ad   : > { %v2281_v61 = vpop.permute.xlu1 %2280  ;;  %v2032_v30 = vpop.permute.xlu0 %2031 }
 0x2ae   : > { %v2283_v56 = vadd.f32 %v2281_v61, %v2275_v14  ;;  %v2034_v55 = vadd.f32 %v2032_v30, %v2026_v49  ;;  %v2333_v30 = vstv %s3078_s9  ;;  %s3131_s9 = sld [smem:[#allocation3 + $0x11a]] }
 0x2af   : > { %2219 = vrot.lane.b32.xlu1 %v2217_v35, %s3355_s30  ;;  %1970 = vrot.lane.b32.xlu0 %v1968_v37, %s3355_s30  ;;  %v2582_v35 = vstv %s3116_s11  ;;  %s3058_s11 = sld [smem:[#allocation3 + $0xd5]] }
 0x2b1   : > { %v2040_v13 = vpop.permute.xlu1 %2039  ;;  %v2530_v53 = vpop.permute.xlu0 %2529  ;;  %v2064_v52 = vstv %s3037_s4  ;;  %s3090_s4 = sld [smem:[#allocation3 + $0xf3]] }
 0x2b2   : > { %v2042_v25 = vadd.f32 %v2040_v13, %v2034_v55  ;;  %v2532_v44 = vadd.f32 %v2530_v53, %v2524_v15  ;;  %v2065_v62 = vmul.f32 %v4831_v27, %v2064_v52  ;;  %v2334_v13 = vmul.f32 %v4859_v21, %v2333_v30 }
 0x2b3   : > { %2717 = vrot.lane.b32.xlu1 %v2715_v20, %s3355_s30  ;;  %2468 = vrot.lane.b32.xlu0 %v2466_v8, %s3355_s30  ;;  %s3040_s30 = sld [smem:[#allocation3 + $0xc3]]  ;;  %v2583_v53 = vmul.f32 %v4859_v21, %v2582_v35 }
 0x2b4   : > { %v2046_v60 = vadd.f32 %v2045_v28, %v2042_v25 }
 0x2b5   : > { %v2538_v3 = vpop.permute.xlu1 %2537  ;;  %v2289_v38 = vpop.permute.xlu0 %2288 }
 0x2b6   : > { %v2540_v9 = vadd.f32 %v2538_v3, %v2532_v44  ;;  %v2291_v11 = vadd.f32 %v2289_v38, %v2283_v56  ;;  %v2105_v38 = vmul.f32 %v4895_v6, %v2104_v59 }
 0x2b8   : > { %v2295_v17 = vadd.f32 %v2294_v31, %v2291_v11  ;;  %v2544_v22 = vadd.f32 %v2543_v43, %v2540_v9  ;;  %v2353_v9 = vstv %s3081_s19  ;;  %v2602_v11 = vstv %s3119_s20  ;;  %s3096_s19 = sld [smem:[#allocation3 + $0xf9]]  ;;  %s3144_s20 = sshll.u32 %s3401_s16, 10 }
 0x2b9   : > { %v2301_v54 = vpop.permute.xlu1 %2300  ;;  %v2052_v47 = vpop.permute.xlu0 %2051  ;;  %v2084_v40 = vstv %s3040_s30  ;;  %v2354_v52 = vmul.f32 %v4895_v6, %v2353_v9  ;;  %s3093_s30 = sld [smem:[#allocation3 + $0xf6]]  ;;  %s5129_s16 = scalar_lea.sflag [#allocation4], %s188_s27 }
 0x2ba   : > { %v2054_v29 = vadd.f32 %v2052_v47, %v2046_v60  ;;  %v2303_v7 = vadd.f32 %v2301_v54, %v2295_v17  ;;  %v2085_v61 = vmul.f32 %v4859_v21, %v2084_v40 }
 0x2bd   : > { %v2060_v63 = vpop.permute.xlu1 %2059  ;;  %v2550_v36 = vpop.permute.xlu0 %2549 }
 0x2be   : > { %v2062_v58 = vadd.f32 %v2060_v63, %v2054_v29  ;;  %v2552_v16 = vadd.f32 %v2550_v36, %v2544_v22  ;;  %v2603_v29 = vmul.f32 %v4895_v6, %v2602_v11 }
 0x2c0   : > { %v2066_v48 = vadd.f32 %v2065_v62, %v2062_v58 }
 0x2c1   : > { %v2558_v19 = vpop.permute.xlu1 %2557  ;;  %v2309_v49 = vpop.permute.xlu0 %2308 }
 0x2c2   : > { %v2560_v32 = vadd.f32 %v2558_v19, %v2552_v16  ;;  %v2311_v45 = vadd.f32 %v2309_v49, %v2303_v7  ;;  %v2125_v19 = vmul.f32 %v4823_v57, %v2124_v0  ;;  %v2373_v49 = vstv %s3084_s25 }
 0x2c4   : > { %v2315_v4 = vadd.f32 %v2314_v33, %v2311_v45  ;;  %v2564_v26 = vadd.f32 %v2563_v34, %v2560_v32  ;;  %v2622_v32 = vstv %s3122_s26 }
 0x2c5   : > { %v2321_v39 = vpop.permute.xlu1 %2320  ;;  %v2072_v23 = vpop.permute.xlu0 %2071  ;;  %v2623_v40 = vmul.f32 %v4823_v57, %v2622_v32 }
 0x2c6   : > { %v2074_v24 = vadd.f32 %v2072_v23, %v2066_v48  ;;  %v2323_v37 = vadd.f32 %v2321_v39, %v2315_v4  ;;  %v2374_v23 = vmul.f32 %v4823_v57, %v2373_v49 }
 0x2c9   : > { %v2080_v1 = vpop.permute.xlu1 %2079  ;;  %v2570_v14 = vpop.permute.xlu0 %2569 }
 0x2ca   : > { %v2082_v15 = vadd.f32 %v2080_v1, %v2074_v24  ;;  %v2572_v56 = vadd.f32 %v2570_v14, %v2564_v26 }
 0x2cc   : > { %v2086_v41 = vadd.f32 %v2085_v61, %v2082_v15  ;;  %v2144_v61 = vstv %s3049_s28  ;;  %s5119_s28 = scalar_lea.hbm %s5173_s3, %s3144_s20 }
 0x2cd   : > { %v2578_v27 = vpop.permute.xlu1 %2577  ;;  %v2329_v10 = vpop.permute.xlu0 %2328 }
 0x2ce   : > { %v2580_v42 = vadd.f32 %v2578_v27, %v2572_v56  ;;  %v2331_v55 = vadd.f32 %v2329_v10, %v2323_v37  ;;  %v2393_v27 = vstv %s3087_s29  ;;  %v2642_v10 = vstv %s3125_s5  ;;  %s3280_s29 = scalar_lea.vmem %s5121_s24, 1024  ;;  %s3357_s5 = smov [#allocation8]  }
 0x2cf   : > { %p3281_p10 = scmp.ne.s32.totalorder %s5121_s24, %s3280_s29 }
 0x2d0   : > { %v2335_v20 = vadd.f32 %v2334_v13, %v2331_v55  ;;  %v2584_v8 = vadd.f32 %v2583_v53, %v2580_v42 }
 0x2d1   : > { %v2341_v25 = vpop.permute.xlu1 %2340  ;;  %v2092_v28 = vpop.permute.xlu0 %2091  ;;  %p3282_p0 = pnand %p3281_p10, %p5186_p12 }
 0x2d2   : > { %v2094_v2 = vadd.f32 %v2092_v28, %v2086_v41  ;;  %v2343_v31 = vadd.f32 %v2341_v25, %v2335_v20  ;;  %v2145_v41 = vmul.f32 %v4847_v51, %v2144_v61  ;;  %v2394_v25 = vmul.f32 %v4847_v51, %v2393_v27 }
 0x2d3   : > { %v2643_v28 = vmul.f32 %v4847_v51, %v2642_v10  ;;  %p3283_p7 = pneg %p3282_p0 }
 0x2d5   : > { %v2100_v44 = vpop.permute.xlu1 %2099  ;;  %v2590_v60 = vpop.permute.xlu0 %2589 }
 0x2d6   : > { %v2102_v3 = vadd.f32 %v2100_v44, %v2094_v2  ;;  %v2592_v43 = vadd.f32 %v2590_v60, %v2584_v8 }
 0x2d8   : > { %v2106_v17 = vadd.f32 %v2105_v38, %v2102_v3  ;;  %v2164_v3 = vstv %s3052_s6  ;;  %s3284_s6 = sshll.u32 %s3357_s5, 4  ;;  %s3285_s6 = int_to_ptr.vmem [resolvable:$false] %s3284_s6 }
 0x2d9   : > { %v2598_v21 = vpop.permute.xlu1 %2597  ;;  %v2349_v22 = vpop.permute.xlu0 %2348  ;;  %p3287_p8 = scmp.lt.s32.totalorder %s5121_s24, %s3285_s6 }
 0x2da   : > { %v2600_v54 = vadd.f32 %v2598_v21, %v2592_v43  ;;  %v2351_v47 = vadd.f32 %v2349_v22, %v2343_v31  ;;  %v2165_v43 = vmul.f32 %v4916_v18, %v2164_v3  ;;  %v2662_v21 = vstv %s3128_s7 }
 0x2dc   : > { %v2355_v63 = vadd.f32 %v2354_v52, %v2351_v47  ;;  %v2604_v36 = vadd.f32 %v2603_v29, %v2600_v54 }
 0x2dd   : > { %v2361_v58 = vpop.permute.xlu1 %2360  ;;  %v2112_v62 = vpop.permute.xlu0 %2111 }
 0x2de   : > { %v2114_v50 = vadd.f32 %v2112_v62, %v2106_v17  ;;  %v2363_v45 = vadd.f32 %v2361_v58, %v2355_v63  ;;  %v2413_v17 = vstv %s3090_s4  ;;  %v2663_v58 = vmul.f32 %v4916_v18, %v2662_v21  ;;  %s3286_s4 = scalar_lea.vmem %s3285_s6, 2048 }
 0x2df   : > { %p3288_p11 = scmp.lt.s32.totalorder %s3286_s4, %s3280_s29 }
 0x2e1   : > { %v2120_v7 = vpop.permute.xlu1 %2119  ;;  %v2610_v16 = vpop.permute.xlu0 %2609  ;;  %p3289_p13 = por %p3288_p11, %p3287_p8 }
 0x2e2   : > { %v2122_v48 = vadd.f32 %v2120_v7, %v2114_v50  ;;  %v2612_v33 = vadd.f32 %v2610_v16, %v2604_v36  ;;  %v2414_v36 = vmul.f32 %v4916_v18, %v2413_v17  ;;  %v2184_v16 = vstv %s3055_s8 }
 0x2e3   : > { %p3290_p1 = pnand %p3289_p13, %p3283_p7 }
 0x2e4   : > { %v2126_v34 = vadd.f32 %v2125_v19, %v2122_v48 }
 0x2e5   : > { %v2618_v6 = vpop.permute.xlu1 %2617  ;;  %v2369_v4 = vpop.permute.xlu0 %2368 }
 0x2e6   : > { %v2620_v26 = vadd.f32 %v2618_v6, %v2612_v33  ;;  %v2371_v39 = vadd.f32 %v2369_v4, %v2363_v45  ;;  %v2185_v45 = vmul.f32 %v4982_v5, %v2184_v16  ;;  %v2433_v33 = vstv %s3093_s30 }
 0x2e8   : > { %v2375_v24 = vadd.f32 %v2374_v23, %v2371_v39  ;;  %v2624_v1 = vadd.f32 %v2623_v40, %v2620_v26 }
 0x2e9   : > { %v2381_v14 = vpop.permute.xlu1 %2380  ;;  %v2132_v15 = vpop.permute.xlu0 %2131 }
 0x2ea   : > { %v2134_v30 = vadd.f32 %v2132_v15, %v2126_v34  ;;  %v2383_v42 = vadd.f32 %v2381_v14, %v2375_v24  ;;  %v2682_v34 = vstv %s3131_s9  ;;  %v2434_v24 = vmul.f32 %v4982_v5, %v2433_v33 }
 0x2ed   : > { %v2140_v35 = vpop.permute.xlu1 %2139  ;;  %v2630_v37 = vpop.permute.xlu0 %2629 }
 0x2ee   : > { %v2142_v56 = vadd.f32 %v2140_v35, %v2134_v30  ;;  %v2632_v55 = vadd.f32 %v2630_v37, %v2624_v1  ;;  %v2683_v1 = vmul.f32 %v4982_v5, %v2682_v34  ;;  %v2204_v35 = vstv %s3058_s11 }
 0x2ef   : > { %v2205_v10 = vmul.f32 %v5036_v12, %v2204_v35 }
 0x2f0   : > { %v2146_v13 = vadd.f32 %v2145_v41, %v2142_v56 }
 0x2f1   : > { %v2638_v57 = vpop.permute.xlu1 %2637  ;;  %v2389_v53 = vpop.permute.xlu0 %2388 }
 0x2f2   : > { %v2640_v20 = vadd.f32 %v2638_v57, %v2632_v55  ;;  %v2391_v8 = vadd.f32 %v2389_v53, %v2383_v42  ;;  %v2702_v42 = vstv %s3134_s17  ;;  %v2453_v55 = vstv %s3096_s19 }
 0x2f4   : > { %v2395_v59 = vadd.f32 %v2394_v25, %v2391_v8  ;;  %v2644_v2 = vadd.f32 %v2643_v28, %v2640_v20  ;;  %v2703_v28 = vmul.f32 %v5036_v12, %v2702_v42 }
 0x2f5   : > { %v2401_v44 = vpop.permute.xlu1 %2400  ;;  %v2152_v60 = vpop.permute.xlu0 %2151 }
 0x2f6   : > { %v2154_v38 = vadd.f32 %v2152_v60, %v2146_v13  ;;  %v2403_v22 = vadd.f32 %v2401_v44, %v2395_v59  ;;  %v2454_v59 = vmul.f32 %v5036_v12, %v2453_v55 }
 0x2f9   : > { %v2160_v9 = vpop.permute.xlu1 %2159  ;;  %v2650_v11 = vpop.permute.xlu0 %2649 }
 0x2fa   : > { %v2162_v31 = vadd.f32 %v2160_v9, %v2154_v38  ;;  %v2652_v54 = vadd.f32 %v2650_v11, %v2644_v2 }
 0x2fc   : > { %v2166_v47 = vadd.f32 %v2165_v43, %v2162_v31 }
 0x2fd   : > { %v2658_v51 = vpop.permute.xlu1 %2657  ;;  %v2409_v52 = vpop.permute.xlu0 %2408 }
 0x2fe   : > { %v2660_v29 = vadd.f32 %v2658_v51, %v2652_v54  ;;  %v2411_v63 = vadd.f32 %v2409_v52, %v2403_v22 }
 0x300   : > { %v2415_v62 = vadd.f32 %v2414_v36, %v2411_v63  ;;  %v2664_v0 = vadd.f32 %v2663_v58, %v2660_v29 }
 0x301   : > { %v2421_v50 = vpop.permute.xlu1 %2420  ;;  %v2172_v7 = vpop.permute.xlu0 %2171 }
 0x302   : > { %v2174_v48 = vadd.f32 %v2172_v7, %v2166_v47  ;;  %v2423_v6 = vadd.f32 %v2421_v50, %v2415_v62 }
 0x305   : > { %v2180_v19 = vpop.permute.xlu1 %2179  ;;  %v2670_v49 = vpop.permute.xlu0 %2669 }
 0x306   : > { %v2182_v32 = vadd.f32 %v2180_v19, %v2174_v48  ;;  %v2672_v4 = vadd.f32 %v2670_v49, %v2664_v0 }
 0x308   : > { %v2186_v26 = vadd.f32 %v2185_v45, %v2182_v32 }
 0x309   : > { %v2678_v18 = vpop.permute.xlu1 %2677  ;;  %v2429_v39 = vpop.permute.xlu0 %2428 }
 0x30a   : > { %v2680_v23 = vadd.f32 %v2678_v18, %v2672_v4  ;;  %v2431_v40 = vadd.f32 %v2429_v39, %v2423_v6 }
 0x30c   : > { %v2435_v14 = vadd.f32 %v2434_v24, %v2431_v40  ;;  %v2684_v15 = vadd.f32 %v2683_v1, %v2680_v23 }
 0x30d   : > { %v2441_v61 = vpop.permute.xlu1 %2440  ;;  %v2192_v30 = vpop.permute.xlu0 %2191 }
 0x30e   : > { %v2194_v37 = vadd.f32 %v2192_v30, %v2186_v26  ;;  %v2443_v13 = vadd.f32 %v2441_v61, %v2435_v14 }
 0x311   : > { %v2200_v56 = vpop.permute.xlu1 %2199  ;;  %v2690_v41 = vpop.permute.xlu0 %2689 }
 0x312   : > { %v2202_v27 = vadd.f32 %v2200_v56, %v2194_v37  ;;  %v2692_v57 = vadd.f32 %v2690_v41, %v2684_v15 }
 0x314   : > { %v2206_v53 = vadd.f32 %v2205_v10, %v2202_v27 }
 0x315   : > { %v2698_v20 = vpop.permute.xlu1 %2697  ;;  %v2449_v5 = vpop.permute.xlu0 %2448 }
 0x316   : > { %v2700_v8 = vadd.f32 %v2698_v20, %v2692_v57  ;;  %v2451_v25 = vadd.f32 %v2449_v5, %v2443_v13 }
 0x318   : > { %v2704_v2 = vadd.f32 %v2703_v28, %v2700_v8  ;;  %v2455_v44 = vadd.f32 %v2454_v59, %v2451_v25 }
 0x319   : > { %v2212_v60 = vpop.permute.xlu1 %2211  ;;  %v1963_v3 = vpop.permute.xlu0 %1962 }
 0x31a   : > { %v2214_v11 = vadd.f32 %v2212_v60, %v2206_v53  ;;  %v1965_v31 = vadd.f32 %v1963_v3, %v5061_v46 }
 0x31d   : > { %v2710_v38 = vpop.permute.xlu1 %2709  ;;  %v2461_v9 = vpop.permute.xlu0 %2460 }
 0x31e   : > { %v2712_v54 = vadd.f32 %v2710_v38, %v2704_v2  ;;  %v2463_v47 = vadd.f32 %v2461_v9, %v2455_v44 }
 0x321   : > { %v2220_v43 = vpop.permute.xlu1 %2219  ;;  %v1971_v17 = vpop.permute.xlu0 %1970 }
 0x322   : > { %v2222_v21 = vadd.f32 %v2220_v43, %v2214_v11  ;;  %v1973_v22 = vadd.f32 %v1971_v17, %v1965_v31 }
 0x324   : > { %v2223_v51 = vmul.f32 0.5, %v2222_v21  ;;  %v1974_v52 = vmul.f32 0.5, %v1973_v22 }
 0x325   : > { %v2718_v29 = vpop.permute.xlu1 %2717  ;;  %v2469_v63 = vpop.permute.xlu0 %2468 }
 0x326   : > { %3218 = vtanh.f32 %v2223_v51  ;;  %v2720_v12 = vadd.f32 %v2718_v29, %v2712_v54  ;;  %v2471_v36 = vadd.f32 %v2469_v63, %v2463_v47 }
 0x327   : > { %3220 = vtanh.f32 %v1974_v52 }
 0x328   : > { %v2721_v58 = vmul.f32 0.5, %v2720_v12  ;;  %v2472_v62 = vmul.f32 0.5, %v2471_v36 }
 0x32a   : > { %3222 = vtanh.f32 %v2721_v58 }
 0x32b   : > { %3224 = vtanh.f32 %v2472_v62 }
 0x330   : > { %v3219_v46 = vpop.eup %3218 }
 0x331   : > { %v3221_v0 = vpop.eup %3220  ;;  %v2225_v50 = vadd.f32 1.0, %v3219_v46 }
 0x332   : > { %v1976_v7 = vadd.f32 1.0, %v3221_v0 }
 0x333   : > { %v2226_v16 = vmul.f32 0.5, %v2225_v50 }
 0x334   : > { %v3223_v48 = vpop.eup %3222  ;;  %v1977_v19 = vmul.f32 0.5, %v1976_v7 }
 0x335   : > { %v3225_v49 = vpop.eup %3224  ;;  %v2227_v32 = vmul.f32 %v2226_v16, %v2222_v21  ;;  %v2723_v45 = vadd.f32 1.0, %v3223_v48 }
 0x336   : > { %v1978_v33 = vmul.f32 %v1977_v19, %v1973_v22  ;;  %v2474_v34 = vadd.f32 1.0, %v3225_v49 }
 0x337   : > { %3061 = vst.msk [vmem:[%s4205_s10 + $0x28] sm:$0xff] %vm983_vm14, %v2227_v32  ;;  %v2724_v6 = vmul.f32 0.5, %v2723_v45 }
 0x338   : > { %3023 = vst.msk [vmem:[%s4205_s10 + $0x20] sm:$0xff] %vm983_vm14, %v1978_v33  ;;  %v2475_v4 = vmul.f32 0.5, %v2474_v34 }
 0x339   : > { %v2725_v26 = vmul.f32 %v2724_v6, %v2720_v12 }
 0x33a   : > { %v2476_v18 = vmul.f32 %v2475_v4, %v2471_v36 }
 0x33b   : > { %3137 = vst.msk [vmem:[%s4205_s10 + $0x38] sm:$0xff] %vm983_vm14, %v2725_v26 }
 0x33c   : > { %3099 = vst.msk [vmem:[%s4205_s10 + $0x30] sm:$0xff] %vm983_vm14, %v2476_v18 }
 0x33d   : > { %3293 = shalt.err (!%p3290_p1)
}
 0x33e   : > { %s3294_s27 = scalar_lea.hbm %s5119_s28, 1024  ;;  %s3298_s8 = scalar_lea.hbm %s5173_s3, 2048 }
 0x33f   : > { %p3295_p2 = scmp.ne.s32.totalorder %s5119_s28, %s3294_s27  ;;  %p3299_p9 = scmp.lt.u32.totalorder %s5119_s28, %s5173_s3 }
 0x340   : > { %p3300_p5 = scmp.lt.u32.totalorder %s3298_s8, %s3294_s27  ;;  %p3302_p10 = scmp.lt.u32.totalorder %s3294_s27, %s5119_s28 }
 0x341   : > { %p3296_p3 = pnand %p3295_p2, %p5186_p12 }
 0x342   : > { %p3301_p6 = por %p3300_p5, %p3299_p9 }
 0x343   : > { %p3297_p4 = pneg %p3296_p3 }
 0x344   : > { %p3303_p0 = por %p3302_p10, %p3301_p6 }
 0x346   : > { %p3304_p7 = pnand %p3303_p0, %p3297_p4 }
 0x348   : > { %3307 = shalt.err (!%p3304_p7)
}
 0x349   : > { %s3358_s11 = smov 128   ;;  %s3359_s17 = smov 8  }
 0x34a   : > { %3153 = dma.vmem_to_hbm [thread:$0]  (%p5186_p12), %s5121_s24, 1024, %s5119_s28, %s5129_s16, %s3358_s11, %s3358_s11, %s3359_s17  }
 0x34b PF: > { %p3170_p8 = scmp.ge.s32.totalorder %s3350_s15, 2  ;;  %s2757_s19 = sand.u32 1, %s3338_s12  }
 0x34c   : > { %p5187_p11 = scmp.ne.s32.totalorder %s5178_s23, 0  ;;  %s2758_s20 = scalar_lea.sflag [#allocation4], %s2757_s19 }
 0x34e   : > { %p3163_p13 = pnand %p3170_p8, %p5187_p11 }
 0x350   : > { %3333 = dma.done.wait (!%p3163_p13), %s2758_s20, 1024  }
 0x351   : > { %3335 = vsyncadd (!%p3163_p13), %s2758_s20, 4294966272  ;;  %p15_p1 = scmp.ge.s32.totalorder %s3405_s18, 4   ;;  %s5188_s12 = smov %s3342_s13 }
 0x352   : > { %s5189_s13 = smov %s3346_s14  ;;  %s5190_s14 = smov %s3416_s21 }
 0x353   : > { %s5191_s15 = smov %s3405_s18  ;;  %17 = sbr.rel (!%p15_p1) target bundleno = 5 (0x5), region = 86 }
 0x35a   :  { %2763 = vsyncpa [#allocation4], 1 }
 0x35b   :  { %2765 = vsyncpa [#allocation4 + $0x1], 1 }
 0x35c   :  { %2766 = vsyncpa [#allocation5], 1 }
 0x35d   :  { %2768 = vsyncpa [#allocation5 + $0x1], 1 }
 0x35e   :  { %2769 = vsyncpa [#allocation7], 1 }

</bundles_post_ra>
